<compile_context>
chip_gen: v7x
topology: tpu7x:2x2x1
jax: 0.10.0
libtpu: 0.0.40
codegen_flags: <defaults>
</compile_context>

<pallas_src>
import functools

import jax
import jax.numpy as jnp
from jax.experimental import pallas as pl
from jax.experimental.pallas import tpu as pltpu

EPS = 1e-5                      # PyTorch BatchNorm2d default eps
CP = 128                        # padded output-channel width (lane-dense activations)
CLS_P = 128                     # padded num_classes for the FC head
VMEM_LIMIT = 32 * 1024 * 1024   # safe on v5e/v6e (128 MiB) and v7x (64 MiB physical)


def _round_up(v, m):
    return (v + m - 1) // m * m


def _vmem_spec():
    return pl.BlockSpec(memory_space=pltpu.MemorySpace.VMEM)


def _choose_tm(m):
    """M tile: multiple of 16, <=512, and >=2 tiles whenever M allows (v7x megacore)."""
    m16 = _round_up(m, 16)
    if m16 < 32:
        return m16
    return min(512, _round_up(pl.cdiv(m16, 2), 16))


def _choose_tk(k_pad):
    """K tile that divides K exactly (k_pad is a multiple of 128)."""
    if k_pad <= 2048:
        return k_pad
    for tk in range(2048, 127, -128):
        if k_pad % tk == 0:
            return tk
    return 128


# ----------------------------- Pallas kernels -----------------------------

def gemm_bias_kernel(x_ref, w_ref, b_ref, o_ref, acc_ref, *, relu_cols):
    """K-tiled GEMM (BN scale pre-folded into weights); bias [+ partial ReLU] epilogue."""
    @pl.when(pl.program_id(1) == 0)
    def _():
        acc_ref[...] = jnp.zeros_like(acc_ref)

    acc_ref[...] += jnp.dot(x_ref[...], w_ref[...],
                            preferred_element_type=jnp.float32)

    @pl.when(pl.program_id(1) == pl.num_programs(1) - 1)
    def _():
        y = acc_ref[...] + b_ref[...]
        cout = y.shape[-1]
        if relu_cols >= cout:
            y = jnp.maximum(y, 0.0)
        elif relu_cols > 0:
            lane = jax.lax.broadcasted_iota(jnp.int32, y.shape, 1)
            y = jnp.where(lane < relu_cols, jnp.maximum(y, 0.0), y)
        o_ref[...] = y.astype(o_ref.dtype)


def gemm_bias_res_kernel(x_ref, w_ref, b_ref, r_ref, o_ref, acc_ref):
    """K-tiled GEMM; bias + residual add + ReLU epilogue only on the last K step."""
    @pl.when(pl.program_id(1) == 0)
    def _():
        acc_ref[...] = jnp.zeros_like(acc_ref)

    acc_ref[...] += jnp.dot(x_ref[...], w_ref[...],
                            preferred_element_type=jnp.float32)

    @pl.when(pl.program_id(1) == pl.num_programs(1) - 1)
    def _():
        y = acc_ref[...] + b_ref[...] + r_ref[...].astype(jnp.float32)
        o_ref[...] = jnp.maximum(y, 0.0).astype(o_ref.dtype)


def maxpool_kernel(p_ref, o_ref):
    """p_ref: (K*K, TM, CP) stacked pooling windows -> max over the window axis (bf16)."""
    o_ref[...] = jnp.max(p_ref[...], axis=0)


def head_kernel(x_ref, w_ref, b_ref, o_ref):
    """Fused global average pool + FC: x (N, HW, CP) -> logits (N, CLS_P)."""
    pooled = jnp.mean(x_ref[...].astype(jnp.float32), axis=1)
    o_ref[...] = jnp.dot(pooled, w_ref[...],
                         preferred_element_type=jnp.float32) + b_ref[...]


# ----------------------------- Pallas wrappers -----------------------------

def gemm_bias(x2d, w2d, bias, *, relu_cols, residual=None):
    """epilogue(x2d @ w2d) with an M-parallel / K-reduction tiled grid.

    x2d: (M, K) bf16 (real K); w2d: (K_pad, Cout_pad) bf16 pre-packed (BN scale folded,
    K_pad a multiple of 128, Cout_pad a multiple of 128); bias: (1, Cout_pad) f32.
    """
    m, k = x2d.shape
    k_pad, cout = w2d.shape
    tk = _choose_tk(k_pad)
    tm = _choose_tm(m)
    m_pad = _round_up(_round_up(m, 16), tm)

    x2d = jnp.pad(x2d, ((0, m_pad - m), (0, k_pad - k))).astype(jnp.bfloat16)

    in_specs = [
        pl.BlockSpec((tm, tk), lambda i, kk: (i, kk)),
        pl.BlockSpec((tk, cout), lambda i, kk: (kk, 0)),
        pl.BlockSpec((1, cout), lambda i, kk: (0, 0)),
    ]
    args = [x2d, w2d, bias]
    if residual is None:
        kernel = functools.partial(gemm_bias_kernel, relu_cols=relu_cols)
    else:
        residual = jnp.pad(residual, ((0, m_pad - m), (0, 0))).astype(jnp.bfloat16)
        # residual tile shares the output tile's index_map (fetched once per M tile)
        in_specs.append(pl.BlockSpec((tm, cout), lambda i, kk: (i, 0)))
        args.append(residual)
        kernel = gemm_bias_res_kernel

    out = pl.pallas_call(
        kernel,
        out_shape=jax.ShapeDtypeStruct((m_pad, cout), jnp.bfloat16),
        grid_spec=pltpu.PrefetchScalarGridSpec(
            num_scalar_prefetch=0,
            grid=(m_pad // tm, k_pad // tk),
            in_specs=in_specs,
            out_specs=pl.BlockSpec((tm, cout), lambda i, kk: (i, 0)),
            scratch_shapes=[pltpu.VMEM((tm, cout), jnp.float32)],
        ),
        compiler_params=pltpu.CompilerParams(
            dimension_semantics=("parallel", "arbitrary"),
            vmem_limit_bytes=VMEM_LIMIT,
        ),
    )(*args)
    return out[:m]


def conv_bn(x, packed, *, stride, pad, relu_cols, residual=None):
    """Conv2d(bias=False) + folded BN [+ residual] [+ ReLU] as a tiled Pallas GEMM.

    x: (N, H, W, C) bf16; packed: dict with pre-packed GEMM weight/bias + conv metadata.
    im2col is built from the REAL input channel count (packed["cin"])."""
    kh, kw, cin = packed["kh"], packed["kw"], packed["cin"]
    w2d, bias = packed["w"], packed["b"]
    n, h, wd, _ = x.shape
    hout = (h + 2 * pad - kh) // stride + 1
    wout = (wd + 2 * pad - kw) // stride + 1

    xr = x[..., :cin]                       # slice to real channels before im2col
    xp = jnp.pad(xr, ((0, 0), (pad, pad), (pad, pad), (0, 0))) if pad else xr
    cols = [xp[:, i:i + hout * stride:stride, j:j + wout * stride:stride, :]
            for i in range(kh) for j in range(kw)]
    patches = jnp.concatenate(cols, axis=-1) if len(cols) > 1 else cols[0]
    m = n * hout * wout
    x2d = patches.reshape(m, kh * kw * cin)
    res2d = None if residual is None else residual.reshape(m, residual.shape[-1])
    out2d = gemm_bias(x2d, w2d, bias, relu_cols=relu_cols, residual=res2d)
    return out2d.reshape(n, hout, wout, w2d.shape[1])


def maxpool2d(x, ksize=3, stride=2, pad=1):
    n, h, w, c = x.shape
    hout = (h + 2 * pad - ksize) // stride + 1
    wout = (w + 2 * pad - ksize) // stride + 1
    xp = jnp.pad(x, ((0, 0), (pad, pad), (pad, pad), (0, 0)),
                 constant_values=-jnp.inf)
    cols = [xp[:, i:i + hout * stride:stride, j:j + wout * stride:stride, :]
            for i in range(ksize) for j in range(ksize)]
    m = n * hout * wout
    patches = jnp.stack(cols, axis=0).reshape(ksize * ksize, m, c)
    tm = _choose_tm(m)
    m_pad = _round_up(_round_up(m, 16), tm)
    patches = jnp.pad(patches, ((0, 0), (0, m_pad - m), (0, 0)))
    out = pl.pallas_call(
        maxpool_kernel,
        out_shape=jax.ShapeDtypeStruct((m_pad, c), x.dtype),
        grid=(m_pad // tm,),
        in_specs=[pl.BlockSpec((ksize * ksize, tm, c), lambda i: (0, i, 0))],
        out_specs=pl.BlockSpec((tm, c), lambda i: (i, 0)),
        compiler_params=pltpu.CompilerParams(
            dimension_semantics=("parallel",),
            vmem_limit_bytes=VMEM_LIMIT,
        ),
    )(patches)
    return out[:m].reshape(n, hout, wout, c)


def head(x, fc_w, fc_b):
    """Fused global average pool + FC in one small whole-block kernel."""
    n, h, w, cp = x.shape
    x3d = x.reshape(n, h * w, cp)
    return pl.pallas_call(
        head_kernel,
        out_shape=jax.ShapeDtypeStruct((n, fc_w.shape[1]), jnp.float32),
        in_specs=[_vmem_spec(), _vmem_spec(), _vmem_spec()],
        out_specs=_vmem_spec(),
        compiler_params=pltpu.CompilerParams(vmem_limit_bytes=VMEM_LIMIT),
    )(x3d, fc_w, fc_b.reshape(1, fc_w.shape[1]))


# ----------------------------- Weight packing & init -----------------------------

def pack_conv(w, scale, bias, cout_pad=CP):
    """w: (kh, kw, cin, cout) f32; BN scale folded into w (f32), K padded to 128, bf16."""
    kh, kw, cin, cout = w.shape
    wf = w * scale.reshape(1, 1, 1, cout)
    k = kh * kw * cin
    k_pad = _round_up(k, 128)
    w2d = jnp.pad(wf.reshape(k, cout),
                  ((0, k_pad - k), (0, cout_pad - cout))).astype(jnp.bfloat16)
    b = jnp.pad(bias, (0, cout_pad - cout)).reshape(1, cout_pad).astype(jnp.float32)
    return {"w": w2d, "b": b, "kh": kh, "kw": kw, "cin": cin}


def pack_fused_conv_ds(w1, s1, b1, wd, sd, bd):
    """Fuse block conv1 (3x3) and downsample (1x1, embedded as center tap) along Cout."""
    kh, kw, cin, p = w1.shape
    wf = jnp.zeros((kh, kw, cin, 2 * CP), jnp.float32)
    wf = wf.at[:, :, :, :p].set(w1 * s1.reshape(1, 1, 1, p))
    wf = wf.at[kh // 2, kw // 2, :, CP:CP + p].set(wd[0, 0] * sd.reshape(1, p))
    k = kh * kw * cin
    k_pad = _round_up(k, 128)
    w2d = jnp.pad(wf.reshape(k, 2 * CP), ((0, k_pad - k), (0, 0))).astype(jnp.bfloat16)
    bias = jnp.concatenate([jnp.pad(b1, (0, CP - p)),
                            jnp.pad(bd, (0, CP - p))]).reshape(1, 2 * CP).astype(jnp.float32)
    return {"w": w2d, "b": bias, "kh": kh, "kw": kw, "cin": cin}


def init_resnet(key, in_ch=3, stem=8, planes=(8, 16, 32, 64),
                blocks=(2, 2, 2, 2), num_classes=10):
    keys = iter(jax.random.split(key, 256))
    params = {"num_classes": num_classes}

    def conv_w(kh, kw, cin, cout):
        fan_in = kh * kw * cin
        std = (2.0 / fan_in) ** 0.5
        return jax.random.normal(next(keys), (kh, kw, cin, cout), jnp.float32) * std

    def bn_sb(c):
        k1, k2, k3, k4 = jax.random.split(next(keys), 4)
        gamma = jax.random.uniform(k1, (c,), jnp.float32, 0.5, 1.5)
        beta = jax.random.normal(k2, (c,), jnp.float32) * 0.1
        mean = jax.random.normal(k3, (c,), jnp.float32) * 0.1
        var = jax.random.uniform(k4, (c,), jnp.float32, 0.5, 1.5)
        scale = gamma / jnp.sqrt(var + EPS)
        return scale, beta - mean * scale

    w = conv_w(7, 7, in_ch, stem)
    s, b = bn_sb(stem)
    params["stem"] = pack_conv(w, s, b)

    inplanes = stem
    strides = (1, 2, 2, 2)
    layers = []
    for p, nb, st in zip(planes, blocks, strides):
        layer = []
        for bi in range(nb):
            stride = st if bi == 0 else 1
            blk = {"stride": stride}
            w1 = conv_w(3, 3, inplanes, p)
            s1, b1 = bn_sb(p)
            w2 = conv_w(3, 3, p, p)
            s2, b2 = bn_sb(p)
            if stride != 1 or inplanes != p:
                wd = conv_w(1, 1, inplanes, p)
                sd, bd = bn_sb(p)
                blk["fused"] = pack_fused_conv_ds(w1, s1, b1, wd, sd, bd)
            else:
                blk["conv1"] = pack_conv(w1, s1, b1)
            blk["conv2"] = pack_conv(w2, s2, b2)
            layer.append(blk)
            inplanes = p
        layers.append(layer)
    params["layers"] = layers

    fc_w = jax.random.normal(next(keys), (inplanes, num_classes),
                             jnp.float32) * (1.0 / inplanes ** 0.5)
    fc_b = jax.random.normal(next(keys), (num_classes,), jnp.float32) * 0.01
    params["fc_w"] = jnp.pad(fc_w, ((0, CP - inplanes), (0, CLS_P - num_classes)))
    params["fc_b"] = jnp.pad(fc_b, (0, CLS_P - num_classes))
    return params


# ----------------------------- Forward pass -----------------------------

def basic_block_forward(x, p):
    stride = p["stride"]
    if "fused" in p:
        # conv1(3x3) + downsample(1x1, center-tap-embedded) share one GEMM; ReLU on the
        # conv1 half only (lanes [0, CP)), downsample half is the residual.
        both = conv_bn(x, p["fused"], stride=stride, pad=1, relu_cols=CP)
        out = both[..., :CP]
        residual = both[..., CP:]
    else:
        out = conv_bn(x, p["conv1"], stride=stride, pad=1, relu_cols=CP)
        residual = x
    # conv2 + BN + residual add + ReLU fused into the GEMM epilogue
    return conv_bn(out, p["conv2"], stride=1, pad=1, relu_cols=CP, residual=residual)


def resnet_forward(params, x_nchw):
    x = jnp.transpose(x_nchw, (0, 2, 3, 1)).astype(jnp.bfloat16)     # NCHW -> NHWC bf16
    # stem: conv7x7/2 + BN + ReLU, then maxpool3x3/2
    x = conv_bn(x, params["stem"], stride=2, pad=3, relu_cols=CP)
    x = maxpool2d(x, ksize=3, stride=2, pad=1)
    # layer1..layer4
    for layer in params["layers"]:
        for blk in layer:
            x = basic_block_forward(x, blk)
    # fused global average pool + fc, then slice off the class padding
    logits = head(x, params["fc_w"], params["fc_b"])
    return logits[:, :params["num_classes"]]


# ----------------------------- Main -----------------------------

if __name__ == "__main__":
    key = jax.random.PRNGKey(0)
    pkey, xkey = jax.random.split(key)
    params = init_resnet(pkey, in_ch=3, stem=8, planes=(8, 16, 32, 64),
                         blocks=(2, 2, 2, 2), num_classes=10)
    # PyTorch-style NCHW input, small shapes: batch=2, channels=3, spatial=32
    x = jax.random.normal(xkey, (2, 3, 32, 32), jnp.float32)
    fwd = jax.jit(functools.partial(resnet_forward, params))
    out = jax.block_until_ready(fwd(x))
    assert out.shape == (2, 10), out.shape
    assert bool(jnp.all(jnp.isfinite(out)))
    print("KERNEL_OK")
</pallas_src>

<mosaic_0001>
module attributes {stable_mosaic.version = 11 : i64} {
  func.func @gemm_bias_kernel(%arg0: i32, %arg1: i32, %arg2: memref<256x256xbf16, #tpu.memory_space<vmem>>, %arg3: memref<256x128xbf16, #tpu.memory_space<vmem>>, %arg4: memref<1x128xf32, #tpu.memory_space<vmem>>, %arg5: memref<256x128xbf16, #tpu.memory_space<vmem>>, %arg6: memref<256x128xf32, #tpu.memory_space<vmem>>) attributes {dimension_semantics = [#tpu.dimension_semantics<parallel>, #tpu.dimension_semantics<arbitrary>], iteration_bounds = array<i64: 2, 1>, scalar_prefetch = 0 : i64, scratch_operands = 1 : i64, tpu.core_type = #tpu.core_type<tc>, window_params = [{transform_indices = @transform_0, window_bounds = array<i64: 256, 256>}, {transform_indices = @transform_1, window_bounds = array<i64: 256, 128>}, {pipeline_mode = #tpu.pipeline_mode<synchronous>, transform_indices = @transform_2, window_bounds = array<i64: 1, 128>}, {transform_indices = @transform_3, window_bounds = array<i64: 256, 128>}]} {
    %c0_i32 = arith.constant 0 : i32
    %0 = arith.cmpi eq, %arg1, %c0_i32 : i32
    %1 = arith.extui %0 : i1 to i32
    %c0_i32_0 = arith.constant 0 : i32
    %2 = arith.cmpi ne, %1, %c0_i32_0 : i32
    scf.if %2 {
      %cst_10 = arith.constant 0.000000e+00 : f32
      %12 = vector.broadcast %cst_10 : f32 to vector<256x128xf32>
      %c0_11 = arith.constant 0 : index
      %c0_12 = arith.constant 0 : index
      %13 = vector.load %arg6[%c0_11, %c0_12] : memref<256x128xf32, #tpu.memory_space<vmem>>, vector<256x128xf32>
      tpu.vector_store %arg6[%c0_11, %c0_12], %12 {strides = array<i32>} : memref<256x128xf32, #tpu.memory_space<vmem>>, vector<256x128xf32>,
    } else {
    }
    %c0 = arith.constant 0 : index
    %c0_1 = arith.constant 0 : index
    %3 = vector.load %arg6[%c0, %c0_1] : memref<256x128xf32, #tpu.memory_space<vmem>>, vector<256x128xf32>
    %c0_2 = arith.constant 0 : index
    %c0_3 = arith.constant 0 : index
    %4 = vector.load %arg2[%c0_2, %c0_3] : memref<256x256xbf16, #tpu.memory_space<vmem>>, vector<256x256xbf16>
    %c0_4 = arith.constant 0 : index
    %c0_5 = arith.constant 0 : index
    %5 = vector.load %arg3[%c0_4, %c0_5] : memref<256x128xbf16, #tpu.memory_space<vmem>>, vector<256x128xbf16>
    %cst = arith.constant dense<0.000000e+00> : vector<256x128xf32>
    %6 = tpu.matmul %4, %5, %cst {dimension_numbers = #tpu.dot_dimension_numbers<[1], [0], [0], [1], [0, 0, 1, 1], [], []>} : vector<256x256xbf16>, vector<256x128xbf16>, vector<256x128xf32> -> vector<256x128xf32>
    %7 = arith.addf %3, %6 : vector<256x128xf32>
    %c0_6 = arith.constant 0 : index
    %c0_7 = arith.constant 0 : index
    %8 = vector.load %arg6[%c0_6, %c0_7] : memref<256x128xf32, #tpu.memory_space<vmem>>, vector<256x128xf32>
    tpu.vector_store %arg6[%c0_6, %c0_7], %7 {strides = array<i32>} : memref<256x128xf32, #tpu.memory_space<vmem>>, vector<256x128xf32>,
    %c0_i32_8 = arith.constant 0 : i32
    %9 = arith.cmpi eq, %arg1, %c0_i32_8 : i32
    %10 = arith.extui %9 : i1 to i32
    %c0_i32_9 = arith.constant 0 : i32
    %11 = arith.cmpi ne, %10, %c0_i32_9 : i32
    scf.if %11 {
      %c0_10 = arith.constant 0 : index
      %c0_11 = arith.constant 0 : index
      %12 = vector.load %arg6[%c0_10, %c0_11] : memref<256x128xf32, #tpu.memory_space<vmem>>, vector<256x128xf32>
      %c0_12 = arith.constant 0 : index
      %c0_13 = arith.constant 0 : index
      %13 = vector.load %arg4[%c0_12, %c0_13] : memref<1x128xf32, #tpu.memory_space<vmem>>, vector<1x128xf32>
      %14 = vector.broadcast %13 : vector<1x128xf32> to vector<256x128xf32>
      %15 = arith.addf %12, %14 : vector<256x128xf32>
      %cst_14 = arith.constant 0.000000e+00 : f32
      %16 = vector.broadcast %cst_14 : f32 to vector<256x128xf32>
      %17 = arith.maximumf %15, %16 : vector<256x128xf32>
      %18 = arith.truncf %17 : vector<256x128xf32> to vector<256x128xbf16>
      %c0_15 = arith.constant 0 : index
      %c0_16 = arith.constant 0 : index
      %19 = vector.load %arg5[%c0_15, %c0_16] : memref<256x128xbf16, #tpu.memory_space<vmem>>, vector<256x128xbf16>
      tpu.vector_store %arg5[%c0_15, %c0_16], %18 {strides = array<i32>} : memref<256x128xbf16, #tpu.memory_space<vmem>>, vector<256x128xbf16>,
    } else {
    }
    return
  }
  func.func @transform_0(%arg0: i32, %arg1: i32) -> (i32, i32) {
    %c0_i32 = arith.constant 0 : i32
    return %arg0, %arg1 : i32, i32
  }
  func.func @transform_1(%arg0: i32, %arg1: i32) -> (i32, i32) {
    %c0_i32 = arith.constant 0 : i32
    %c0_i32_0 = arith.constant 0 : i32
    return %arg1, %c0_i32 : i32, i32
  }
  func.func @transform_2(%arg0: i32, %arg1: i32) -> (i32, i32) {
    %c0_i32 = arith.constant 0 : i32
    %c0_i32_0 = arith.constant 0 : i32
    %c0_i32_1 = arith.constant 0 : i32
    return %c0_i32, %c0_i32_0 : i32, i32
  }
  func.func @transform_3(%arg0: i32, %arg1: i32) -> (i32, i32) {
    %c0_i32 = arith.constant 0 : i32
    %c0_i32_0 = arith.constant 0 : i32
    return %arg0, %c0_i32 : i32, i32
  }
}

module attributes {stable_mosaic.version = 11 : i64} {
  func.func @maxpool_kernel(%arg0: i32, %arg1: memref<9x64x128xbf16, #tpu.memory_space<vmem>>, %arg2: memref<64x128xbf16, #tpu.memory_space<vmem>>) attributes {dimension_semantics = [#tpu.dimension_semantics<parallel>], iteration_bounds = array<i64: 2>, scalar_prefetch = 0 : i64, scratch_operands = 0 : i64, tpu.core_type = #tpu.core_type<tc>, window_params = [{transform_indices = @transform_0, window_bounds = array<i64: 9, 64, 128>}, {transform_indices = @transform_1, window_bounds = array<i64: 64, 128>}]} {
    %c0 = arith.constant 0 : index
    %c0_0 = arith.constant 0 : index
    %c0_1 = arith.constant 0 : index
    %0 = vector.load %arg1[%c0, %c0_0, %c0_1] : memref<9x64x128xbf16, #tpu.memory_space<vmem>>, vector<9x64x128xbf16>
    %cst = arith.constant dense<0xFF80> : vector<64x128xbf16>
    %1 = vector.multi_reduction <maximumf>, %0, %cst [0] : vector<9x64x128xbf16> to vector<64x128xbf16>
    %c0_2 = arith.constant 0 : index
    %c0_3 = arith.constant 0 : index
    %2 = vector.load %arg2[%c0_2, %c0_3] : memref<64x128xbf16, #tpu.memory_space<vmem>>, vector<64x128xbf16>
    tpu.vector_store %arg2[%c0_2, %c0_3], %1 {strides = array<i32>} : memref<64x128xbf16, #tpu.memory_space<vmem>>, vector<64x128xbf16>,
    return
  }
  func.func @transform_0(%arg0: i32) -> (i32, i32, i32) {
    %c0_i32 = arith.constant 0 : i32
    %c0_i32_0 = arith.constant 0 : i32
    %c0_i32_1 = arith.constant 0 : i32
    return %c0_i32, %arg0, %c0_i32_0 : i32, i32, i32
  }
  func.func @transform_1(%arg0: i32) -> (i32, i32) {
    %c0_i32 = arith.constant 0 : i32
    %c0_i32_0 = arith.constant 0 : i32
    return %arg0, %c0_i32 : i32, i32
  }
}

module attributes {stable_mosaic.version = 11 : i64} {
  func.func @gemm_bias_res_kernel(%arg0: i32, %arg1: i32, %arg2: memref<64x128xbf16, #tpu.memory_space<vmem>>, %arg3: memref<128x128xbf16, #tpu.memory_space<vmem>>, %arg4: memref<1x128xf32, #tpu.memory_space<vmem>>, %arg5: memref<64x128xbf16, #tpu.memory_space<vmem>>, %arg6: memref<64x128xbf16, #tpu.memory_space<vmem>>, %arg7: memref<64x128xf32, #tpu.memory_space<vmem>>) attributes {dimension_semantics = [#tpu.dimension_semantics<parallel>, #tpu.dimension_semantics<arbitrary>], iteration_bounds = array<i64: 2, 1>, scalar_prefetch = 0 : i64, scratch_operands = 1 : i64, tpu.core_type = #tpu.core_type<tc>, window_params = [{transform_indices = @transform_0, window_bounds = array<i64: 64, 128>}, {transform_indices = @transform_1, window_bounds = array<i64: 128, 128>}, {pipeline_mode = #tpu.pipeline_mode<synchronous>, transform_indices = @transform_2, window_bounds = array<i64: 1, 128>}, {transform_indices = @transform_3, window_bounds = array<i64: 64, 128>}, {transform_indices = @transform_4, window_bounds = array<i64: 64, 128>}]} {
    %c0_i32 = arith.constant 0 : i32
    %0 = arith.cmpi eq, %arg1, %c0_i32 : i32
    %1 = arith.extui %0 : i1 to i32
    %c0_i32_0 = arith.constant 0 : i32
    %2 = arith.cmpi ne, %1, %c0_i32_0 : i32
    scf.if %2 {
      %cst_10 = arith.constant 0.000000e+00 : f32
      %12 = vector.broadcast %cst_10 : f32 to vector<64x128xf32>
      %c0_11 = arith.constant 0 : index
      %c0_12 = arith.constant 0 : index
      %13 = vector.load %arg7[%c0_11, %c0_12] : memref<64x128xf32, #tpu.memory_space<vmem>>, vector<64x128xf32>
      tpu.vector_store %arg7[%c0_11, %c0_12], %12 {strides = array<i32>} : memref<64x128xf32, #tpu.memory_space<vmem>>, vector<64x128xf32>,
    } else {
    }
    %c0 = arith.constant 0 : index
    %c0_1 = arith.constant 0 : index
    %3 = vector.load %arg7[%c0, %c0_1] : memref<64x128xf32, #tpu.memory_space<vmem>>, vector<64x128xf32>
    %c0_2 = arith.constant 0 : index
    %c0_3 = arith.constant 0 : index
    %4 = vector.load %arg2[%c0_2, %c0_3] : memref<64x128xbf16, #tpu.memory_space<vmem>>, vector<64x128xbf16>
    %c0_4 = arith.constant 0 : index
    %c0_5 = arith.constant 0 : index
    %5 = vector.load %arg3[%c0_4, %c0_5] : memref<128x128xbf16, #tpu.memory_space<vmem>>, vector<128x128xbf16>
    %cst = arith.constant dense<0.000000e+00> : vector<64x128xf32>
    %6 = tpu.matmul %4, %5, %cst {dimension_numbers = #tpu.dot_dimension_numbers<[1], [0], [0], [1], [0, 0, 1, 1], [], []>} : vector<64x128xbf16>, vector<128x128xbf16>, vector<64x128xf32> -> vector<64x128xf32>
    %7 = arith.addf %3, %6 : vector<64x128xf32>
    %c0_6 = arith.constant 0 : index
    %c0_7 = arith.constant 0 : index
    %8 = vector.load %arg7[%c0_6, %c0_7] : memref<64x128xf32, #tpu.memory_space<vmem>>, vector<64x128xf32>
    tpu.vector_store %arg7[%c0_6, %c0_7], %7 {strides = array<i32>} : memref<64x128xf32, #tpu.memory_space<vmem>>, vector<64x128xf32>,
    %c0_i32_8 = arith.constant 0 : i32
    %9 = arith.cmpi eq, %arg1, %c0_i32_8 : i32
    %10 = arith.extui %9 : i1 to i32
    %c0_i32_9 = arith.constant 0 : i32
    %11 = arith.cmpi ne, %10, %c0_i32_9 : i32
    scf.if %11 {
      %c0_10 = arith.constant 0 : index
      %c0_11 = arith.constant 0 : index
      %12 = vector.load %arg7[%c0_10, %c0_11] : memref<64x128xf32, #tpu.memory_space<vmem>>, vector<64x128xf32>
      %c0_12 = arith.constant 0 : index
      %c0_13 = arith.constant 0 : index
      %13 = vector.load %arg4[%c0_12, %c0_13] : memref<1x128xf32, #tpu.memory_space<vmem>>, vector<1x128xf32>
      %14 = vector.broadcast %13 : vector<1x128xf32> to vector<64x128xf32>
      %15 = arith.addf %12, %14 : vector<64x128xf32>
      %c0_14 = arith.constant 0 : index
      %c0_15 = arith.constant 0 : index
      %16 = vector.load %arg5[%c0_14, %c0_15] : memref<64x128xbf16, #tpu.memory_space<vmem>>, vector<64x128xbf16>
      %17 = arith.extf %16 : vector<64x128xbf16> to vector<64x128xf32>
      %18 = arith.addf %15, %17 : vector<64x128xf32>
      %cst_16 = arith.constant 0.000000e+00 : f32
      %19 = vector.broadcast %cst_16 : f32 to vector<64x128xf32>
      %20 = arith.maximumf %18, %19 : vector<64x128xf32>
      %21 = arith.truncf %20 : vector<64x128xf32> to vector<64x128xbf16>
      %c0_17 = arith.constant 0 : index
      %c0_18 = arith.constant 0 : index
      %22 = vector.load %arg6[%c0_17, %c0_18] : memref<64x128xbf16, #tpu.memory_space<vmem>>, vector<64x128xbf16>
      tpu.vector_store %arg6[%c0_17, %c0_18], %21 {strides = array<i32>} : memref<64x128xbf16, #tpu.memory_space<vmem>>, vector<64x128xbf16>,
    } else {
    }
    return
  }
  func.func @transform_0(%arg0: i32, %arg1: i32) -> (i32, i32) {
    %c0_i32 = arith.constant 0 : i32
    return %arg0, %arg1 : i32, i32
  }
  func.func @transform_1(%arg0: i32, %arg1: i32) -> (i32, i32) {
    %c0_i32 = arith.constant 0 : i32
    %c0_i32_0 = arith.constant 0 : i32
    return %arg1, %c0_i32 : i32, i32
  }
  func.func @transform_2(%arg0: i32, %arg1: i32) -> (i32, i32) {
    %c0_i32 = arith.constant 0 : i32
    %c0_i32_0 = arith.constant 0 : i32
    %c0_i32_1 = arith.constant 0 : i32
    return %c0_i32, %c0_i32_0 : i32, i32
  }
  func.func @transform_3(%arg0: i32, %arg1: i32) -> (i32, i32) {
    %c0_i32 = arith.constant 0 : i32
    %c0_i32_0 = arith.constant 0 : i32
    return %arg0, %c0_i32 : i32, i32
  }
  func.func @transform_4(%arg0: i32, %arg1: i32) -> (i32, i32) {
    %c0_i32 = arith.constant 0 : i32
    %c0_i32_0 = arith.constant 0 : i32
    return %arg0, %c0_i32 : i32, i32
  }
}

module attributes {stable_mosaic.version = 11 : i64} {
  func.func @gemm_bias_kernel(%arg0: i32, %arg1: i32, %arg2: memref<64x128xbf16, #tpu.memory_space<vmem>>, %arg3: memref<128x128xbf16, #tpu.memory_space<vmem>>, %arg4: memref<1x128xf32, #tpu.memory_space<vmem>>, %arg5: memref<64x128xbf16, #tpu.memory_space<vmem>>, %arg6: memref<64x128xf32, #tpu.memory_space<vmem>>) attributes {dimension_semantics = [#tpu.dimension_semantics<parallel>, #tpu.dimension_semantics<arbitrary>], iteration_bounds = array<i64: 2, 1>, scalar_prefetch = 0 : i64, scratch_operands = 1 : i64, tpu.core_type = #tpu.core_type<tc>, window_params = [{transform_indices = @transform_0, window_bounds = array<i64: 64, 128>}, {transform_indices = @transform_1, window_bounds = array<i64: 128, 128>}, {pipeline_mode = #tpu.pipeline_mode<synchronous>, transform_indices = @transform_2, window_bounds = array<i64: 1, 128>}, {transform_indices = @transform_3, window_bounds = array<i64: 64, 128>}]} {
    %c0_i32 = arith.constant 0 : i32
    %0 = arith.cmpi eq, %arg1, %c0_i32 : i32
    %1 = arith.extui %0 : i1 to i32
    %c0_i32_0 = arith.constant 0 : i32
    %2 = arith.cmpi ne, %1, %c0_i32_0 : i32
    scf.if %2 {
      %cst_10 = arith.constant 0.000000e+00 : f32
      %12 = vector.broadcast %cst_10 : f32 to vector<64x128xf32>
      %c0_11 = arith.constant 0 : index
      %c0_12 = arith.constant 0 : index
      %13 = vector.load %arg6[%c0_11, %c0_12] : memref<64x128xf32, #tpu.memory_space<vmem>>, vector<64x128xf32>
      tpu.vector_store %arg6[%c0_11, %c0_12], %12 {strides = array<i32>} : memref<64x128xf32, #tpu.memory_space<vmem>>, vector<64x128xf32>,
    } else {
    }
    %c0 = arith.constant 0 : index
    %c0_1 = arith.constant 0 : index
    %3 = vector.load %arg6[%c0, %c0_1] : memref<64x128xf32, #tpu.memory_space<vmem>>, vector<64x128xf32>
    %c0_2 = arith.constant 0 : index
    %c0_3 = arith.constant 0 : index
    %4 = vector.load %arg2[%c0_2, %c0_3] : memref<64x128xbf16, #tpu.memory_space<vmem>>, vector<64x128xbf16>
    %c0_4 = arith.constant 0 : index
    %c0_5 = arith.constant 0 : index
    %5 = vector.load %arg3[%c0_4, %c0_5] : memref<128x128xbf16, #tpu.memory_space<vmem>>, vector<128x128xbf16>
    %cst = arith.constant dense<0.000000e+00> : vector<64x128xf32>
    %6 = tpu.matmul %4, %5, %cst {dimension_numbers = #tpu.dot_dimension_numbers<[1], [0], [0], [1], [0, 0, 1, 1], [], []>} : vector<64x128xbf16>, vector<128x128xbf16>, vector<64x128xf32> -> vector<64x128xf32>
    %7 = arith.addf %3, %6 : vector<64x128xf32>
    %c0_6 = arith.constant 0 : index
    %c0_7 = arith.constant 0 : index
    %8 = vector.load %arg6[%c0_6, %c0_7] : memref<64x128xf32, #tpu.memory_space<vmem>>, vector<64x128xf32>
    tpu.vector_store %arg6[%c0_6, %c0_7], %7 {strides = array<i32>} : memref<64x128xf32, #tpu.memory_space<vmem>>, vector<64x128xf32>,
    %c0_i32_8 = arith.constant 0 : i32
    %9 = arith.cmpi eq, %arg1, %c0_i32_8 : i32
    %10 = arith.extui %9 : i1 to i32
    %c0_i32_9 = arith.constant 0 : i32
    %11 = arith.cmpi ne, %10, %c0_i32_9 : i32
    scf.if %11 {
      %c0_10 = arith.constant 0 : index
      %c0_11 = arith.constant 0 : index
      %12 = vector.load %arg6[%c0_10, %c0_11] : memref<64x128xf32, #tpu.memory_space<vmem>>, vector<64x128xf32>
      %c0_12 = arith.constant 0 : index
      %c0_13 = arith.constant 0 : index
      %13 = vector.load %arg4[%c0_12, %c0_13] : memref<1x128xf32, #tpu.memory_space<vmem>>, vector<1x128xf32>
      %14 = vector.broadcast %13 : vector<1x128xf32> to vector<64x128xf32>
      %15 = arith.addf %12, %14 : vector<64x128xf32>
      %cst_14 = arith.constant 0.000000e+00 : f32
      %16 = vector.broadcast %cst_14 : f32 to vector<64x128xf32>
      %17 = arith.maximumf %15, %16 : vector<64x128xf32>
      %18 = arith.truncf %17 : vector<64x128xf32> to vector<64x128xbf16>
      %c0_15 = arith.constant 0 : index
      %c0_16 = arith.constant 0 : index
      %19 = vector.load %arg5[%c0_15, %c0_16] : memref<64x128xbf16, #tpu.memory_space<vmem>>, vector<64x128xbf16>
      tpu.vector_store %arg5[%c0_15, %c0_16], %18 {strides = array<i32>} : memref<64x128xbf16, #tpu.memory_space<vmem>>, vector<64x128xbf16>,
    } else {
    }
    return
  }
  func.func @transform_0(%arg0: i32, %arg1: i32) -> (i32, i32) {
    %c0_i32 = arith.constant 0 : i32
    return %arg0, %arg1 : i32, i32
  }
  func.func @transform_1(%arg0: i32, %arg1: i32) -> (i32, i32) {
    %c0_i32 = arith.constant 0 : i32
    %c0_i32_0 = arith.constant 0 : i32
    return %arg1, %c0_i32 : i32, i32
  }
  func.func @transform_2(%arg0: i32, %arg1: i32) -> (i32, i32) {
    %c0_i32 = arith.constant 0 : i32
    %c0_i32_0 = arith.constant 0 : i32
    %c0_i32_1 = arith.constant 0 : i32
    return %c0_i32, %c0_i32_0 : i32, i32
  }
  func.func @transform_3(%arg0: i32, %arg1: i32) -> (i32, i32) {
    %c0_i32 = arith.constant 0 : i32
    %c0_i32_0 = arith.constant 0 : i32
    return %arg0, %c0_i32 : i32, i32
  }
}

module attributes {stable_mosaic.version = 11 : i64} {
  func.func @gemm_bias_kernel(%arg0: i32, %arg1: i32, %arg2: memref<16x128xbf16, #tpu.memory_space<vmem>>, %arg3: memref<128x256xbf16, #tpu.memory_space<vmem>>, %arg4: memref<1x256xf32, #tpu.memory_space<vmem>>, %arg5: memref<16x256xbf16, #tpu.memory_space<vmem>>, %arg6: memref<16x256xf32, #tpu.memory_space<vmem>>) attributes {dimension_semantics = [#tpu.dimension_semantics<parallel>, #tpu.dimension_semantics<arbitrary>], iteration_bounds = array<i64: 2, 1>, scalar_prefetch = 0 : i64, scratch_operands = 1 : i64, tpu.core_type = #tpu.core_type<tc>, window_params = [{transform_indices = @transform_0, window_bounds = array<i64: 16, 128>}, {transform_indices = @transform_1, window_bounds = array<i64: 128, 256>}, {pipeline_mode = #tpu.pipeline_mode<synchronous>, transform_indices = @transform_2, window_bounds = array<i64: 1, 256>}, {transform_indices = @transform_3, window_bounds = array<i64: 16, 256>}]} {
    %c0_i32 = arith.constant 0 : i32
    %0 = arith.cmpi eq, %arg1, %c0_i32 : i32
    %1 = arith.extui %0 : i1 to i32
    %c0_i32_0 = arith.constant 0 : i32
    %2 = arith.cmpi ne, %1, %c0_i32_0 : i32
    scf.if %2 {
      %cst_10 = arith.constant 0.000000e+00 : f32
      %12 = vector.broadcast %cst_10 : f32 to vector<16x256xf32>
      %c0_11 = arith.constant 0 : index
      %c0_12 = arith.constant 0 : index
      %13 = vector.load %arg6[%c0_11, %c0_12] : memref<16x256xf32, #tpu.memory_space<vmem>>, vector<16x256xf32>
      tpu.vector_store %arg6[%c0_11, %c0_12], %12 {strides = array<i32>} : memref<16x256xf32, #tpu.memory_space<vmem>>, vector<16x256xf32>,
    } else {
    }
    %c0 = arith.constant 0 : index
    %c0_1 = arith.constant 0 : index
    %3 = vector.load %arg6[%c0, %c0_1] : memref<16x256xf32, #tpu.memory_space<vmem>>, vector<16x256xf32>
    %c0_2 = arith.constant 0 : index
    %c0_3 = arith.constant 0 : index
    %4 = vector.load %arg2[%c0_2, %c0_3] : memref<16x128xbf16, #tpu.memory_space<vmem>>, vector<16x128xbf16>
    %c0_4 = arith.constant 0 : index
    %c0_5 = arith.constant 0 : index
    %5 = vector.load %arg3[%c0_4, %c0_5] : memref<128x256xbf16, #tpu.memory_space<vmem>>, vector<128x256xbf16>
    %cst = arith.constant dense<0.000000e+00> : vector<16x256xf32>
    %6 = tpu.matmul %4, %5, %cst {dimension_numbers = #tpu.dot_dimension_numbers<[1], [0], [0], [1], [0, 0, 1, 1], [], []>} : vector<16x128xbf16>, vector<128x256xbf16>, vector<16x256xf32> -> vector<16x256xf32>
    %7 = arith.addf %3, %6 : vector<16x256xf32>
    %c0_6 = arith.constant 0 : index
    %c0_7 = arith.constant 0 : index
    %8 = vector.load %arg6[%c0_6, %c0_7] : memref<16x256xf32, #tpu.memory_space<vmem>>, vector<16x256xf32>
    tpu.vector_store %arg6[%c0_6, %c0_7], %7 {strides = array<i32>} : memref<16x256xf32, #tpu.memory_space<vmem>>, vector<16x256xf32>,
    %c0_i32_8 = arith.constant 0 : i32
    %9 = arith.cmpi eq, %arg1, %c0_i32_8 : i32
    %10 = arith.extui %9 : i1 to i32
    %c0_i32_9 = arith.constant 0 : i32
    %11 = arith.cmpi ne, %10, %c0_i32_9 : i32
    scf.if %11 {
      %c0_10 = arith.constant 0 : index
      %c0_11 = arith.constant 0 : index
      %12 = vector.load %arg6[%c0_10, %c0_11] : memref<16x256xf32, #tpu.memory_space<vmem>>, vector<16x256xf32>
      %c0_12 = arith.constant 0 : index
      %c0_13 = arith.constant 0 : index
      %13 = vector.load %arg4[%c0_12, %c0_13] : memref<1x256xf32, #tpu.memory_space<vmem>>, vector<1x256xf32>
      %14 = vector.broadcast %13 : vector<1x256xf32> to vector<16x256xf32>
      %15 = arith.addf %12, %14 : vector<16x256xf32>
      %16 = tpu.iota {dimensions = array<i32: 1>} : vector<16x256xi32>
      %c128_i32 = arith.constant 128 : i32
      %17 = vector.broadcast %c128_i32 : i32 to vector<16x256xi32>
      %18 = arith.cmpi slt, %16, %17 : vector<16x256xi32>
      %cst_14 = arith.constant 0.000000e+00 : f32
      %19 = vector.broadcast %cst_14 : f32 to vector<16x256xf32>
      %20 = arith.maximumf %15, %19 : vector<16x256xf32>
      %21 = arith.select %18, %20, %15 : vector<16x256xi1>, vector<16x256xf32>
      %22 = arith.truncf %21 : vector<16x256xf32> to vector<16x256xbf16>
      %c0_15 = arith.constant 0 : index
      %c0_16 = arith.constant 0 : index
      %23 = vector.load %arg5[%c0_15, %c0_16] : memref<16x256xbf16, #tpu.memory_space<vmem>>, vector<16x256xbf16>
      tpu.vector_store %arg5[%c0_15, %c0_16], %22 {strides = array<i32>} : memref<16x256xbf16, #tpu.memory_space<vmem>>, vector<16x256xbf16>,
    } else {
    }
    return
  }
  func.func @transform_0(%arg0: i32, %arg1: i32) -> (i32, i32) {
    %c0_i32 = arith.constant 0 : i32
    return %arg0, %arg1 : i32, i32
  }
  func.func @transform_1(%arg0: i32, %arg1: i32) -> (i32, i32) {
    %c0_i32 = arith.constant 0 : i32
    %c0_i32_0 = arith.constant 0 : i32
    return %arg1, %c0_i32 : i32, i32
  }
  func.func @transform_2(%arg0: i32, %arg1: i32) -> (i32, i32) {
    %c0_i32 = arith.constant 0 : i32
    %c0_i32_0 = arith.constant 0 : i32
    %c0_i32_1 = arith.constant 0 : i32
    return %c0_i32, %c0_i32_0 : i32, i32
  }
  func.func @transform_3(%arg0: i32, %arg1: i32) -> (i32, i32) {
    %c0_i32 = arith.constant 0 : i32
    %c0_i32_0 = arith.constant 0 : i32
    return %arg0, %c0_i32 : i32, i32
  }
}

module attributes {stable_mosaic.version = 11 : i64} {
  func.func @gemm_bias_kernel(%arg0: i32, %arg1: i32, %arg2: memref<16x256xbf16, #tpu.memory_space<vmem>>, %arg3: memref<256x128xbf16, #tpu.memory_space<vmem>>, %arg4: memref<1x128xf32, #tpu.memory_space<vmem>>, %arg5: memref<16x128xbf16, #tpu.memory_space<vmem>>, %arg6: memref<16x128xf32, #tpu.memory_space<vmem>>) attributes {dimension_semantics = [#tpu.dimension_semantics<parallel>, #tpu.dimension_semantics<arbitrary>], iteration_bounds = array<i64: 2, 1>, scalar_prefetch = 0 : i64, scratch_operands = 1 : i64, tpu.core_type = #tpu.core_type<tc>, window_params = [{transform_indices = @transform_0, window_bounds = array<i64: 16, 256>}, {transform_indices = @transform_1, window_bounds = array<i64: 256, 128>}, {pipeline_mode = #tpu.pipeline_mode<synchronous>, transform_indices = @transform_2, window_bounds = array<i64: 1, 128>}, {transform_indices = @transform_3, window_bounds = array<i64: 16, 128>}]} {
    %c0_i32 = arith.constant 0 : i32
    %0 = arith.cmpi eq, %arg1, %c0_i32 : i32
    %1 = arith.extui %0 : i1 to i32
    %c0_i32_0 = arith.constant 0 : i32
    %2 = arith.cmpi ne, %1, %c0_i32_0 : i32
    scf.if %2 {
      %cst_10 = arith.constant 0.000000e+00 : f32
      %12 = vector.broadcast %cst_10 : f32 to vector<16x128xf32>
      %c0_11 = arith.constant 0 : index
      %c0_12 = arith.constant 0 : index
      %13 = vector.load %arg6[%c0_11, %c0_12] : memref<16x128xf32, #tpu.memory_space<vmem>>, vector<16x128xf32>
      tpu.vector_store %arg6[%c0_11, %c0_12], %12 {strides = array<i32>} : memref<16x128xf32, #tpu.memory_space<vmem>>, vector<16x128xf32>,
    } else {
    }
    %c0 = arith.constant 0 : index
    %c0_1 = arith.constant 0 : index
    %3 = vector.load %arg6[%c0, %c0_1] : memref<16x128xf32, #tpu.memory_space<vmem>>, vector<16x128xf32>
    %c0_2 = arith.constant 0 : index
    %c0_3 = arith.constant 0 : index
    %4 = vector.load %arg2[%c0_2, %c0_3] : memref<16x256xbf16, #tpu.memory_space<vmem>>, vector<16x256xbf16>
    %c0_4 = arith.constant 0 : index
    %c0_5 = arith.constant 0 : index
    %5 = vector.load %arg3[%c0_4, %c0_5] : memref<256x128xbf16, #tpu.memory_space<vmem>>, vector<256x128xbf16>
    %cst = arith.constant dense<0.000000e+00> : vector<16x128xf32>
    %6 = tpu.matmul %4, %5, %cst {dimension_numbers = #tpu.dot_dimension_numbers<[1], [0], [0], [1], [0, 0, 1, 1], [], []>} : vector<16x256xbf16>, vector<256x128xbf16>, vector<16x128xf32> -> vector<16x128xf32>
    %7 = arith.addf %3, %6 : vector<16x128xf32>
    %c0_6 = arith.constant 0 : index
    %c0_7 = arith.constant 0 : index
    %8 = vector.load %arg6[%c0_6, %c0_7] : memref<16x128xf32, #tpu.memory_space<vmem>>, vector<16x128xf32>
    tpu.vector_store %arg6[%c0_6, %c0_7], %7 {strides = array<i32>} : memref<16x128xf32, #tpu.memory_space<vmem>>, vector<16x128xf32>,
    %c0_i32_8 = arith.constant 0 : i32
    %9 = arith.cmpi eq, %arg1, %c0_i32_8 : i32
    %10 = arith.extui %9 : i1 to i32
    %c0_i32_9 = arith.constant 0 : i32
    %11 = arith.cmpi ne, %10, %c0_i32_9 : i32
    scf.if %11 {
      %c0_10 = arith.constant 0 : index
      %c0_11 = arith.constant 0 : index
      %12 = vector.load %arg6[%c0_10, %c0_11] : memref<16x128xf32, #tpu.memory_space<vmem>>, vector<16x128xf32>
      %c0_12 = arith.constant 0 : index
      %c0_13 = arith.constant 0 : index
      %13 = vector.load %arg4[%c0_12, %c0_13] : memref<1x128xf32, #tpu.memory_space<vmem>>, vector<1x128xf32>
      %14 = vector.broadcast %13 : vector<1x128xf32> to vector<16x128xf32>
      %15 = arith.addf %12, %14 : vector<16x128xf32>
      %cst_14 = arith.constant 0.000000e+00 : f32
      %16 = vector.broadcast %cst_14 : f32 to vector<16x128xf32>
      %17 = arith.maximumf %15, %16 : vector<16x128xf32>
      %18 = arith.truncf %17 : vector<16x128xf32> to vector<16x128xbf16>
      %c0_15 = arith.constant 0 : index
      %c0_16 = arith.constant 0 : index
      %19 = vector.load %arg5[%c0_15, %c0_16] : memref<16x128xbf16, #tpu.memory_space<vmem>>, vector<16x128xbf16>
      tpu.vector_store %arg5[%c0_15, %c0_16], %18 {strides = array<i32>} : memref<16x128xbf16, #tpu.memory_space<vmem>>, vector<16x128xbf16>,
    } else {
    }
    return
  }
  func.func @transform_0(%arg0: i32, %arg1: i32) -> (i32, i32) {
    %c0_i32 = arith.constant 0 : i32
    return %arg0, %arg1 : i32, i32
  }
  func.func @transform_1(%arg0: i32, %arg1: i32) -> (i32, i32) {
    %c0_i32 = arith.constant 0 : i32
    %c0_i32_0 = arith.constant 0 : i32
    return %arg1, %c0_i32 : i32, i32
  }
  func.func @transform_2(%arg0: i32, %arg1: i32) -> (i32, i32) {
    %c0_i32 = arith.constant 0 : i32
    %c0_i32_0 = arith.constant 0 : i32
    %c0_i32_1 = arith.constant 0 : i32
    return %c0_i32, %c0_i32_0 : i32, i32
  }
  func.func @transform_3(%arg0: i32, %arg1: i32) -> (i32, i32) {
    %c0_i32 = arith.constant 0 : i32
    %c0_i32_0 = arith.constant 0 : i32
    return %arg0, %c0_i32 : i32, i32
  }
}

module attributes {stable_mosaic.version = 11 : i64} {
  func.func @gemm_bias_res_kernel(%arg0: i32, %arg1: i32, %arg2: memref<16x256xbf16, #tpu.memory_space<vmem>>, %arg3: memref<256x128xbf16, #tpu.memory_space<vmem>>, %arg4: memref<1x128xf32, #tpu.memory_space<vmem>>, %arg5: memref<16x128xbf16, #tpu.memory_space<vmem>>, %arg6: memref<16x128xbf16, #tpu.memory_space<vmem>>, %arg7: memref<16x128xf32, #tpu.memory_space<vmem>>) attributes {dimension_semantics = [#tpu.dimension_semantics<parallel>, #tpu.dimension_semantics<arbitrary>], iteration_bounds = array<i64: 2, 1>, scalar_prefetch = 0 : i64, scratch_operands = 1 : i64, tpu.core_type = #tpu.core_type<tc>, window_params = [{transform_indices = @transform_0, window_bounds = array<i64: 16, 256>}, {transform_indices = @transform_1, window_bounds = array<i64: 256, 128>}, {pipeline_mode = #tpu.pipeline_mode<synchronous>, transform_indices = @transform_2, window_bounds = array<i64: 1, 128>}, {transform_indices = @transform_3, window_bounds = array<i64: 16, 128>}, {transform_indices = @transform_4, window_bounds = array<i64: 16, 128>}]} {
    %c0_i32 = arith.constant 0 : i32
    %0 = arith.cmpi eq, %arg1, %c0_i32 : i32
    %1 = arith.extui %0 : i1 to i32
    %c0_i32_0 = arith.constant 0 : i32
    %2 = arith.cmpi ne, %1, %c0_i32_0 : i32
    scf.if %2 {
      %cst_10 = arith.constant 0.000000e+00 : f32
      %12 = vector.broadcast %cst_10 : f32 to vector<16x128xf32>
      %c0_11 = arith.constant 0 : index
      %c0_12 = arith.constant 0 : index
      %13 = vector.load %arg7[%c0_11, %c0_12] : memref<16x128xf32, #tpu.memory_space<vmem>>, vector<16x128xf32>
      tpu.vector_store %arg7[%c0_11, %c0_12], %12 {strides = array<i32>} : memref<16x128xf32, #tpu.memory_space<vmem>>, vector<16x128xf32>,
    } else {
    }
    %c0 = arith.constant 0 : index
    %c0_1 = arith.constant 0 : index
    %3 = vector.load %arg7[%c0, %c0_1] : memref<16x128xf32, #tpu.memory_space<vmem>>, vector<16x128xf32>
    %c0_2 = arith.constant 0 : index
    %c0_3 = arith.constant 0 : index
    %4 = vector.load %arg2[%c0_2, %c0_3] : memref<16x256xbf16, #tpu.memory_space<vmem>>, vector<16x256xbf16>
    %c0_4 = arith.constant 0 : index
    %c0_5 = arith.constant 0 : index
    %5 = vector.load %arg3[%c0_4, %c0_5] : memref<256x128xbf16, #tpu.memory_space<vmem>>, vector<256x128xbf16>
    %cst = arith.constant dense<0.000000e+00> : vector<16x128xf32>
    %6 = tpu.matmul %4, %5, %cst {dimension_numbers = #tpu.dot_dimension_numbers<[1], [0], [0], [1], [0, 0, 1, 1], [], []>} : vector<16x256xbf16>, vector<256x128xbf16>, vector<16x128xf32> -> vector<16x128xf32>
    %7 = arith.addf %3, %6 : vector<16x128xf32>
    %c0_6 = arith.constant 0 : index
    %c0_7 = arith.constant 0 : index
    %8 = vector.load %arg7[%c0_6, %c0_7] : memref<16x128xf32, #tpu.memory_space<vmem>>, vector<16x128xf32>
    tpu.vector_store %arg7[%c0_6, %c0_7], %7 {strides = array<i32>} : memref<16x128xf32, #tpu.memory_space<vmem>>, vector<16x128xf32>,
    %c0_i32_8 = arith.constant 0 : i32
    %9 = arith.cmpi eq, %arg1, %c0_i32_8 : i32
    %10 = arith.extui %9 : i1 to i32
    %c0_i32_9 = arith.constant 0 : i32
    %11 = arith.cmpi ne, %10, %c0_i32_9 : i32
    scf.if %11 {
      %c0_10 = arith.constant 0 : index
      %c0_11 = arith.constant 0 : index
      %12 = vector.load %arg7[%c0_10, %c0_11] : memref<16x128xf32, #tpu.memory_space<vmem>>, vector<16x128xf32>
      %c0_12 = arith.constant 0 : index
      %c0_13 = arith.constant 0 : index
      %13 = vector.load %arg4[%c0_12, %c0_13] : memref<1x128xf32, #tpu.memory_space<vmem>>, vector<1x128xf32>
      %14 = vector.broadcast %13 : vector<1x128xf32> to vector<16x128xf32>
      %15 = arith.addf %12, %14 : vector<16x128xf32>
      %c0_14 = arith.constant 0 : index
      %c0_15 = arith.constant 0 : index
      %16 = vector.load %arg5[%c0_14, %c0_15] : memref<16x128xbf16, #tpu.memory_space<vmem>>, vector<16x128xbf16>
      %17 = arith.extf %16 : vector<16x128xbf16> to vector<16x128xf32>
      %18 = arith.addf %15, %17 : vector<16x128xf32>
      %cst_16 = arith.constant 0.000000e+00 : f32
      %19 = vector.broadcast %cst_16 : f32 to vector<16x128xf32>
      %20 = arith.maximumf %18, %19 : vector<16x128xf32>
      %21 = arith.truncf %20 : vector<16x128xf32> to vector<16x128xbf16>
      %c0_17 = arith.constant 0 : index
      %c0_18 = arith.constant 0 : index
      %22 = vector.load %arg6[%c0_17, %c0_18] : memref<16x128xbf16, #tpu.memory_space<vmem>>, vector<16x128xbf16>
      tpu.vector_store %arg6[%c0_17, %c0_18], %21 {strides = array<i32>} : memref<16x128xbf16, #tpu.memory_space<vmem>>, vector<16x128xbf16>,
    } else {
    }
    return
  }
  func.func @transform_0(%arg0: i32, %arg1: i32) -> (i32, i32) {
    %c0_i32 = arith.constant 0 : i32
    return %arg0, %arg1 : i32, i32
  }
  func.func @transform_1(%arg0: i32, %arg1: i32) -> (i32, i32) {
    %c0_i32 = arith.constant 0 : i32
    %c0_i32_0 = arith.constant 0 : i32
    return %arg1, %c0_i32 : i32, i32
  }
  func.func @transform_2(%arg0: i32, %arg1: i32) -> (i32, i32) {
    %c0_i32 = arith.constant 0 : i32
    %c0_i32_0 = arith.constant 0 : i32
    %c0_i32_1 = arith.constant 0 : i32
    return %c0_i32, %c0_i32_0 : i32, i32
  }
  func.func @transform_3(%arg0: i32, %arg1: i32) -> (i32, i32) {
    %c0_i32 = arith.constant 0 : i32
    %c0_i32_0 = arith.constant 0 : i32
    return %arg0, %c0_i32 : i32, i32
  }
  func.func @transform_4(%arg0: i32, %arg1: i32) -> (i32, i32) {
    %c0_i32 = arith.constant 0 : i32
    %c0_i32_0 = arith.constant 0 : i32
    return %arg0, %c0_i32 : i32, i32
  }
}

module attributes {stable_mosaic.version = 11 : i64} {
  func.func @gemm_bias_kernel(%arg0: i32, %arg1: i32, %arg2: memref<16x256xbf16, #tpu.memory_space<vmem>>, %arg3: memref<256x256xbf16, #tpu.memory_space<vmem>>, %arg4: memref<1x256xf32, #tpu.memory_space<vmem>>, %arg5: memref<16x256xbf16, #tpu.memory_space<vmem>>, %arg6: memref<16x256xf32, #tpu.memory_space<vmem>>) attributes {dimension_semantics = [#tpu.dimension_semantics<parallel>, #tpu.dimension_semantics<arbitrary>], iteration_bounds = array<i64: 1, 1>, scalar_prefetch = 0 : i64, scratch_operands = 1 : i64, tpu.core_type = #tpu.core_type<tc>, window_params = [{transform_indices = @transform_0, window_bounds = array<i64: 16, 256>}, {transform_indices = @transform_1, window_bounds = array<i64: 256, 256>}, {pipeline_mode = #tpu.pipeline_mode<synchronous>, transform_indices = @transform_2, window_bounds = array<i64: 1, 256>}, {transform_indices = @transform_3, window_bounds = array<i64: 16, 256>}]} {
    %c0_i32 = arith.constant 0 : i32
    %0 = arith.cmpi eq, %arg1, %c0_i32 : i32
    %1 = arith.extui %0 : i1 to i32
    %c0_i32_0 = arith.constant 0 : i32
    %2 = arith.cmpi ne, %1, %c0_i32_0 : i32
    scf.if %2 {
      %cst_10 = arith.constant 0.000000e+00 : f32
      %12 = vector.broadcast %cst_10 : f32 to vector<16x256xf32>
      %c0_11 = arith.constant 0 : index
      %c0_12 = arith.constant 0 : index
      %13 = vector.load %arg6[%c0_11, %c0_12] : memref<16x256xf32, #tpu.memory_space<vmem>>, vector<16x256xf32>
      tpu.vector_store %arg6[%c0_11, %c0_12], %12 {strides = array<i32>} : memref<16x256xf32, #tpu.memory_space<vmem>>, vector<16x256xf32>,
    } else {
    }
    %c0 = arith.constant 0 : index
    %c0_1 = arith.constant 0 : index
    %3 = vector.load %arg6[%c0, %c0_1] : memref<16x256xf32, #tpu.memory_space<vmem>>, vector<16x256xf32>
    %c0_2 = arith.constant 0 : index
    %c0_3 = arith.constant 0 : index
    %4 = vector.load %arg2[%c0_2, %c0_3] : memref<16x256xbf16, #tpu.memory_space<vmem>>, vector<16x256xbf16>
    %c0_4 = arith.constant 0 : index
    %c0_5 = arith.constant 0 : index
    %5 = vector.load %arg3[%c0_4, %c0_5] : memref<256x256xbf16, #tpu.memory_space<vmem>>, vector<256x256xbf16>
    %cst = arith.constant dense<0.000000e+00> : vector<16x256xf32>
    %6 = tpu.matmul %4, %5, %cst {dimension_numbers = #tpu.dot_dimension_numbers<[1], [0], [0], [1], [0, 0, 1, 1], [], []>} : vector<16x256xbf16>, vector<256x256xbf16>, vector<16x256xf32> -> vector<16x256xf32>
    %7 = arith.addf %3, %6 : vector<16x256xf32>
    %c0_6 = arith.constant 0 : index
    %c0_7 = arith.constant 0 : index
    %8 = vector.load %arg6[%c0_6, %c0_7] : memref<16x256xf32, #tpu.memory_space<vmem>>, vector<16x256xf32>
    tpu.vector_store %arg6[%c0_6, %c0_7], %7 {strides = array<i32>} : memref<16x256xf32, #tpu.memory_space<vmem>>, vector<16x256xf32>,
    %c0_i32_8 = arith.constant 0 : i32
    %9 = arith.cmpi eq, %arg1, %c0_i32_8 : i32
    %10 = arith.extui %9 : i1 to i32
    %c0_i32_9 = arith.constant 0 : i32
    %11 = arith.cmpi ne, %10, %c0_i32_9 : i32
    scf.if %11 {
      %c0_10 = arith.constant 0 : index
      %c0_11 = arith.constant 0 : index
      %12 = vector.load %arg6[%c0_10, %c0_11] : memref<16x256xf32, #tpu.memory_space<vmem>>, vector<16x256xf32>
      %c0_12 = arith.constant 0 : index
      %c0_13 = arith.constant 0 : index
      %13 = vector.load %arg4[%c0_12, %c0_13] : memref<1x256xf32, #tpu.memory_space<vmem>>, vector<1x256xf32>
      %14 = vector.broadcast %13 : vector<1x256xf32> to vector<16x256xf32>
      %15 = arith.addf %12, %14 : vector<16x256xf32>
      %16 = tpu.iota {dimensions = array<i32: 1>} : vector<16x256xi32>
      %c128_i32 = arith.constant 128 : i32
      %17 = vector.broadcast %c128_i32 : i32 to vector<16x256xi32>
      %18 = arith.cmpi slt, %16, %17 : vector<16x256xi32>
      %cst_14 = arith.constant 0.000000e+00 : f32
      %19 = vector.broadcast %cst_14 : f32 to vector<16x256xf32>
      %20 = arith.maximumf %15, %19 : vector<16x256xf32>
      %21 = arith.select %18, %20, %15 : vector<16x256xi1>, vector<16x256xf32>
      %22 = arith.truncf %21 : vector<16x256xf32> to vector<16x256xbf16>
      %c0_15 = arith.constant 0 : index
      %c0_16 = arith.constant 0 : index
      %23 = vector.load %arg5[%c0_15, %c0_16] : memref<16x256xbf16, #tpu.memory_space<vmem>>, vector<16x256xbf16>
      tpu.vector_store %arg5[%c0_15, %c0_16], %22 {strides = array<i32>} : memref<16x256xbf16, #tpu.memory_space<vmem>>, vector<16x256xbf16>,
    } else {
    }
    return
  }
  func.func @transform_0(%arg0: i32, %arg1: i32) -> (i32, i32) {
    %c0_i32 = arith.constant 0 : i32
    return %arg0, %arg1 : i32, i32
  }
  func.func @transform_1(%arg0: i32, %arg1: i32) -> (i32, i32) {
    %c0_i32 = arith.constant 0 : i32
    %c0_i32_0 = arith.constant 0 : i32
    return %arg1, %c0_i32 : i32, i32
  }
  func.func @transform_2(%arg0: i32, %arg1: i32) -> (i32, i32) {
    %c0_i32 = arith.constant 0 : i32
    %c0_i32_0 = arith.constant 0 : i32
    %c0_i32_1 = arith.constant 0 : i32
    return %c0_i32, %c0_i32_0 : i32, i32
  }
  func.func @transform_3(%arg0: i32, %arg1: i32) -> (i32, i32) {
    %c0_i32 = arith.constant 0 : i32
    %c0_i32_0 = arith.constant 0 : i32
    return %arg0, %c0_i32 : i32, i32
  }
}

module attributes {stable_mosaic.version = 11 : i64} {
  func.func @gemm_bias_res_kernel(%arg0: i32, %arg1: i32, %arg2: memref<16x384xbf16, #tpu.memory_space<vmem>>, %arg3: memref<384x128xbf16, #tpu.memory_space<vmem>>, %arg4: memref<1x128xf32, #tpu.memory_space<vmem>>, %arg5: memref<16x128xbf16, #tpu.memory_space<vmem>>, %arg6: memref<16x128xbf16, #tpu.memory_space<vmem>>, %arg7: memref<16x128xf32, #tpu.memory_space<vmem>>) attributes {dimension_semantics = [#tpu.dimension_semantics<parallel>, #tpu.dimension_semantics<arbitrary>], iteration_bounds = array<i64: 1, 1>, scalar_prefetch = 0 : i64, scratch_operands = 1 : i64, tpu.core_type = #tpu.core_type<tc>, window_params = [{transform_indices = @transform_0, window_bounds = array<i64: 16, 384>}, {transform_indices = @transform_1, window_bounds = array<i64: 384, 128>}, {pipeline_mode = #tpu.pipeline_mode<synchronous>, transform_indices = @transform_2, window_bounds = array<i64: 1, 128>}, {transform_indices = @transform_3, window_bounds = array<i64: 16, 128>}, {transform_indices = @transform_4, window_bounds = array<i64: 16, 128>}]} {
    %c0_i32 = arith.constant 0 : i32
    %0 = arith.cmpi eq, %arg1, %c0_i32 : i32
    %1 = arith.extui %0 : i1 to i32
    %c0_i32_0 = arith.constant 0 : i32
    %2 = arith.cmpi ne, %1, %c0_i32_0 : i32
    scf.if %2 {
      %cst_10 = arith.constant 0.000000e+00 : f32
      %12 = vector.broadcast %cst_10 : f32 to vector<16x128xf32>
      %c0_11 = arith.constant 0 : index
      %c0_12 = arith.constant 0 : index
      %13 = vector.load %arg7[%c0_11, %c0_12] : memref<16x128xf32, #tpu.memory_space<vmem>>, vector<16x128xf32>
      tpu.vector_store %arg7[%c0_11, %c0_12], %12 {strides = array<i32>} : memref<16x128xf32, #tpu.memory_space<vmem>>, vector<16x128xf32>,
    } else {
    }
    %c0 = arith.constant 0 : index
    %c0_1 = arith.constant 0 : index
    %3 = vector.load %arg7[%c0, %c0_1] : memref<16x128xf32, #tpu.memory_space<vmem>>, vector<16x128xf32>
    %c0_2 = arith.constant 0 : index
    %c0_3 = arith.constant 0 : index
    %4 = vector.load %arg2[%c0_2, %c0_3] : memref<16x384xbf16, #tpu.memory_space<vmem>>, vector<16x384xbf16>
    %c0_4 = arith.constant 0 : index
    %c0_5 = arith.constant 0 : index
    %5 = vector.load %arg3[%c0_4, %c0_5] : memref<384x128xbf16, #tpu.memory_space<vmem>>, vector<384x128xbf16>
    %cst = arith.constant dense<0.000000e+00> : vector<16x128xf32>
    %6 = tpu.matmul %4, %5, %cst {dimension_numbers = #tpu.dot_dimension_numbers<[1], [0], [0], [1], [0, 0, 1, 1], [], []>} : vector<16x384xbf16>, vector<384x128xbf16>, vector<16x128xf32> -> vector<16x128xf32>
    %7 = arith.addf %3, %6 : vector<16x128xf32>
    %c0_6 = arith.constant 0 : index
    %c0_7 = arith.constant 0 : index
    %8 = vector.load %arg7[%c0_6, %c0_7] : memref<16x128xf32, #tpu.memory_space<vmem>>, vector<16x128xf32>
    tpu.vector_store %arg7[%c0_6, %c0_7], %7 {strides = array<i32>} : memref<16x128xf32, #tpu.memory_space<vmem>>, vector<16x128xf32>,
    %c0_i32_8 = arith.constant 0 : i32
    %9 = arith.cmpi eq, %arg1, %c0_i32_8 : i32
    %10 = arith.extui %9 : i1 to i32
    %c0_i32_9 = arith.constant 0 : i32
    %11 = arith.cmpi ne, %10, %c0_i32_9 : i32
    scf.if %11 {
      %c0_10 = arith.constant 0 : index
      %c0_11 = arith.constant 0 : index
      %12 = vector.load %arg7[%c0_10, %c0_11] : memref<16x128xf32, #tpu.memory_space<vmem>>, vector<16x128xf32>
      %c0_12 = arith.constant 0 : index
      %c0_13 = arith.constant 0 : index
      %13 = vector.load %arg4[%c0_12, %c0_13] : memref<1x128xf32, #tpu.memory_space<vmem>>, vector<1x128xf32>
      %14 = vector.broadcast %13 : vector<1x128xf32> to vector<16x128xf32>
      %15 = arith.addf %12, %14 : vector<16x128xf32>
      %c0_14 = arith.constant 0 : index
      %c0_15 = arith.constant 0 : index
      %16 = vector.load %arg5[%c0_14, %c0_15] : memref<16x128xbf16, #tpu.memory_space<vmem>>, vector<16x128xbf16>
      %17 = arith.extf %16 : vector<16x128xbf16> to vector<16x128xf32>
      %18 = arith.addf %15, %17 : vector<16x128xf32>
      %cst_16 = arith.constant 0.000000e+00 : f32
      %19 = vector.broadcast %cst_16 : f32 to vector<16x128xf32>
      %20 = arith.maximumf %18, %19 : vector<16x128xf32>
      %21 = arith.truncf %20 : vector<16x128xf32> to vector<16x128xbf16>
      %c0_17 = arith.constant 0 : index
      %c0_18 = arith.constant 0 : index
      %22 = vector.load %arg6[%c0_17, %c0_18] : memref<16x128xbf16, #tpu.memory_space<vmem>>, vector<16x128xbf16>
      tpu.vector_store %arg6[%c0_17, %c0_18], %21 {strides = array<i32>} : memref<16x128xbf16, #tpu.memory_space<vmem>>, vector<16x128xbf16>,
    } else {
    }
    return
  }
  func.func @transform_0(%arg0: i32, %arg1: i32) -> (i32, i32) {
    %c0_i32 = arith.constant 0 : i32
    return %arg0, %arg1 : i32, i32
  }
  func.func @transform_1(%arg0: i32, %arg1: i32) -> (i32, i32) {
    %c0_i32 = arith.constant 0 : i32
    %c0_i32_0 = arith.constant 0 : i32
    return %arg1, %c0_i32 : i32, i32
  }
  func.func @transform_2(%arg0: i32, %arg1: i32) -> (i32, i32) {
    %c0_i32 = arith.constant 0 : i32
    %c0_i32_0 = arith.constant 0 : i32
    %c0_i32_1 = arith.constant 0 : i32
    return %c0_i32, %c0_i32_0 : i32, i32
  }
  func.func @transform_3(%arg0: i32, %arg1: i32) -> (i32, i32) {
    %c0_i32 = arith.constant 0 : i32
    %c0_i32_0 = arith.constant 0 : i32
    return %arg0, %c0_i32 : i32, i32
  }
  func.func @transform_4(%arg0: i32, %arg1: i32) -> (i32, i32) {
    %c0_i32 = arith.constant 0 : i32
    %c0_i32_0 = arith.constant 0 : i32
    return %arg0, %c0_i32 : i32, i32
  }
}

module attributes {stable_mosaic.version = 11 : i64} {
  func.func @gemm_bias_kernel(%arg0: i32, %arg1: i32, %arg2: memref<16x384xbf16, #tpu.memory_space<vmem>>, %arg3: memref<384x128xbf16, #tpu.memory_space<vmem>>, %arg4: memref<1x128xf32, #tpu.memory_space<vmem>>, %arg5: memref<16x128xbf16, #tpu.memory_space<vmem>>, %arg6: memref<16x128xf32, #tpu.memory_space<vmem>>) attributes {dimension_semantics = [#tpu.dimension_semantics<parallel>, #tpu.dimension_semantics<arbitrary>], iteration_bounds = array<i64: 1, 1>, scalar_prefetch = 0 : i64, scratch_operands = 1 : i64, tpu.core_type = #tpu.core_type<tc>, window_params = [{transform_indices = @transform_0, window_bounds = array<i64: 16, 384>}, {transform_indices = @transform_1, window_bounds = array<i64: 384, 128>}, {pipeline_mode = #tpu.pipeline_mode<synchronous>, transform_indices = @transform_2, window_bounds = array<i64: 1, 128>}, {transform_indices = @transform_3, window_bounds = array<i64: 16, 128>}]} {
    %c0_i32 = arith.constant 0 : i32
    %0 = arith.cmpi eq, %arg1, %c0_i32 : i32
    %1 = arith.extui %0 : i1 to i32
    %c0_i32_0 = arith.constant 0 : i32
    %2 = arith.cmpi ne, %1, %c0_i32_0 : i32
    scf.if %2 {
      %cst_10 = arith.constant 0.000000e+00 : f32
      %12 = vector.broadcast %cst_10 : f32 to vector<16x128xf32>
      %c0_11 = arith.constant 0 : index
      %c0_12 = arith.constant 0 : index
      %13 = vector.load %arg6[%c0_11, %c0_12] : memref<16x128xf32, #tpu.memory_space<vmem>>, vector<16x128xf32>
      tpu.vector_store %arg6[%c0_11, %c0_12], %12 {strides = array<i32>} : memref<16x128xf32, #tpu.memory_space<vmem>>, vector<16x128xf32>,
    } else {
    }
    %c0 = arith.constant 0 : index
    %c0_1 = arith.constant 0 : index
    %3 = vector.load %arg6[%c0, %c0_1] : memref<16x128xf32, #tpu.memory_space<vmem>>, vector<16x128xf32>
    %c0_2 = arith.constant 0 : index
    %c0_3 = arith.constant 0 : index
    %4 = vector.load %arg2[%c0_2, %c0_3] : memref<16x384xbf16, #tpu.memory_space<vmem>>, vector<16x384xbf16>
    %c0_4 = arith.constant 0 : index
    %c0_5 = arith.constant 0 : index
    %5 = vector.load %arg3[%c0_4, %c0_5] : memref<384x128xbf16, #tpu.memory_space<vmem>>, vector<384x128xbf16>
    %cst = arith.constant dense<0.000000e+00> : vector<16x128xf32>
    %6 = tpu.matmul %4, %5, %cst {dimension_numbers = #tpu.dot_dimension_numbers<[1], [0], [0], [1], [0, 0, 1, 1], [], []>} : vector<16x384xbf16>, vector<384x128xbf16>, vector<16x128xf32> -> vector<16x128xf32>
    %7 = arith.addf %3, %6 : vector<16x128xf32>
    %c0_6 = arith.constant 0 : index
    %c0_7 = arith.constant 0 : index
    %8 = vector.load %arg6[%c0_6, %c0_7] : memref<16x128xf32, #tpu.memory_space<vmem>>, vector<16x128xf32>
    tpu.vector_store %arg6[%c0_6, %c0_7], %7 {strides = array<i32>} : memref<16x128xf32, #tpu.memory_space<vmem>>, vector<16x128xf32>,
    %c0_i32_8 = arith.constant 0 : i32
    %9 = arith.cmpi eq, %arg1, %c0_i32_8 : i32
    %10 = arith.extui %9 : i1 to i32
    %c0_i32_9 = arith.constant 0 : i32
    %11 = arith.cmpi ne, %10, %c0_i32_9 : i32
    scf.if %11 {
      %c0_10 = arith.constant 0 : index
      %c0_11 = arith.constant 0 : index
      %12 = vector.load %arg6[%c0_10, %c0_11] : memref<16x128xf32, #tpu.memory_space<vmem>>, vector<16x128xf32>
      %c0_12 = arith.constant 0 : index
      %c0_13 = arith.constant 0 : index
      %13 = vector.load %arg4[%c0_12, %c0_13] : memref<1x128xf32, #tpu.memory_space<vmem>>, vector<1x128xf32>
      %14 = vector.broadcast %13 : vector<1x128xf32> to vector<16x128xf32>
      %15 = arith.addf %12, %14 : vector<16x128xf32>
      %cst_14 = arith.constant 0.000000e+00 : f32
      %16 = vector.broadcast %cst_14 : f32 to vector<16x128xf32>
      %17 = arith.maximumf %15, %16 : vector<16x128xf32>
      %18 = arith.truncf %17 : vector<16x128xf32> to vector<16x128xbf16>
      %c0_15 = arith.constant 0 : index
      %c0_16 = arith.constant 0 : index
      %19 = vector.load %arg5[%c0_15, %c0_16] : memref<16x128xbf16, #tpu.memory_space<vmem>>, vector<16x128xbf16>
      tpu.vector_store %arg5[%c0_15, %c0_16], %18 {strides = array<i32>} : memref<16x128xbf16, #tpu.memory_space<vmem>>, vector<16x128xbf16>,
    } else {
    }
    return
  }
  func.func @transform_0(%arg0: i32, %arg1: i32) -> (i32, i32) {
    %c0_i32 = arith.constant 0 : i32
    return %arg0, %arg1 : i32, i32
  }
  func.func @transform_1(%arg0: i32, %arg1: i32) -> (i32, i32) {
    %c0_i32 = arith.constant 0 : i32
    %c0_i32_0 = arith.constant 0 : i32
    return %arg1, %c0_i32 : i32, i32
  }
  func.func @transform_2(%arg0: i32, %arg1: i32) -> (i32, i32) {
    %c0_i32 = arith.constant 0 : i32
    %c0_i32_0 = arith.constant 0 : i32
    %c0_i32_1 = arith.constant 0 : i32
    return %c0_i32, %c0_i32_0 : i32, i32
  }
  func.func @transform_3(%arg0: i32, %arg1: i32) -> (i32, i32) {
    %c0_i32 = arith.constant 0 : i32
    %c0_i32_0 = arith.constant 0 : i32
    return %arg0, %c0_i32 : i32, i32
  }
}

module attributes {stable_mosaic.version = 11 : i64} {
  func.func @gemm_bias_kernel(%arg0: i32, %arg1: i32, %arg2: memref<16x384xbf16, #tpu.memory_space<vmem>>, %arg3: memref<384x256xbf16, #tpu.memory_space<vmem>>, %arg4: memref<1x256xf32, #tpu.memory_space<vmem>>, %arg5: memref<16x256xbf16, #tpu.memory_space<vmem>>, %arg6: memref<16x256xf32, #tpu.memory_space<vmem>>) attributes {dimension_semantics = [#tpu.dimension_semantics<parallel>, #tpu.dimension_semantics<arbitrary>], iteration_bounds = array<i64: 1, 1>, scalar_prefetch = 0 : i64, scratch_operands = 1 : i64, tpu.core_type = #tpu.core_type<tc>, window_params = [{transform_indices = @transform_0, window_bounds = array<i64: 16, 384>}, {transform_indices = @transform_1, window_bounds = array<i64: 384, 256>}, {pipeline_mode = #tpu.pipeline_mode<synchronous>, transform_indices = @transform_2, window_bounds = array<i64: 1, 256>}, {transform_indices = @transform_3, window_bounds = array<i64: 16, 256>}]} {
    %c0_i32 = arith.constant 0 : i32
    %0 = arith.cmpi eq, %arg1, %c0_i32 : i32
    %1 = arith.extui %0 : i1 to i32
    %c0_i32_0 = arith.constant 0 : i32
    %2 = arith.cmpi ne, %1, %c0_i32_0 : i32
    scf.if %2 {
      %cst_10 = arith.constant 0.000000e+00 : f32
      %12 = vector.broadcast %cst_10 : f32 to vector<16x256xf32>
      %c0_11 = arith.constant 0 : index
      %c0_12 = arith.constant 0 : index
      %13 = vector.load %arg6[%c0_11, %c0_12] : memref<16x256xf32, #tpu.memory_space<vmem>>, vector<16x256xf32>
      tpu.vector_store %arg6[%c0_11, %c0_12], %12 {strides = array<i32>} : memref<16x256xf32, #tpu.memory_space<vmem>>, vector<16x256xf32>,
    } else {
    }
    %c0 = arith.constant 0 : index
    %c0_1 = arith.constant 0 : index
    %3 = vector.load %arg6[%c0, %c0_1] : memref<16x256xf32, #tpu.memory_space<vmem>>, vector<16x256xf32>
    %c0_2 = arith.constant 0 : index
    %c0_3 = arith.constant 0 : index
    %4 = vector.load %arg2[%c0_2, %c0_3] : memref<16x384xbf16, #tpu.memory_space<vmem>>, vector<16x384xbf16>
    %c0_4 = arith.constant 0 : index
    %c0_5 = arith.constant 0 : index
    %5 = vector.load %arg3[%c0_4, %c0_5] : memref<384x256xbf16, #tpu.memory_space<vmem>>, vector<384x256xbf16>
    %cst = arith.constant dense<0.000000e+00> : vector<16x256xf32>
    %6 = tpu.matmul %4, %5, %cst {dimension_numbers = #tpu.dot_dimension_numbers<[1], [0], [0], [1], [0, 0, 1, 1], [], []>} : vector<16x384xbf16>, vector<384x256xbf16>, vector<16x256xf32> -> vector<16x256xf32>
    %7 = arith.addf %3, %6 : vector<16x256xf32>
    %c0_6 = arith.constant 0 : index
    %c0_7 = arith.constant 0 : index
    %8 = vector.load %arg6[%c0_6, %c0_7] : memref<16x256xf32, #tpu.memory_space<vmem>>, vector<16x256xf32>
    tpu.vector_store %arg6[%c0_6, %c0_7], %7 {strides = array<i32>} : memref<16x256xf32, #tpu.memory_space<vmem>>, vector<16x256xf32>,
    %c0_i32_8 = arith.constant 0 : i32
    %9 = arith.cmpi eq, %arg1, %c0_i32_8 : i32
    %10 = arith.extui %9 : i1 to i32
    %c0_i32_9 = arith.constant 0 : i32
    %11 = arith.cmpi ne, %10, %c0_i32_9 : i32
    scf.if %11 {
      %c0_10 = arith.constant 0 : index
      %c0_11 = arith.constant 0 : index
      %12 = vector.load %arg6[%c0_10, %c0_11] : memref<16x256xf32, #tpu.memory_space<vmem>>, vector<16x256xf32>
      %c0_12 = arith.constant 0 : index
      %c0_13 = arith.constant 0 : index
      %13 = vector.load %arg4[%c0_12, %c0_13] : memref<1x256xf32, #tpu.memory_space<vmem>>, vector<1x256xf32>
      %14 = vector.broadcast %13 : vector<1x256xf32> to vector<16x256xf32>
      %15 = arith.addf %12, %14 : vector<16x256xf32>
      %16 = tpu.iota {dimensions = array<i32: 1>} : vector<16x256xi32>
      %c128_i32 = arith.constant 128 : i32
      %17 = vector.broadcast %c128_i32 : i32 to vector<16x256xi32>
      %18 = arith.cmpi slt, %16, %17 : vector<16x256xi32>
      %cst_14 = arith.constant 0.000000e+00 : f32
      %19 = vector.broadcast %cst_14 : f32 to vector<16x256xf32>
      %20 = arith.maximumf %15, %19 : vector<16x256xf32>
      %21 = arith.select %18, %20, %15 : vector<16x256xi1>, vector<16x256xf32>
      %22 = arith.truncf %21 : vector<16x256xf32> to vector<16x256xbf16>
      %c0_15 = arith.constant 0 : index
      %c0_16 = arith.constant 0 : index
      %23 = vector.load %arg5[%c0_15, %c0_16] : memref<16x256xbf16, #tpu.memory_space<vmem>>, vector<16x256xbf16>
      tpu.vector_store %arg5[%c0_15, %c0_16], %22 {strides = array<i32>} : memref<16x256xbf16, #tpu.memory_space<vmem>>, vector<16x256xbf16>,
    } else {
    }
    return
  }
  func.func @transform_0(%arg0: i32, %arg1: i32) -> (i32, i32) {
    %c0_i32 = arith.constant 0 : i32
    return %arg0, %arg1 : i32, i32
  }
  func.func @transform_1(%arg0: i32, %arg1: i32) -> (i32, i32) {
    %c0_i32 = arith.constant 0 : i32
    %c0_i32_0 = arith.constant 0 : i32
    return %arg1, %c0_i32 : i32, i32
  }
  func.func @transform_2(%arg0: i32, %arg1: i32) -> (i32, i32) {
    %c0_i32 = arith.constant 0 : i32
    %c0_i32_0 = arith.constant 0 : i32
    %c0_i32_1 = arith.constant 0 : i32
    return %c0_i32, %c0_i32_0 : i32, i32
  }
  func.func @transform_3(%arg0: i32, %arg1: i32) -> (i32, i32) {
    %c0_i32 = arith.constant 0 : i32
    %c0_i32_0 = arith.constant 0 : i32
    return %arg0, %c0_i32 : i32, i32
  }
}

module attributes {stable_mosaic.version = 11 : i64} {
  func.func @gemm_bias_res_kernel(%arg0: i32, %arg1: i32, %arg2: memref<16x640xbf16, #tpu.memory_space<vmem>>, %arg3: memref<640x128xbf16, #tpu.memory_space<vmem>>, %arg4: memref<1x128xf32, #tpu.memory_space<vmem>>, %arg5: memref<16x128xbf16, #tpu.memory_space<vmem>>, %arg6: memref<16x128xbf16, #tpu.memory_space<vmem>>, %arg7: memref<16x128xf32, #tpu.memory_space<vmem>>) attributes {dimension_semantics = [#tpu.dimension_semantics<parallel>, #tpu.dimension_semantics<arbitrary>], iteration_bounds = array<i64: 1, 1>, scalar_prefetch = 0 : i64, scratch_operands = 1 : i64, tpu.core_type = #tpu.core_type<tc>, window_params = [{transform_indices = @transform_0, window_bounds = array<i64: 16, 640>}, {transform_indices = @transform_1, window_bounds = array<i64: 640, 128>}, {pipeline_mode = #tpu.pipeline_mode<synchronous>, transform_indices = @transform_2, window_bounds = array<i64: 1, 128>}, {transform_indices = @transform_3, window_bounds = array<i64: 16, 128>}, {transform_indices = @transform_4, window_bounds = array<i64: 16, 128>}]} {
    %c0_i32 = arith.constant 0 : i32
    %0 = arith.cmpi eq, %arg1, %c0_i32 : i32
    %1 = arith.extui %0 : i1 to i32
    %c0_i32_0 = arith.constant 0 : i32
    %2 = arith.cmpi ne, %1, %c0_i32_0 : i32
    scf.if %2 {
      %cst_10 = arith.constant 0.000000e+00 : f32
      %12 = vector.broadcast %cst_10 : f32 to vector<16x128xf32>
      %c0_11 = arith.constant 0 : index
      %c0_12 = arith.constant 0 : index
      %13 = vector.load %arg7[%c0_11, %c0_12] : memref<16x128xf32, #tpu.memory_space<vmem>>, vector<16x128xf32>
      tpu.vector_store %arg7[%c0_11, %c0_12], %12 {strides = array<i32>} : memref<16x128xf32, #tpu.memory_space<vmem>>, vector<16x128xf32>,
    } else {
    }
    %c0 = arith.constant 0 : index
    %c0_1 = arith.constant 0 : index
    %3 = vector.load %arg7[%c0, %c0_1] : memref<16x128xf32, #tpu.memory_space<vmem>>, vector<16x128xf32>
    %c0_2 = arith.constant 0 : index
    %c0_3 = arith.constant 0 : index
    %4 = vector.load %arg2[%c0_2, %c0_3] : memref<16x640xbf16, #tpu.memory_space<vmem>>, vector<16x640xbf16>
    %c0_4 = arith.constant 0 : index
    %c0_5 = arith.constant 0 : index
    %5 = vector.load %arg3[%c0_4, %c0_5] : memref<640x128xbf16, #tpu.memory_space<vmem>>, vector<640x128xbf16>
    %cst = arith.constant dense<0.000000e+00> : vector<16x128xf32>
    %6 = tpu.matmul %4, %5, %cst {dimension_numbers = #tpu.dot_dimension_numbers<[1], [0], [0], [1], [0, 0, 1, 1], [], []>} : vector<16x640xbf16>, vector<640x128xbf16>, vector<16x128xf32> -> vector<16x128xf32>
    %7 = arith.addf %3, %6 : vector<16x128xf32>
    %c0_6 = arith.constant 0 : index
    %c0_7 = arith.constant 0 : index
    %8 = vector.load %arg7[%c0_6, %c0_7] : memref<16x128xf32, #tpu.memory_space<vmem>>, vector<16x128xf32>
    tpu.vector_store %arg7[%c0_6, %c0_7], %7 {strides = array<i32>} : memref<16x128xf32, #tpu.memory_space<vmem>>, vector<16x128xf32>,
    %c0_i32_8 = arith.constant 0 : i32
    %9 = arith.cmpi eq, %arg1, %c0_i32_8 : i32
    %10 = arith.extui %9 : i1 to i32
    %c0_i32_9 = arith.constant 0 : i32
    %11 = arith.cmpi ne, %10, %c0_i32_9 : i32
    scf.if %11 {
      %c0_10 = arith.constant 0 : index
      %c0_11 = arith.constant 0 : index
      %12 = vector.load %arg7[%c0_10, %c0_11] : memref<16x128xf32, #tpu.memory_space<vmem>>, vector<16x128xf32>
      %c0_12 = arith.constant 0 : index
      %c0_13 = arith.constant 0 : index
      %13 = vector.load %arg4[%c0_12, %c0_13] : memref<1x128xf32, #tpu.memory_space<vmem>>, vector<1x128xf32>
      %14 = vector.broadcast %13 : vector<1x128xf32> to vector<16x128xf32>
      %15 = arith.addf %12, %14 : vector<16x128xf32>
      %c0_14 = arith.constant 0 : index
      %c0_15 = arith.constant 0 : index
      %16 = vector.load %arg5[%c0_14, %c0_15] : memref<16x128xbf16, #tpu.memory_space<vmem>>, vector<16x128xbf16>
      %17 = arith.extf %16 : vector<16x128xbf16> to vector<16x128xf32>
      %18 = arith.addf %15, %17 : vector<16x128xf32>
      %cst_16 = arith.constant 0.000000e+00 : f32
      %19 = vector.broadcast %cst_16 : f32 to vector<16x128xf32>
      %20 = arith.maximumf %18, %19 : vector<16x128xf32>
      %21 = arith.truncf %20 : vector<16x128xf32> to vector<16x128xbf16>
      %c0_17 = arith.constant 0 : index
      %c0_18 = arith.constant 0 : index
      %22 = vector.load %arg6[%c0_17, %c0_18] : memref<16x128xbf16, #tpu.memory_space<vmem>>, vector<16x128xbf16>
      tpu.vector_store %arg6[%c0_17, %c0_18], %21 {strides = array<i32>} : memref<16x128xbf16, #tpu.memory_space<vmem>>, vector<16x128xbf16>,
    } else {
    }
    return
  }
  func.func @transform_0(%arg0: i32, %arg1: i32) -> (i32, i32) {
    %c0_i32 = arith.constant 0 : i32
    return %arg0, %arg1 : i32, i32
  }
  func.func @transform_1(%arg0: i32, %arg1: i32) -> (i32, i32) {
    %c0_i32 = arith.constant 0 : i32
    %c0_i32_0 = arith.constant 0 : i32
    return %arg1, %c0_i32 : i32, i32
  }
  func.func @transform_2(%arg0: i32, %arg1: i32) -> (i32, i32) {
    %c0_i32 = arith.constant 0 : i32
    %c0_i32_0 = arith.constant 0 : i32
    %c0_i32_1 = arith.constant 0 : i32
    return %c0_i32, %c0_i32_0 : i32, i32
  }
  func.func @transform_3(%arg0: i32, %arg1: i32) -> (i32, i32) {
    %c0_i32 = arith.constant 0 : i32
    %c0_i32_0 = arith.constant 0 : i32
    return %arg0, %c0_i32 : i32, i32
  }
  func.func @transform_4(%arg0: i32, %arg1: i32) -> (i32, i32) {
    %c0_i32 = arith.constant 0 : i32
    %c0_i32_0 = arith.constant 0 : i32
    return %arg0, %c0_i32 : i32, i32
  }
}

module attributes {stable_mosaic.version = 11 : i64} {
  func.func @head_kernel(%arg0: memref<2x1x128xbf16, #tpu.memory_space<vmem>>, %arg1: memref<128x128xf32, #tpu.memory_space<vmem>>, %arg2: memref<1x128xf32, #tpu.memory_space<vmem>>, %arg3: memref<2x128xf32, #tpu.memory_space<vmem>>) attributes {dimension_semantics = [], scalar_prefetch = 0 : i64, scratch_operands = 0 : i64, tpu.core_type = #tpu.core_type<tc>} {
    %c0 = arith.constant 0 : index
    %c0_0 = arith.constant 0 : index
    %c0_1 = arith.constant 0 : index
    %0 = vector.load %arg0[%c0, %c0_0, %c0_1] : memref<2x1x128xbf16, #tpu.memory_space<vmem>>, vector<2x1x128xbf16>
    %1 = arith.extf %0 : vector<2x1x128xbf16> to vector<2x1x128xf32>
    %cst = arith.constant dense<0.000000e+00> : vector<2x128xf32>
    %2 = vector.multi_reduction <add>, %1, %cst [1] : vector<2x1x128xf32> to vector<2x128xf32>
    %cst_2 = arith.constant 1.000000e+00 : f32
    %3 = vector.broadcast %cst_2 : f32 to vector<2x128xf32>
    %4 = arith.divf %2, %3 : vector<2x128xf32>
    %c0_3 = arith.constant 0 : index
    %c0_4 = arith.constant 0 : index
    %5 = vector.load %arg1[%c0_3, %c0_4] : memref<128x128xf32, #tpu.memory_space<vmem>>, vector<128x128xf32>
    %cst_5 = arith.constant dense<0.000000e+00> : vector<2x128xf32>
    %6 = tpu.matmul %4, %5, %cst_5 {dimension_numbers = #tpu.dot_dimension_numbers<[1], [0], [0], [1], [0, 0, 1, 1], [], []>} : vector<2x128xf32>, vector<128x128xf32>, vector<2x128xf32> -> vector<2x128xf32>
    %c0_6 = arith.constant 0 : index
    %c0_7 = arith.constant 0 : index
    %7 = vector.load %arg2[%c0_6, %c0_7] : memref<1x128xf32, #tpu.memory_space<vmem>>, vector<1x128xf32>
    %8 = vector.broadcast %7 : vector<1x128xf32> to vector<2x128xf32>
    %9 = arith.addf %6, %8 : vector<2x128xf32>
    %c0_8 = arith.constant 0 : index
    %c0_9 = arith.constant 0 : index
    %10 = vector.load %arg3[%c0_8, %c0_9] : memref<2x128xf32, #tpu.memory_space<vmem>>, vector<2x128xf32>
    tpu.vector_store %arg3[%c0_8, %c0_9], %9 {strides = array<i32>} : memref<2x128xf32, #tpu.memory_space<vmem>>, vector<2x128xf32>,
    return
  }
}

module attributes {stable_mosaic.version = 11 : i64} {
  func.func @gemm_bias_kernel(%arg0: i32, %arg1: i32, %arg2: memref<16x640xbf16, #tpu.memory_space<vmem>>, %arg3: memref<640x128xbf16, #tpu.memory_space<vmem>>, %arg4: memref<1x128xf32, #tpu.memory_space<vmem>>, %arg5: memref<16x128xbf16, #tpu.memory_space<vmem>>, %arg6: memref<16x128xf32, #tpu.memory_space<vmem>>) attributes {dimension_semantics = [#tpu.dimension_semantics<parallel>, #tpu.dimension_semantics<arbitrary>], iteration_bounds = array<i64: 1, 1>, scalar_prefetch = 0 : i64, scratch_operands = 1 : i64, tpu.core_type = #tpu.core_type<tc>, window_params = [{transform_indices = @transform_0, window_bounds = array<i64: 16, 640>}, {transform_indices = @transform_1, window_bounds = array<i64: 640, 128>}, {pipeline_mode = #tpu.pipeline_mode<synchronous>, transform_indices = @transform_2, window_bounds = array<i64: 1, 128>}, {transform_indices = @transform_3, window_bounds = array<i64: 16, 128>}]} {
    %c0_i32 = arith.constant 0 : i32
    %0 = arith.cmpi eq, %arg1, %c0_i32 : i32
    %1 = arith.extui %0 : i1 to i32
    %c0_i32_0 = arith.constant 0 : i32
    %2 = arith.cmpi ne, %1, %c0_i32_0 : i32
    scf.if %2 {
      %cst_10 = arith.constant 0.000000e+00 : f32
      %12 = vector.broadcast %cst_10 : f32 to vector<16x128xf32>
      %c0_11 = arith.constant 0 : index
      %c0_12 = arith.constant 0 : index
      %13 = vector.load %arg6[%c0_11, %c0_12] : memref<16x128xf32, #tpu.memory_space<vmem>>, vector<16x128xf32>
      tpu.vector_store %arg6[%c0_11, %c0_12], %12 {strides = array<i32>} : memref<16x128xf32, #tpu.memory_space<vmem>>, vector<16x128xf32>,
    } else {
    }
    %c0 = arith.constant 0 : index
    %c0_1 = arith.constant 0 : index
    %3 = vector.load %arg6[%c0, %c0_1] : memref<16x128xf32, #tpu.memory_space<vmem>>, vector<16x128xf32>
    %c0_2 = arith.constant 0 : index
    %c0_3 = arith.constant 0 : index
    %4 = vector.load %arg2[%c0_2, %c0_3] : memref<16x640xbf16, #tpu.memory_space<vmem>>, vector<16x640xbf16>
    %c0_4 = arith.constant 0 : index
    %c0_5 = arith.constant 0 : index
    %5 = vector.load %arg3[%c0_4, %c0_5] : memref<640x128xbf16, #tpu.memory_space<vmem>>, vector<640x128xbf16>
    %cst = arith.constant dense<0.000000e+00> : vector<16x128xf32>
    %6 = tpu.matmul %4, %5, %cst {dimension_numbers = #tpu.dot_dimension_numbers<[1], [0], [0], [1], [0, 0, 1, 1], [], []>} : vector<16x640xbf16>, vector<640x128xbf16>, vector<16x128xf32> -> vector<16x128xf32>
    %7 = arith.addf %3, %6 : vector<16x128xf32>
    %c0_6 = arith.constant 0 : index
    %c0_7 = arith.constant 0 : index
    %8 = vector.load %arg6[%c0_6, %c0_7] : memref<16x128xf32, #tpu.memory_space<vmem>>, vector<16x128xf32>
    tpu.vector_store %arg6[%c0_6, %c0_7], %7 {strides = array<i32>} : memref<16x128xf32, #tpu.memory_space<vmem>>, vector<16x128xf32>,
    %c0_i32_8 = arith.constant 0 : i32
    %9 = arith.cmpi eq, %arg1, %c0_i32_8 : i32
    %10 = arith.extui %9 : i1 to i32
    %c0_i32_9 = arith.constant 0 : i32
    %11 = arith.cmpi ne, %10, %c0_i32_9 : i32
    scf.if %11 {
      %c0_10 = arith.constant 0 : index
      %c0_11 = arith.constant 0 : index
      %12 = vector.load %arg6[%c0_10, %c0_11] : memref<16x128xf32, #tpu.memory_space<vmem>>, vector<16x128xf32>
      %c0_12 = arith.constant 0 : index
      %c0_13 = arith.constant 0 : index
      %13 = vector.load %arg4[%c0_12, %c0_13] : memref<1x128xf32, #tpu.memory_space<vmem>>, vector<1x128xf32>
      %14 = vector.broadcast %13 : vector<1x128xf32> to vector<16x128xf32>
      %15 = arith.addf %12, %14 : vector<16x128xf32>
      %cst_14 = arith.constant 0.000000e+00 : f32
      %16 = vector.broadcast %cst_14 : f32 to vector<16x128xf32>
      %17 = arith.maximumf %15, %16 : vector<16x128xf32>
      %18 = arith.truncf %17 : vector<16x128xf32> to vector<16x128xbf16>
      %c0_15 = arith.constant 0 : index
      %c0_16 = arith.constant 0 : index
      %19 = vector.load %arg5[%c0_15, %c0_16] : memref<16x128xbf16, #tpu.memory_space<vmem>>, vector<16x128xbf16>
      tpu.vector_store %arg5[%c0_15, %c0_16], %18 {strides = array<i32>} : memref<16x128xbf16, #tpu.memory_space<vmem>>, vector<16x128xbf16>,
    } else {
    }
    return
  }
  func.func @transform_0(%arg0: i32, %arg1: i32) -> (i32, i32) {
    %c0_i32 = arith.constant 0 : i32
    return %arg0, %arg1 : i32, i32
  }
  func.func @transform_1(%arg0: i32, %arg1: i32) -> (i32, i32) {
    %c0_i32 = arith.constant 0 : i32
    %c0_i32_0 = arith.constant 0 : i32
    return %arg1, %c0_i32 : i32, i32
  }
  func.func @transform_2(%arg0: i32, %arg1: i32) -> (i32, i32) {
    %c0_i32 = arith.constant 0 : i32
    %c0_i32_0 = arith.constant 0 : i32
    %c0_i32_1 = arith.constant 0 : i32
    return %c0_i32, %c0_i32_0 : i32, i32
  }
  func.func @transform_3(%arg0: i32, %arg1: i32) -> (i32, i32) {
    %c0_i32 = arith.constant 0 : i32
    %c0_i32_0 = arith.constant 0 : i32
    return %arg0, %c0_i32 : i32, i32
  }
}

</mosaic_0001>

<bundles_post_ra>
// kernel: resnet_forward.20
= control target key start
LH: loop header
LB: loop body
LE: loop exit
PB: predicated region body
PF: predicated region fallthrough
CT: control target
= control target key end

     0   :  { %s969_s6 = smov 0   ;;  %s971_s7 = smov 0   ;;  %s1253_s0 = inlined_call_operand.vmem [shape: bf16[9,128,128], index: 0, kind: input, shape index: {}]   ;;  %s1254_s1 = inlined_call_operand.vmem [shape: bf16[128,128], index: 1, kind: output, shape index: {}]  }
   0x1   :  { %s973_s8 = smov 0  }
   0x2 LB: > { %s870_s9 = sadd.s32 4294967295, %s957_s8   ;;  %s986_s10 = sadd.s32 1, %s957_s8   ;;  %s957_s8 = sphi %s973_s8, %s1257_s8   ;;  %s953_s7 = sphi %s971_s7, %s1256_s7   ;;  %s949_s6 = sphi %s969_s6, %s1255_s6  }
   0x3   : > { %s15_s11 = ssub.s32 %s957_s8, %s986_s10  ;;  %s18_s12 = sadd.s32 1, %s953_s7 }
   0x4   : > { %p16_p0 = scmp.eq.s32.totalorder %s15_s11, 0  ;;  %p25_p1 = scmp.ne.s32.totalorder %s953_s7, %s949_s6 }
   0x5   : > { %p26_p2 = scmp.eq.s32.totalorder %s957_s8, 0  ;;  %p873_p4 = scmp.ge.s32.totalorder %s957_s8, 2 }
   0x6   : > { %s995_s13 = scalar_select %p16_p0, %s953_s7, %s18_s12  }
   0x7   : > { %p27_p3 = por %p26_p2, %p25_p1  ;;  %77 = sbr.rel (%p873_p4) target bundleno = 37 (0x25), region = 16 }
   0xe   : > { %80 = sbr.rel (!%p27_p3) target bundleno = 37 (0x25), region = 20  ;;  %s82_s14 = sand.u32 (%p27_p3), 1, %s953_s7  }
   0xf   : > { %s881_s15 = sshll.u32 (%p27_p3), %s957_s8, 5  ;;  %s909_s16 = smul.u32 (%p27_p3), 288, %s82_s14 }
  0x10   : > { %s1003_s19 = scalar_lea.vmem (%p27_p3), %s1253_s0, %s881_s15 }
  0x11   : > { %v103_v0 = vld [vmem:[%s1003_s19] sm:$0xff] (%p27_p3)   ;;  %v107_v1 = vld [vmem:[%s1003_s19 + $0x8] sm:$0xff] (%p27_p3)   ;;  %v111_v2 = vld [vmem:[%s1003_s19 + $0x10] sm:$0xff] (%p27_p3)   ;;  %s1011_s20 = scalar_lea.vmem (%p27_p3), [#allocation2], %s909_s16 }
  0x12   : > { %v115_v3 = vld [vmem:[%s1003_s19 + $0x18] sm:$0xff] (%p27_p3)   ;;  %v119_v4 = vld [vmem:[%s1003_s19 + $0x40] sm:$0xff] (%p27_p3)   ;;  %v123_v5 = vld [vmem:[%s1003_s19 + $0x48] sm:$0xff] (%p27_p3)   ;;  %104 = vst [vmem:[%s1011_s20] sm:$0xff] (%p27_p3), %v103_v0  }
  0x13   : > { %108 = vst [vmem:[%s1011_s20 + $0x8] sm:$0xff] (%p27_p3), %v107_v1   ;;  %112 = vst [vmem:[%s1011_s20 + $0x10] sm:$0xff] (%p27_p3), %v111_v2   ;;  %v127_v6 = vld [vmem:[%s1003_s19 + $0x50] sm:$0xff] (%p27_p3)   ;;  %v131_v7 = vld [vmem:[%s1003_s19 + $0x58] sm:$0xff] (%p27_p3)  }
  0x14   : > { %116 = vst [vmem:[%s1011_s20 + $0x18] sm:$0xff] (%p27_p3), %v115_v3   ;;  %120 = vst [vmem:[%s1011_s20 + $0x20] sm:$0xff] (%p27_p3), %v119_v4   ;;  %v135_v8 = vld [vmem:[%s1003_s19 + $0x80] sm:$0xff] (%p27_p3)   ;;  %v139_v9 = vld [vmem:[%s1003_s19 + $0x88] sm:$0xff] (%p27_p3)  }
  0x15   : > { %124 = vst [vmem:[%s1011_s20 + $0x28] sm:$0xff] %v123_v5   ;;  %128 = vst [vmem:[%s1011_s20 + $0x30] sm:$0xff] %v127_v6   ;;  %v143_v10 = vld [vmem:[%s1003_s19 + $0x90] sm:$0xff]   ;;  %v147_v11 = vld [vmem:[%s1003_s19 + $0x98] sm:$0xff]  }
  0x16   : > { %132 = vst [vmem:[%s1011_s20 + $0x38] sm:$0xff] %v131_v7   ;;  %136 = vst [vmem:[%s1011_s20 + $0x40] sm:$0xff] %v135_v8   ;;  %v151_v12 = vld [vmem:[%s1003_s19 + $0xc0] sm:$0xff]   ;;  %v155_v13 = vld [vmem:[%s1003_s19 + $0xc8] sm:$0xff]  }
  0x17   : > { %140 = vst [vmem:[%s1011_s20 + $0x48] sm:$0xff] %v139_v9   ;;  %144 = vst [vmem:[%s1011_s20 + $0x50] sm:$0xff] %v143_v10   ;;  %v159_v14 = vld [vmem:[%s1003_s19 + $0xd0] sm:$0xff]   ;;  %v163_v15 = vld [vmem:[%s1003_s19 + $0xd8] sm:$0xff]  }
  0x18   : > { %148 = vst [vmem:[%s1011_s20 + $0x58] sm:$0xff] %v147_v11   ;;  %152 = vst [vmem:[%s1011_s20 + $0x60] sm:$0xff] %v151_v12   ;;  %v167_v16 = vld [vmem:[%s1003_s19 + $0x100] sm:$0xff]   ;;  %v171_v17 = vld [vmem:[%s1003_s19 + $0x108] sm:$0xff]  }
  0x19   : > { %156 = vst [vmem:[%s1011_s20 + $0x68] sm:$0xff] %v155_v13   ;;  %160 = vst [vmem:[%s1011_s20 + $0x70] sm:$0xff] %v159_v14   ;;  %v175_v18 = vld [vmem:[%s1003_s19 + $0x110] sm:$0xff]   ;;  %v179_v19 = vld [vmem:[%s1003_s19 + $0x118] sm:$0xff]  }
  0x1a   : > { %164 = vst [vmem:[%s1011_s20 + $0x78] sm:$0xff] %v163_v15   ;;  %168 = vst [vmem:[%s1011_s20 + $0x80] sm:$0xff] %v167_v16   ;;  %v183_v20 = vld [vmem:[%s1003_s19 + $0x140] sm:$0xff]   ;;  %v187_v21 = vld [vmem:[%s1003_s19 + $0x148] sm:$0xff]  }
  0x1b   : > { %172 = vst [vmem:[%s1011_s20 + $0x88] sm:$0xff] %v171_v17   ;;  %176 = vst [vmem:[%s1011_s20 + $0x90] sm:$0xff] %v175_v18   ;;  %v191_v22 = vld [vmem:[%s1003_s19 + $0x150] sm:$0xff]   ;;  %v195_v23 = vld [vmem:[%s1003_s19 + $0x158] sm:$0xff]  }
  0x1c   : > { %180 = vst [vmem:[%s1011_s20 + $0x98] sm:$0xff] %v179_v19   ;;  %184 = vst [vmem:[%s1011_s20 + $0xa0] sm:$0xff] %v183_v20   ;;  %v199_v24 = vld [vmem:[%s1003_s19 + $0x180] sm:$0xff]   ;;  %v203_v25 = vld [vmem:[%s1003_s19 + $0x188] sm:$0xff]  }
  0x1d   : > { %188 = vst [vmem:[%s1011_s20 + $0xa8] sm:$0xff] %v187_v21   ;;  %192 = vst [vmem:[%s1011_s20 + $0xb0] sm:$0xff] %v191_v22   ;;  %v207_v26 = vld [vmem:[%s1003_s19 + $0x190] sm:$0xff]   ;;  %v211_v27 = vld [vmem:[%s1003_s19 + $0x198] sm:$0xff]  }
  0x1e   : > { %196 = vst [vmem:[%s1011_s20 + $0xb8] sm:$0xff] %v195_v23   ;;  %200 = vst [vmem:[%s1011_s20 + $0xc0] sm:$0xff] %v199_v24   ;;  %v215_v28 = vld [vmem:[%s1003_s19 + $0x1c0] sm:$0xff]   ;;  %v219_v29 = vld [vmem:[%s1003_s19 + $0x1c8] sm:$0xff]  }
  0x1f   : > { %204 = vst [vmem:[%s1011_s20 + $0xc8] sm:$0xff] %v203_v25   ;;  %208 = vst [vmem:[%s1011_s20 + $0xd0] sm:$0xff] %v207_v26   ;;  %v223_v30 = vld [vmem:[%s1003_s19 + $0x1d0] sm:$0xff]   ;;  %v227_v31 = vld [vmem:[%s1003_s19 + $0x1d8] sm:$0xff]  }
  0x20   : > { %212 = vst [vmem:[%s1011_s20 + $0xd8] sm:$0xff] %v211_v27   ;;  %216 = vst [vmem:[%s1011_s20 + $0xe0] sm:$0xff] %v215_v28   ;;  %v231_v32 = vld [vmem:[%s1003_s19 + $0x200] sm:$0xff]   ;;  %v235_v33 = vld [vmem:[%s1003_s19 + $0x208] sm:$0xff]  }
  0x21   : > { %220 = vst [vmem:[%s1011_s20 + $0xe8] sm:$0xff] %v219_v29   ;;  %224 = vst [vmem:[%s1011_s20 + $0xf0] sm:$0xff] %v223_v30   ;;  %v239_v34 = vld [vmem:[%s1003_s19 + $0x210] sm:$0xff]   ;;  %v243_v35 = vld [vmem:[%s1003_s19 + $0x218] sm:$0xff]  }
  0x22   : > { %228 = vst [vmem:[%s1011_s20 + $0xf8] sm:$0xff] %v227_v31   ;;  %232 = vst [vmem:[%s1011_s20 + $0x100] sm:$0xff] %v231_v32  }
  0x23   : > { %236 = vst [vmem:[%s1011_s20 + $0x108] sm:$0xff] %v235_v33   ;;  %240 = vst [vmem:[%s1011_s20 + $0x110] sm:$0xff] %v239_v34  }
  0x24   : > { %244 = vst [vmem:[%s1011_s20 + $0x118] sm:$0xff] %v243_v35  }
  0x25 PF: > { %p876_p5 = scmp.ge.s32.totalorder %s957_s8, 1  ;;  %p412_p6 = scmp.lt.s32.totalorder %s957_s8, 3 }
  0x27   : > { %p413_p7 = pnand %p876_p5, %p412_p6 }
  0x28   : > { %s419_s21 = sand.u32 (!%p413_p7), 1, %s949_s6   ;;  %vm518_vm0 = vcmask (!%p413_p7), 1043456   ;;  %s877_s24 = sshll.u32 (!%p413_p7), %s870_s9, 3 }
  0x29   : > { %416 = sbr.rel (%p413_p7) target bundleno = 107 (0x6b), region = 61  ;;  %p440_p8 = scmp.lt.s32.totalorder (!%p413_p7), %s877_s24, 15 }
  0x2a   : > { %s910_s22 = smul.u32 (!%p413_p7), 288, %s419_s21 }
  0x2c   : > { %s1082_s23 = scalar_lea.vmem (!%p413_p7), [#allocation2], %s910_s22 }
  0x2d   : > { %v446_v36 = vld [vmem:[%s1082_s23] sm:$0xf] (!%p413_p7)  ;;  %v447_v39 = vld [vmem:[%s1082_s23 + $0x4] sm:$0xf] (!%p413_p7)  ;;  %v448_v10 = vld [vmem:[%s1082_s23 + $0x8] sm:$0xf] (!%p413_p7) }
  0x2e   : > { %v454_v37 = vld [vmem:[%s1082_s23 + $0x20] sm:$0xf] (!%p413_p7)  ;;  %v455_v40 = vld [vmem:[%s1082_s23 + $0x24] sm:$0xf] (!%p413_p7)  ;;  %v521_v42 = vsel (!%p413_p7), %vm518_vm0, %v446_v36, 4286644096 }
  0x2f   : > { %v462_v38 = vld [vmem:[%s1082_s23 + $0x40] sm:$0xf] (!%p413_p7)  ;;  %v463_v43 = vld [vmem:[%s1082_s23 + $0x44] sm:$0xf] (!%p413_p7)  ;;  %v524_v44 = vsel (!%p413_p7), %vm518_vm0, %v454_v37, 4286644096 }
  0x30   : > { %v470_v41 = vld [vmem:[%s1082_s23 + $0x60] sm:$0xf]  ;;  %v528_v45 = vsel %vm518_vm0, %v462_v38, 4286644096  ;;  %v526_v47 = vmax.bf16 %v524_v44, %v521_v42  ;;  %v471_v48 = vld [vmem:[%s1082_s23 + $0x64] sm:$0xf] }
  0x31   : > { %v478_v46 = vld [vmem:[%s1082_s23 + $0x80] sm:$0xf]  ;;  %v532_v49 = vsel %vm518_vm0, %v470_v41, 4286644096  ;;  %v556_v50 = vsel %vm518_vm0, %v447_v39, 4286644096 }
  0x32   : > { %v486_v51 = vld [vmem:[%s1082_s23 + $0xa0] sm:$0xf]  ;;  %v530_v52 = vmax.bf16 %v528_v45, %v526_v47  ;;  %v559_v53 = vsel %vm518_vm0, %v455_v40, 4286644096  ;;  %v563_v54 = vsel %vm518_vm0, %v463_v43, 4286644096 }
  0x33   : > { %v479_v55 = vld [vmem:[%s1082_s23 + $0x84] sm:$0xf]  ;;  %v536_v56 = vsel %vm518_vm0, %v478_v46, 4286644096  ;;  %v561_v57 = vmax.bf16 %v559_v53, %v556_v50  ;;  %v494_v58 = vld [vmem:[%s1082_s23 + $0xc0] sm:$0xf] }
  0x34   : > { %v502_v59 = vld [vmem:[%s1082_s23 + $0xe0] sm:$0xf]  ;;  %v534_v60 = vmax.bf16 %v532_v49, %v530_v52  ;;  %v567_v61 = vsel %vm518_vm0, %v471_v48, 4286644096  ;;  %s1259_s24 = smov (!%p440_p8, %s877_s24), 15 }
  0x35   : > { %v487_v62 = vld [vmem:[%s1082_s23 + $0xa4] sm:$0xf]  ;;  %v540_v63 = vsel %vm518_vm0, %v486_v51, 4286644096  ;;  %v565_v0 = vmax.bf16 %v563_v54, %v561_v57  ;;  %v510_v2 = vld [vmem:[%s1082_s23 + $0x100] sm:$0xf] }
  0x36   : > { %v495_v1 = vld [vmem:[%s1082_s23 + $0xc4] sm:$0xf]  ;;  %v538_v3 = vmax.bf16 %v536_v56, %v534_v60  ;;  %v571_v4 = vsel %vm518_vm0, %v479_v55, 4286644096  ;;  %v544_v7 = vsel %vm518_vm0, %v494_v58, 4286644096 }
  0x37   : > { %v503_v5 = vld [vmem:[%s1082_s23 + $0xe4] sm:$0xf]  ;;  %v548_v8 = vsel %vm518_vm0, %v502_v59, 4286644096  ;;  %v569_v9 = vmax.bf16 %v567_v61, %v565_v0  ;;  %v575_v12 = vsel %vm518_vm0, %v487_v62, 4286644096 }
  0x38   : > { %v511_v6 = vld [vmem:[%s1082_s23 + $0x104] sm:$0xf]  ;;  %v542_v11 = vmax.bf16 %v540_v63, %v538_v3  ;;  %v456_v13 = vld [vmem:[%s1082_s23 + $0x28] sm:$0xf]  ;;  %v552_v15 = vsel %vm518_vm0, %v510_v2, 4286644096 }
  0x39   : > { %v464_v14 = vld [vmem:[%s1082_s23 + $0x48] sm:$0xf]  ;;  %v573_v16 = vmax.bf16 %v571_v4, %v569_v9  ;;  %v579_v17 = vsel %vm518_vm0, %v495_v1, 4286644096  ;;  %v449_v18 = vld [vmem:[%s1082_s23 + $0xc] sm:$0xf] }
  0x3a   : > { %v546_v19 = vmax.bf16 %v544_v7, %v542_v11  ;;  %v457_v20 = vld [vmem:[%s1082_s23 + $0x2c] sm:$0xf]  ;;  %v472_v21 = vld [vmem:[%s1082_s23 + $0x68] sm:$0xf]  ;;  %v591_v22 = vsel %vm518_vm0, %v448_v10, 4286644096 }
  0x3b   : > { %v577_v23 = vmax.bf16 %v575_v12, %v573_v16  ;;  %v480_v24 = vld [vmem:[%s1082_s23 + $0x88] sm:$0xf]  ;;  %v594_v25 = vsel %vm518_vm0, %v456_v13, 4286644096  ;;  %v598_v26 = vsel %vm518_vm0, %v464_v14, 4286644096 }
  0x3c   : > { %v550_v27 = vmax.bf16 %v548_v8, %v546_v19  ;;  %v583_v28 = vsel %vm518_vm0, %v503_v5, 4286644096  ;;  %v587_v29 = vsel %vm518_vm0, %v511_v6, 4286644096  ;;  %v465_v30 = vld [vmem:[%s1082_s23 + $0x4c] sm:$0xf]  ;;  %v596_v31 = vmax.bf16 %v594_v25, %v591_v22 }
  0x3d   : > { %v581_v32 = vmax.bf16 %v579_v17, %v577_v23  ;;  %v473_v33 = vld [vmem:[%s1082_s23 + $0x6c] sm:$0xf]  ;;  %v488_v34 = vld [vmem:[%s1082_s23 + $0xa8] sm:$0xf]  ;;  %v602_v35 = vsel %vm518_vm0, %v472_v21, 4286644096 }
  0x3e   : > { %v600_v36 = vmax.bf16 %v598_v26, %v596_v31  ;;  %v606_v37 = vsel %vm518_vm0, %v480_v24, 4286644096  ;;  %v626_v38 = vsel %vm518_vm0, %v449_v18, 4286644096  ;;  %v629_v39 = vsel %vm518_vm0, %v457_v20, 4286644096 }
  0x3f   : > { %s878_s25 = sshll.u32 %s1259_s24, 2  ;;  %v554_v40 = vmax.bf16 %v552_v15, %v550_v27  ;;  %v585_v41 = vmax.bf16 %v583_v28, %v581_v32  ;;  %v481_v42 = vld [vmem:[%s1082_s23 + $0x8c] sm:$0xf]  ;;  %v631_v43 = vmax.bf16 %v629_v39, %v626_v38  ;;  %v633_v44 = vsel %vm518_vm0, %v465_v30, 4286644096 }
  0x40   : > { %v496_v45 = vld [vmem:[%s1082_s23 + $0xc8] sm:$0xf]  ;;  %v604_v47 = vmax.bf16 %v602_v35, %v600_v36  ;;  %v637_v48 = vsel %vm518_vm0, %v473_v33, 4286644096  ;;  %v489_v50 = vld [vmem:[%s1082_s23 + $0xac] sm:$0xf]  ;;  %s1153_s28 = scalar_lea.vmem %s1254_s1, %s878_s25 }
  0x41   : > { %v504_v46 = vld [vmem:[%s1082_s23 + $0xe8] sm:$0xf]  ;;  %v589_v49 = vmax.bf16 %v587_v29, %v585_v41  ;;  %v610_v51 = vsel %vm518_vm0, %v488_v34, 4286644096  ;;  %v635_v52 = vmax.bf16 %v633_v44, %v631_v43  ;;  %v497_v53 = vld [vmem:[%s1082_s23 + $0xcc] sm:$0xf] }
  0x42   : > { %v512_v54 = vld [vmem:[%s1082_s23 + $0x108] sm:$0xf]  ;;  %v608_v55 = vmax.bf16 %v606_v37, %v604_v47  ;;  %v641_v56 = vsel %vm518_vm0, %v481_v42, 4286644096  ;;  %v505_v58 = vld [vmem:[%s1082_s23 + $0xec] sm:$0xf] }
  0x43   : > { %v902_v57 = vcombine.low %v554_v40, %v589_v49  ;;  %v513_v59 = vld [vmem:[%s1082_s23 + $0x10c] sm:$0xf]  ;;  %v614_v60 = vsel %vm518_vm0, %v496_v45, 4286644096  ;;  %v618_v61 = vsel %vm518_vm0, %v504_v46, 4286644096  ;;  %v639_v62 = vmax.bf16 %v637_v48, %v635_v52 }
  0x44   : > { %v450_v63 = vld [vmem:[%s1082_s23 + $0x10] sm:$0xf]  ;;  %v612_v0 = vmax.bf16 %v610_v51, %v608_v55  ;;  %v645_v1 = vsel %vm518_vm0, %v489_v50, 4286644096  ;;  %v622_v4 = vsel %vm518_vm0, %v512_v54, 4286644096 }
  0x45   : > { %v458_v2 = vld [vmem:[%s1082_s23 + $0x30] sm:$0xf]  ;;  %886 = vst [vmem:[%s1153_s28] sm:$0xff] %v902_v57   ;;  %v643_v5 = vmax.bf16 %v641_v56, %v639_v62  ;;  %v649_v6 = vsel %vm518_vm0, %v497_v53, 4286644096  ;;  %v451_v7 = vld [vmem:[%s1082_s23 + $0x14] sm:$0xf] }
  0x46   : > { %v466_v3 = vld [vmem:[%s1082_s23 + $0x50] sm:$0xf]  ;;  %v616_v8 = vmax.bf16 %v614_v60, %v612_v0  ;;  %v459_v9 = vld [vmem:[%s1082_s23 + $0x34] sm:$0xf]  ;;  %v661_v11 = vsel %vm518_vm0, %v450_v63, 4286644096 }
  0x47   : > { %v474_v10 = vld [vmem:[%s1082_s23 + $0x70] sm:$0xf]  ;;  %v647_v12 = vmax.bf16 %v645_v1, %v643_v5  ;;  %v664_v14 = vsel %vm518_vm0, %v458_v2, 4286644096  ;;  %v668_v15 = vsel %vm518_vm0, %v466_v3, 4286644096 }
  0x48   : > { %v482_v13 = vld [vmem:[%s1082_s23 + $0x90] sm:$0xf]  ;;  %v620_v16 = vmax.bf16 %v618_v61, %v616_v8  ;;  %v653_v17 = vsel %vm518_vm0, %v505_v58, 4286644096  ;;  %v657_v18 = vsel %vm518_vm0, %v513_v59, 4286644096  ;;  %v666_v20 = vmax.bf16 %v664_v14, %v661_v11 }
  0x49   : > { %v467_v19 = vld [vmem:[%s1082_s23 + $0x54] sm:$0xf]  ;;  %v651_v21 = vmax.bf16 %v649_v6, %v647_v12  ;;  %v490_v23 = vld [vmem:[%s1082_s23 + $0xb0] sm:$0xf]  ;;  %v672_v24 = vsel %vm518_vm0, %v474_v10, 4286644096 }
  0x4a   : > { %v475_v22 = vld [vmem:[%s1082_s23 + $0x74] sm:$0xf]  ;;  %v670_v25 = vmax.bf16 %v668_v15, %v666_v20  ;;  %v676_v26 = vsel %vm518_vm0, %v482_v13, 4286644096  ;;  %v696_v27 = vsel %vm518_vm0, %v451_v7, 4286644096  ;;  %v624_v29 = vmax.bf16 %v622_v4, %v620_v16 }
  0x4b   : > { %v699_v28 = vsel %vm518_vm0, %v459_v9, 4286644096  ;;  %v655_v30 = vmax.bf16 %v653_v17, %v651_v21  ;;  %v483_v31 = vld [vmem:[%s1082_s23 + $0x94] sm:$0xf]  ;;  %v703_v33 = vsel %vm518_vm0, %v467_v19, 4286644096 }
  0x4c   : > { %v701_v32 = vmax.bf16 %v699_v28, %v696_v27  ;;  %v498_v34 = vld [vmem:[%s1082_s23 + $0xd0] sm:$0xf]  ;;  %v674_v36 = vmax.bf16 %v672_v24, %v670_v25  ;;  %v707_v37 = vsel %vm518_vm0, %v475_v22, 4286644096  ;;  %v491_v39 = vld [vmem:[%s1082_s23 + $0xb4] sm:$0xf] }
  0x4d   : > { %v506_v35 = vld [vmem:[%s1082_s23 + $0xf0] sm:$0xf]  ;;  %v659_v38 = vmax.bf16 %v657_v18, %v655_v30  ;;  %v680_v40 = vsel %vm518_vm0, %v490_v23, 4286644096  ;;  %v499_v42 = vld [vmem:[%s1082_s23 + $0xd4] sm:$0xf] }
  0x4e   : > { %v705_v41 = vmax.bf16 %v703_v33, %v701_v32  ;;  %v514_v43 = vld [vmem:[%s1082_s23 + $0x110] sm:$0xf]  ;;  %v678_v44 = vmax.bf16 %v676_v26, %v674_v36  ;;  %v711_v45 = vsel %vm518_vm0, %v483_v31, 4286644096  ;;  %v507_v47 = vld [vmem:[%s1082_s23 + $0xf4] sm:$0xf] }
  0x4f   : > { %v903_v46 = vcombine.low %v624_v29, %v659_v38  ;;  %v515_v48 = vld [vmem:[%s1082_s23 + $0x114] sm:$0xf]  ;;  %v684_v49 = vsel %vm518_vm0, %v498_v34, 4286644096  ;;  %v688_v50 = vsel %vm518_vm0, %v506_v35, 4286644096 }
  0x50   : > { %v709_v51 = vmax.bf16 %v707_v37, %v705_v41  ;;  %v452_v52 = vld [vmem:[%s1082_s23 + $0x18] sm:$0xf]  ;;  %v682_v53 = vmax.bf16 %v680_v40, %v678_v44  ;;  %v715_v54 = vsel %vm518_vm0, %v491_v39, 4286644096  ;;  %v692_v57 = vsel %vm518_vm0, %v514_v43, 4286644096 }
  0x51   : > { %v460_v55 = vld [vmem:[%s1082_s23 + $0x38] sm:$0xf]  ;;  %904 = vst [vmem:[%s1153_s28 + $0x8] sm:$0xff] %v903_v46   ;;  %v719_v59 = vsel %vm518_vm0, %v499_v42, 4286644096 }
  0x52   : > { %v468_v56 = vld [vmem:[%s1082_s23 + $0x58] sm:$0xf]  ;;  %v713_v58 = vmax.bf16 %v711_v45, %v709_v51  ;;  %v453_v60 = vld [vmem:[%s1082_s23 + $0x1c] sm:$0xf]  ;;  %v686_v61 = vmax.bf16 %v684_v49, %v682_v53  ;;  %v731_v0 = vsel %vm518_vm0, %v452_v52, 4286644096 }
  0x53   : > { %v461_v62 = vld [vmem:[%s1082_s23 + $0x3c] sm:$0xf]  ;;  %v476_v63 = vld [vmem:[%s1082_s23 + $0x78] sm:$0xf]  ;;  %v734_v3 = vsel %vm518_vm0, %v460_v55, 4286644096 }
  0x54   : > { %v717_v1 = vmax.bf16 %v715_v54, %v713_v58  ;;  %v484_v2 = vld [vmem:[%s1082_s23 + $0x98] sm:$0xf]  ;;  %v738_v4 = vsel %vm518_vm0, %v468_v56, 4286644096  ;;  %v690_v5 = vmax.bf16 %v688_v50, %v686_v61  ;;  %v723_v6 = vsel %vm518_vm0, %v507_v47, 4286644096 }
  0x55   : > { %v727_v7 = vsel %vm518_vm0, %v515_v48, 4286644096  ;;  %v469_v8 = vld [vmem:[%s1082_s23 + $0x5c] sm:$0xf]  ;;  %v736_v9 = vmax.bf16 %v734_v3, %v731_v0  ;;  %v492_v12 = vld [vmem:[%s1082_s23 + $0xb8] sm:$0xf] }
  0x56   : > { %v721_v10 = vmax.bf16 %v719_v59, %v717_v1  ;;  %v477_v11 = vld [vmem:[%s1082_s23 + $0x7c] sm:$0xf]  ;;  %v742_v13 = vsel %vm518_vm0, %v476_v63, 4286644096  ;;  %v746_v15 = vsel %vm518_vm0, %v484_v2, 4286644096  ;;  %v694_v18 = vmax.bf16 %v692_v57, %v690_v5 }
  0x57   : > { %v740_v14 = vmax.bf16 %v738_v4, %v736_v9  ;;  %v766_v16 = vsel %vm518_vm0, %v453_v60, 4286644096  ;;  %v769_v17 = vsel %vm518_vm0, %v461_v62, 4286644096  ;;  %v485_v20 = vld [vmem:[%s1082_s23 + $0x9c] sm:$0xf] }
  0x58   : > { %v725_v19 = vmax.bf16 %v723_v6, %v721_v10  ;;  %v771_v21 = vmax.bf16 %v769_v17, %v766_v16  ;;  %v773_v22 = vsel %vm518_vm0, %v469_v8, 4286644096  ;;  %v500_v23 = vld [vmem:[%s1082_s23 + $0xd8] sm:$0xf]  ;;  %v777_v25 = vsel %vm518_vm0, %v477_v11, 4286644096 }
  0x59   : > { %v744_v24 = vmax.bf16 %v742_v13, %v740_v14  ;;  %v493_v27 = vld [vmem:[%s1082_s23 + $0xbc] sm:$0xf]  ;;  %v750_v28 = vsel %vm518_vm0, %v492_v12, 4286644096  ;;  %v508_v30 = vld [vmem:[%s1082_s23 + $0xf8] sm:$0xf] }
  0x5a   : > { %v729_v26 = vmax.bf16 %v727_v7, %v725_v19  ;;  %v775_v29 = vmax.bf16 %v773_v22, %v771_v21  ;;  %v781_v32 = vsel %vm518_vm0, %v485_v20, 4286644096  ;;  %v501_v34 = vld [vmem:[%s1082_s23 + $0xdc] sm:$0xf]  ;;  %v754_v35 = vsel %vm518_vm0, %v500_v23, 4286644096 }
  0x5b   : > { %v748_v31 = vmax.bf16 %v746_v15, %v744_v24  ;;  %v785_v38 = vsel %vm518_vm0, %v493_v27, 4286644096  ;;  %v509_v39 = vld [vmem:[%s1082_s23 + $0xfc] sm:$0xf]  ;;  %v516_v40 = vld [vmem:[%s1082_s23 + $0x118] sm:$0xf] }
  0x5c   : > { %v905_v33 = vcombine.low %v694_v18, %v729_v26  ;;  %v779_v36 = vmax.bf16 %v777_v25, %v775_v29  ;;  %v758_v41 = vsel %vm518_vm0, %v508_v30, 4286644096  ;;  %v789_v44 = vsel %vm518_vm0, %v501_v34, 4286644096  ;;  %v517_v45 = vld [vmem:[%s1082_s23 + $0x11c] sm:$0xf] }
  0x5d   : > { %v752_v37 = vmax.bf16 %v750_v28, %v748_v31  ;;  %v762_v48 = vsel %vm518_vm0, %v516_v40, 4286644096  ;;  %v793_v49 = vsel %vm518_vm0, %v509_v39, 4286644096  ;;  %v797_v51 = vsel %vm518_vm0, %v517_v45, 4286644096 }
  0x5e   : > { %906 = vst [vmem:[%s1153_s28 + $0x10] sm:$0xff] %v905_v33   ;;  %v783_v42 = vmax.bf16 %v781_v32, %v779_v36 }
  0x5f   : > { %v756_v43 = vmax.bf16 %v754_v35, %v752_v37 }
  0x60   : > { %v787_v46 = vmax.bf16 %v785_v38, %v783_v42 }
  0x61   : > { %v760_v47 = vmax.bf16 %v758_v41, %v756_v43 }
  0x62   : > { %v791_v50 = vmax.bf16 %v789_v44, %v787_v46 }
  0x63   : > { %v764_v52 = vmax.bf16 %v762_v48, %v760_v47 }
  0x64   : > { %v795_v53 = vmax.bf16 %v793_v49, %v791_v50 }
  0x66   : > { %v799_v54 = vmax.bf16 %v797_v51, %v795_v53 }
  0x68   : > { %v907_v55 = vcombine.low %v764_v52, %v799_v54 }
  0x6a   : > { %908 = vst [vmem:[%s1153_s28 + $0x18] sm:$0xff] %v907_v55  }
  0x6b PF: > { %p8_p9 = scmp.ge.s32.totalorder %s986_s10, 4   ;;  %s1255_s6 = smov %s953_s7 }
  0x6c   : > { %s1256_s7 = smov %s995_s13  ;;  %s1257_s8 = smov %s986_s10 }
  0x6d   :  { %10 = sbr.rel (!%p8_p9) target bundleno = 2 (0x2), region = 100 }

// kernel: resnet_forward.19
= control target key start
LH: loop header
LB: loop body
LE: loop exit
PB: predicated region body
PF: predicated region fallthrough
CT: control target
= control target key end

     0   :  { %s1675_s12 = smov 0   ;;  %s1677_s13 = smov 0   ;;  %s1849_s0 = inlined_call_operand.vmem [shape: bf16[512,256], index: 0, kind: input, shape index: {}]   ;;  %s1850_s1 = inlined_call_operand.vmem [shape: bf16[256,128], index: 1, kind: input, shape index: {}]   ;;  %s1851_s2 = inlined_call_operand.vmem [shape: f32[1,128], index: 2, kind: input, shape index: {}]   ;;  %s1852_s3 = inlined_call_operand.vmem [shape: bf16[512,128], index: 3, kind: output, shape index: {}]  }
   0x1   :  { %s1679_s14 = smov 0  }
   0x2 LB: > { %s25_s15 = sadd.s32 1, %s1649_s13  ;;  %p1198_p0 = scmp.ge.s32.totalorder %s1653_s14, 1  ;;  %s1653_s14 = sphi %s1679_s14, %s13_s14   ;;  %s1649_s13 = sphi %s1677_s13, %s1854_s13   ;;  %s1645_s12 = sphi %s1675_s12, %s1853_s12  }
   0x3   : > { %p27_p1 = scmp.ge.s32.totalorder %s25_s15, 2  ;;  %p169_p2 = scmp.lt.s32.totalorder %s1653_s14, 3 }
   0x5   : > { %s1856_s15 = smov (%p27_p1, %s25_s15), 0  ;;  %p170_p3 = pnand %p1198_p0, %p169_p2 }
   0x6   : > { %v1567_v0 = vld [vmem:[%s1850_s1 + $0x40] sm:$0xff] (!%p170_p3)   ;;  %s1199_s18 = sshll.u32 (!%p170_p3), %s1645_s12, 5  ;;  %v1569_v2 = vld [vmem:[%s1850_s1 + $0x48] sm:$0xff] (!%p170_p3)   ;;  %v1571_v4 = vld [vmem:[%s1850_s1 + $0x50] sm:$0xff] (!%p170_p3)  }
   0x7   : > { %173 = sbr.rel (%p170_p3) target bundleno = 320 (0x140), region = 32  ;;  %v1568_v1 = vld [vmem:[%s1850_s1] sm:$0xff] (!%p170_p3)   ;;  %1415 = vmatprep.subr.bf16.mxu0 (!%p170_p3), %v1567_v0  ;;  %1527 = vmatprep.subr.bf16.mxu1 (!%p170_p3), %v1567_v0  ;;  %v1570_v3 = vld [vmem:[%s1850_s1 + $0x8] sm:$0xff] (!%p170_p3)   ;;  %p205_p4 = scmp.lt.s32.totalorder (!%p170_p3), %s1199_s18, 63  ;;  %v1572_v5 = vld [vmem:[%s1850_s1 + $0x10] sm:$0xff] (!%p170_p3)  }
   0x8   : > { %1416 = vmatpush3.bf16.msra.mxu0 (!%p170_p3), %v1568_v1  ;;  %1535 = vmatpush3.bf16.msra.mxu1 (!%p170_p3), %v1568_v1  ;;  %v1573_v6 = vld [vmem:[%s1850_s1 + $0x58] sm:$0xff] (!%p170_p3)   ;;  %v1575_v8 = vld [vmem:[%s1850_s1 + $0x60] sm:$0xff] (!%p170_p3)   ;;  %v1577_v10 = vld [vmem:[%s1850_s1 + $0x68] sm:$0xff] (!%p170_p3)  }
   0x9   : > { %1417 = vmatprep.subr.bf16.mxu0 (!%p170_p3), %v1569_v2  ;;  %1528 = vmatprep.subr.bf16.mxu1 (!%p170_p3), %v1569_v2  ;;  %v1574_v7 = vld [vmem:[%s1850_s1 + $0x18] sm:$0xff] (!%p170_p3)   ;;  %v1576_v9 = vld [vmem:[%s1850_s1 + $0x20] sm:$0xff] (!%p170_p3)   ;;  %v1578_v13 = vld [vmem:[%s1850_s1 + $0x28] sm:$0xff] (!%p170_p3)  }
   0xa   : > { %v1579_v14 = vld [vmem:[%s1850_s1 + $0x70] sm:$0xff] (!%p170_p3)   ;;  %v1581_v16 = vld [vmem:[%s1850_s1 + $0x78] sm:$0xff] (!%p170_p3)   ;;  %v1784_v51 = vld [vmem:[%s1851_s2] ss:$0 sm:$0xff] (!%p170_p3) }
   0xb   : > { %v1580_v15 = vld [vmem:[%s1850_s1 + $0x30] sm:$0xff] (!%p170_p3)   ;;  %v1582_v17 = vld [vmem:[%s1850_s1 + $0x38] sm:$0xff] (!%p170_p3)  }
   0xc   : > { %1418 = vmatpush3.bf16.msra.mxu0 (!%p170_p3), %v1570_v3  ;;  %1536 = vmatpush3.bf16.msra.mxu1 (!%p170_p3), %v1570_v3 }
   0xd   : > { %1419 = vmatprep.subr.bf16.mxu0 (!%p170_p3), %v1571_v4  ;;  %1529 = vmatprep.subr.bf16.mxu1 (!%p170_p3), %v1571_v4 }
   0xe   : > { %s1858_s18 = smov (!%p205_p4, %s1199_s18), 63 }
   0xf   : > { %s1287_s6 = sshll.u32 %s1858_s18, 3  ;;  %s1203_s5 = sshll.u32 %s1858_s18, 2 }
  0x10   : > { %1420 = vmatpush3.bf16.msra.mxu0 %v1572_v5  ;;  %1537 = vmatpush3.bf16.msra.mxu1 %v1572_v5  ;;  %s1726_s11 = scalar_lea.vmem %s1849_s0, %s1287_s6  ;;  %s1794_s8 = scalar_lea.vmem %s1852_s3, %s1203_s5 }
  0x11   : > { %1421 = vmatprep.subr.bf16.mxu0 %v1573_v6  ;;  %1530 = vmatprep.subr.bf16.mxu1 %v1573_v6  ;;  %v1585_v11 = vld [vmem:[%s1726_s11 + $0x4] ss:$8 sps:$4 sm:$0xff]   ;;  %v1583_v18 = vld [vmem:[%s1726_s11] ss:$8 sps:$4 sm:$0xff]   ;;  %v1589_v20 = vld [vmem:[%s1726_s11 + $0x14] ss:$8 sps:$4 sm:$0xff]  }
  0x12   : > { %v1588_v12 = vld [vmem:[%s1726_s11 + $0x84] ss:$8 sps:$4 sm:$0xff]   ;;  %648 = vmatprep.mubr.bf16.mxu0 %v1585_v11  ;;  %v1586_v19 = vld [vmem:[%s1726_s11 + $0x80] ss:$8 sps:$4 sm:$0xff]   ;;  %v1591_v21 = vld [vmem:[%s1726_s11 + $0x94] ss:$8 sps:$4 sm:$0xff]  }
  0x13   : > { %712 = vmatprep.mubr.bf16.mxu1 %v1588_v12  ;;  %v1593_v22 = vld [vmem:[%s1726_s11 + $0x10] ss:$8 sps:$4 sm:$0xff]   ;;  %v1595_v24 = vld [vmem:[%s1726_s11 + $0x24] ss:$8 sps:$4 sm:$0xff]   ;;  %v1599_v26 = vld [vmem:[%s1726_s11 + $0x20] ss:$8 sps:$4 sm:$0xff]  }
  0x14   : > { %1422 = vmatpush3.bf16.msra.mxu0 %v1574_v7  ;;  %1538 = vmatpush3.bf16.msra.mxu1 %v1574_v7  ;;  %v1594_v23 = vld [vmem:[%s1726_s11 + $0x90] ss:$8 sps:$4 sm:$0xff]   ;;  %v1597_v25 = vld [vmem:[%s1726_s11 + $0xa4] ss:$8 sps:$4 sm:$0xff]   ;;  %v1600_v27 = vld [vmem:[%s1726_s11 + $0xa0] ss:$8 sps:$4 sm:$0xff]  }
  0x15   : > { %1423 = vmatprep.subr.bf16.mxu0 %v1575_v8  ;;  %1531 = vmatprep.subr.bf16.mxu1 %v1575_v8  ;;  %v1601_v28 = vld [vmem:[%s1726_s11 + $0x34] ss:$8 sps:$4 sm:$0xff]   ;;  %v1605_v30 = vld [vmem:[%s1726_s11 + $0x30] ss:$8 sps:$4 sm:$0xff]   ;;  %v1607_v32 = vld [vmem:[%s1726_s11 + $0x44] ss:$8 sps:$4 sm:$0xff]  }
  0x16   : > { %v1603_v29 = vld [vmem:[%s1726_s11 + $0xb4] ss:$8 sps:$4 sm:$0xff]   ;;  %v1606_v31 = vld [vmem:[%s1726_s11 + $0xb0] ss:$8 sps:$4 sm:$0xff]   ;;  %v1609_v33 = vld [vmem:[%s1726_s11 + $0xc4] ss:$8 sps:$4 sm:$0xff]  }
  0x17   : > { %v1611_v34 = vld [vmem:[%s1726_s11 + $0x40] ss:$8 sps:$4 sm:$0xff]   ;;  %v1613_v36 = vld [vmem:[%s1726_s11 + $0x54] ss:$8 sps:$4 sm:$0xff]   ;;  %v1617_v38 = vld [vmem:[%s1726_s11 + $0x50] ss:$8 sps:$4 sm:$0xff]  }
  0x18   : > { %1424 = vmatpush3.bf16.msra.mxu0 %v1576_v9  ;;  %1539 = vmatpush3.bf16.msra.mxu1 %v1576_v9  ;;  %v1612_v35 = vld [vmem:[%s1726_s11 + $0xc0] ss:$8 sps:$4 sm:$0xff]   ;;  %v1615_v37 = vld [vmem:[%s1726_s11 + $0xd4] ss:$8 sps:$4 sm:$0xff]   ;;  %v1618_v39 = vld [vmem:[%s1726_s11 + $0xd0] ss:$8 sps:$4 sm:$0xff]  }
  0x19   : > { %1425 = vmatprep.subr.bf16.mxu0 %v1577_v10  ;;  %1532 = vmatprep.subr.bf16.mxu1 %v1577_v10  ;;  %v1619_v40 = vld [vmem:[%s1726_s11 + $0x64] ss:$8 sps:$4 sm:$0xff]   ;;  %v1623_v42 = vld [vmem:[%s1726_s11 + $0x60] ss:$8 sps:$4 sm:$0xff]   ;;  %v1625_v44 = vld [vmem:[%s1726_s11 + $0x74] ss:$8 sps:$4 sm:$0xff]  }
  0x1a   : > { %v1621_v41 = vld [vmem:[%s1726_s11 + $0xe4] ss:$8 sps:$4 sm:$0xff]   ;;  %v1624_v43 = vld [vmem:[%s1726_s11 + $0xe0] ss:$8 sps:$4 sm:$0xff]   ;;  %v1627_v45 = vld [vmem:[%s1726_s11 + $0xf4] ss:$8 sps:$4 sm:$0xff]  }
  0x1b   : > { %v1629_v46 = vld [vmem:[%s1726_s11 + $0x70] ss:$8 sps:$4 sm:$0xff]  }
  0x1c   : > { %1426 = vmatpush3.bf16.msra.mxu0 %v1578_v13  ;;  %1540 = vmatpush3.bf16.msra.mxu1 %v1578_v13  ;;  %v1630_v47 = vld [vmem:[%s1726_s11 + $0xf0] ss:$8 sps:$4 sm:$0xff]  }
  0x1d   : > { %1427 = vmatprep.subr.bf16.mxu0 %v1579_v14  ;;  %1533 = vmatprep.subr.bf16.mxu1 %v1579_v14 }
  0x20   : > { %1428 = vmatpush3.bf16.msra.mxu0 %v1580_v15  ;;  %1541 = vmatpush3.bf16.msra.mxu1 %v1580_v15 }
  0x21   : > { %1429 = vmatprep.subr.bf16.mxu0 %v1581_v16  ;;  %1534 = vmatprep.subr.bf16.mxu1 %v1581_v16 }
  0x24   : > { %1430 = vmatpush3.bf16.msra.mxu0 %v1582_v17  ;;  %1542 = vmatpush3.bf16.msra.mxu1 %v1582_v17 }
  0x27   : > { %649 = vmatmul.mubr.bf16.vlgmr.msra.gmra.mrb[0].mxu0 %v1583_v18  ;;  %713 = vmatmul.mubr.bf16.vlgmr.msra.gmra.mrb[0].mxu1 %v1586_v19 }
  0x28   : > { %656 = vmatprep.mubr.bf16.mxu0 %v1589_v20  ;;  %720 = vmatprep.mubr.bf16.mxu1 %v1591_v21 }
  0x2f   : > { %657 = vmatmul.mubr.bf16.gmra.mrb[4].mxu0 %v1593_v22  ;;  %721 = vmatmul.mubr.bf16.gmra.mrb[4].mxu1 %v1594_v23 }
  0x30   : > { %664 = vmatprep.mubr.bf16.mxu0 %v1595_v24  ;;  %728 = vmatprep.mubr.bf16.mxu1 %v1597_v25 }
  0x37   : > { %665 = vmatmul.mubr.bf16.gmra.mrb[8].mxu0 %v1599_v26  ;;  %729 = vmatmul.mubr.bf16.gmra.mrb[8].mxu1 %v1600_v27 }
  0x38   : > { %672 = vmatprep.mubr.bf16.mxu0 %v1601_v28  ;;  %736 = vmatprep.mubr.bf16.mxu1 %v1603_v29 }
  0x3f   : > { %673 = vmatmul.mubr.bf16.gmra.mrb[12].mxu0 %v1605_v30  ;;  %737 = vmatmul.mubr.bf16.gmra.mrb[12].mxu1 %v1606_v31 }
  0x40   : > { %680 = vmatprep.mubr.bf16.mxu0 %v1607_v32  ;;  %744 = vmatprep.mubr.bf16.mxu1 %v1609_v33 }
  0x47   : > { %681 = vmatmul.mubr.bf16.gmra.mrb[16].mxu0 %v1611_v34  ;;  %745 = vmatmul.mubr.bf16.gmra.mrb[16].mxu1 %v1612_v35 }
  0x48   : > { %688 = vmatprep.mubr.bf16.mxu0 %v1613_v36  ;;  %752 = vmatprep.mubr.bf16.mxu1 %v1615_v37 }
  0x4f   : > { %689 = vmatmul.mubr.bf16.gmra.mrb[20].mxu0 %v1617_v38  ;;  %753 = vmatmul.mubr.bf16.gmra.mrb[20].mxu1 %v1618_v39 }
  0x50   : > { %696 = vmatprep.mubr.bf16.mxu0 %v1619_v40  ;;  %760 = vmatprep.mubr.bf16.mxu1 %v1621_v41 }
  0x57   : > { %697 = vmatmul.mubr.bf16.gmra.mrb[24].mxu0 %v1623_v42  ;;  %761 = vmatmul.mubr.bf16.gmra.mrb[24].mxu1 %v1624_v43 }
  0x58   : > { %704 = vmatprep.mubr.bf16.mxu0 %v1625_v44  ;;  %768 = vmatprep.mubr.bf16.mxu1 %v1627_v45 }
  0x5f   : > { %705 = vmatmul.mubr.bf16.gmra.mrb[28].mxu0 %v1629_v46  ;;  %769 = vmatmul.mubr.bf16.gmra.mrb[28].mxu1 %v1630_v47 }
  0xfa   : > { %v1431_v48 = vpop.f32.mrb[0].mxu0  ;;  %v1479_v49 = vpop.f32.mrb[0].mxu1 }
  0xfb   : > { %v1432_v50 = vpop.f32.mrb[1].mxu0  ;;  %v1480_v52 = vpop.f32.mrb[1].mxu1 }
  0xfc   : > { %v1433_v53 = vadd.f32 %v1432_v50, %v1431_v48  ;;  %v1481_v54 = vadd.f32 %v1480_v52, %v1479_v49  ;;  %v1434_v55 = vpop.f32.mrb[2].mxu0  ;;  %v1482_v56 = vpop.f32.mrb[2].mxu1 }
  0xfd   : > { %v1435_v57 = vpop.f32.mrb[3].mxu0  ;;  %v1483_v58 = vpop.f32.mrb[3].mxu1 }
  0xfe   : > { %v883_v59 = vadd.f32 %v1433_v53, %v1784_v51  ;;  %v899_v60 = vadd.f32 %v1481_v54, %v1784_v51  ;;  %v1436_v61 = vadd.f32 %v1435_v57, %v1434_v55  ;;  %v1484_v62 = vadd.f32 %v1483_v58, %v1482_v56 }
 0x100   : > { %v884_v63 = vadd.f32 %v1436_v61, %v1784_v51  ;;  %v900_v0 = vadd.f32 %v1484_v62, %v1784_v51  ;;  %v915_v1 = vmax.f32 %v883_v59, 0.0  ;;  %v931_v2 = vmax.f32 %v899_v60, 0.0 }
 0x102   : > { %v916_v3 = vmax.f32 %v884_v63, 0.0  ;;  %v932_v4 = vmax.f32 %v900_v0, 0.0  ;;  %v1437_v5 = vpop.f32.mrb[4].mxu0  ;;  %v1485_v6 = vpop.f32.mrb[4].mxu1 }
 0x103   : > { %v1438_v7 = vpop.f32.mrb[5].mxu0  ;;  %v1486_v8 = vpop.f32.mrb[5].mxu1 }
 0x104   : > { %v1323_v9 = vpack.c.bf16 %v916_v3, %v915_v1  ;;  %v1363_v10 = vpack.c.bf16 %v932_v4, %v931_v2  ;;  %v1439_v11 = vadd.f32 %v1438_v7, %v1437_v5  ;;  %v1487_v12 = vadd.f32 %v1486_v8, %v1485_v6  ;;  %v1440_v13 = vpop.f32.mrb[6].mxu0  ;;  %v1488_v14 = vpop.f32.mrb[6].mxu1 }
 0x105   : > { %v1441_v15 = vpop.f32.mrb[7].mxu0  ;;  %v1489_v16 = vpop.f32.mrb[7].mxu1 }
 0x106   : > { %1324 = vst [vmem:[%s1794_s8] sm:$0xff] %v1323_v9   ;;  %1407 = vst [vmem:[%s1794_s8 + $0x40] sm:$0xff] %v1363_v10   ;;  %v885_v17 = vadd.f32 %v1439_v11, %v1784_v51  ;;  %v901_v18 = vadd.f32 %v1487_v12, %v1784_v51  ;;  %v1442_v19 = vadd.f32 %v1441_v15, %v1440_v13 }
 0x107   : > { %v1490_v20 = vadd.f32 %v1489_v16, %v1488_v14 }
 0x108   : > { %v886_v21 = vadd.f32 %v1442_v19, %v1784_v51  ;;  %v917_v23 = vmax.f32 %v885_v17, 0.0  ;;  %v933_v24 = vmax.f32 %v901_v18, 0.0 }
 0x109   : > { %v902_v22 = vadd.f32 %v1490_v20, %v1784_v51 }
 0x10a   : > { %v918_v25 = vmax.f32 %v886_v21, 0.0  ;;  %v1443_v27 = vpop.f32.mrb[8].mxu0  ;;  %v1491_v28 = vpop.f32.mrb[8].mxu1 }
 0x10b   : > { %v934_v26 = vmax.f32 %v902_v22, 0.0  ;;  %v1444_v29 = vpop.f32.mrb[9].mxu0  ;;  %v1492_v30 = vpop.f32.mrb[9].mxu1 }
 0x10c   : > { %v1328_v31 = vpack.c.bf16 %v918_v25, %v917_v23  ;;  %v1445_v33 = vadd.f32 %v1444_v29, %v1443_v27  ;;  %v1493_v34 = vadd.f32 %v1492_v30, %v1491_v28  ;;  %v1446_v35 = vpop.f32.mrb[10].mxu0  ;;  %v1494_v36 = vpop.f32.mrb[10].mxu1 }
 0x10d   : > { %v1368_v32 = vpack.c.bf16 %v934_v26, %v933_v24  ;;  %v1447_v37 = vpop.f32.mrb[11].mxu0  ;;  %v1495_v38 = vpop.f32.mrb[11].mxu1 }
 0x10e   : > { %1400 = vst [vmem:[%s1794_s8 + $0x8] sm:$0xff] %v1328_v31   ;;  %v887_v39 = vadd.f32 %v1445_v33, %v1784_v51  ;;  %v903_v40 = vadd.f32 %v1493_v34, %v1784_v51  ;;  %v1448_v41 = vadd.f32 %v1447_v37, %v1446_v35  ;;  %v1496_v42 = vadd.f32 %v1495_v38, %v1494_v36 }
 0x10f   : > { %1408 = vst [vmem:[%s1794_s8 + $0x48] sm:$0xff] %v1368_v32  }
 0x110   : > { %v888_v43 = vadd.f32 %v1448_v41, %v1784_v51  ;;  %v904_v44 = vadd.f32 %v1496_v42, %v1784_v51  ;;  %v919_v45 = vmax.f32 %v887_v39, 0.0  ;;  %v935_v46 = vmax.f32 %v903_v40, 0.0 }
 0x112   : > { %v920_v47 = vmax.f32 %v888_v43, 0.0  ;;  %v936_v48 = vmax.f32 %v904_v44, 0.0  ;;  %v1449_v49 = vpop.f32.mrb[12].mxu0  ;;  %v1497_v50 = vpop.f32.mrb[12].mxu1 }
 0x113   : > { %v1450_v52 = vpop.f32.mrb[13].mxu0  ;;  %v1498_v53 = vpop.f32.mrb[13].mxu1 }
 0x114   : > { %v1333_v54 = vpack.c.bf16 %v920_v47, %v919_v45  ;;  %v1373_v55 = vpack.c.bf16 %v936_v48, %v935_v46  ;;  %v1451_v56 = vadd.f32 %v1450_v52, %v1449_v49  ;;  %v1499_v57 = vadd.f32 %v1498_v53, %v1497_v50  ;;  %v1452_v58 = vpop.f32.mrb[14].mxu0  ;;  %v1500_v59 = vpop.f32.mrb[14].mxu1 }
 0x115   : > { %v1453_v60 = vpop.f32.mrb[15].mxu0  ;;  %v1501_v61 = vpop.f32.mrb[15].mxu1 }
 0x116   : > { %1401 = vst [vmem:[%s1794_s8 + $0x10] sm:$0xff] %v1333_v54   ;;  %1409 = vst [vmem:[%s1794_s8 + $0x50] sm:$0xff] %v1373_v55   ;;  %v889_v62 = vadd.f32 %v1451_v56, %v1784_v51  ;;  %v905_v63 = vadd.f32 %v1499_v57, %v1784_v51  ;;  %v1454_v0 = vadd.f32 %v1453_v60, %v1452_v58 }
 0x117   : > { %v1502_v1 = vadd.f32 %v1501_v61, %v1500_v59 }
 0x118   : > { %v890_v2 = vadd.f32 %v1454_v0, %v1784_v51  ;;  %v921_v4 = vmax.f32 %v889_v62, 0.0  ;;  %v937_v5 = vmax.f32 %v905_v63, 0.0 }
 0x119   : > { %v906_v3 = vadd.f32 %v1502_v1, %v1784_v51 }
 0x11a   : > { %v922_v6 = vmax.f32 %v890_v2, 0.0  ;;  %v1455_v8 = vpop.f32.mrb[16].mxu0  ;;  %v1503_v9 = vpop.f32.mrb[16].mxu1 }
 0x11b   : > { %v938_v7 = vmax.f32 %v906_v3, 0.0  ;;  %v1456_v10 = vpop.f32.mrb[17].mxu0  ;;  %v1504_v11 = vpop.f32.mrb[17].mxu1 }
 0x11c   : > { %v1338_v12 = vpack.c.bf16 %v922_v6, %v921_v4  ;;  %v1457_v14 = vadd.f32 %v1456_v10, %v1455_v8  ;;  %v1505_v15 = vadd.f32 %v1504_v11, %v1503_v9  ;;  %v1458_v16 = vpop.f32.mrb[18].mxu0  ;;  %v1506_v17 = vpop.f32.mrb[18].mxu1 }
 0x11d   : > { %v1378_v13 = vpack.c.bf16 %v938_v7, %v937_v5  ;;  %v1459_v18 = vpop.f32.mrb[19].mxu0  ;;  %v1507_v19 = vpop.f32.mrb[19].mxu1 }
 0x11e   : > { %1402 = vst [vmem:[%s1794_s8 + $0x18] sm:$0xff] %v1338_v12   ;;  %v891_v20 = vadd.f32 %v1457_v14, %v1784_v51  ;;  %v907_v21 = vadd.f32 %v1505_v15, %v1784_v51  ;;  %v1460_v22 = vadd.f32 %v1459_v18, %v1458_v16  ;;  %v1508_v23 = vadd.f32 %v1507_v19, %v1506_v17 }
 0x11f   : > { %1410 = vst [vmem:[%s1794_s8 + $0x58] sm:$0xff] %v1378_v13  }
 0x120   : > { %v892_v24 = vadd.f32 %v1460_v22, %v1784_v51  ;;  %v908_v25 = vadd.f32 %v1508_v23, %v1784_v51  ;;  %v923_v26 = vmax.f32 %v891_v20, 0.0  ;;  %v939_v27 = vmax.f32 %v907_v21, 0.0 }
 0x122   : > { %v924_v28 = vmax.f32 %v892_v24, 0.0  ;;  %v940_v29 = vmax.f32 %v908_v25, 0.0  ;;  %v1461_v30 = vpop.f32.mrb[20].mxu0  ;;  %v1509_v31 = vpop.f32.mrb[20].mxu1 }
 0x123   : > { %v1462_v32 = vpop.f32.mrb[21].mxu0  ;;  %v1510_v33 = vpop.f32.mrb[21].mxu1 }
 0x124   : > { %v1343_v34 = vpack.c.bf16 %v924_v28, %v923_v26  ;;  %v1383_v35 = vpack.c.bf16 %v940_v29, %v939_v27  ;;  %v1463_v36 = vadd.f32 %v1462_v32, %v1461_v30  ;;  %v1511_v37 = vadd.f32 %v1510_v33, %v1509_v31  ;;  %v1464_v38 = vpop.f32.mrb[22].mxu0  ;;  %v1512_v39 = vpop.f32.mrb[22].mxu1 }
 0x125   : > { %v1465_v40 = vpop.f32.mrb[23].mxu0  ;;  %v1513_v41 = vpop.f32.mrb[23].mxu1 }
 0x126   : > { %1403 = vst [vmem:[%s1794_s8 + $0x20] sm:$0xff] %v1343_v34   ;;  %1411 = vst [vmem:[%s1794_s8 + $0x60] sm:$0xff] %v1383_v35   ;;  %v893_v42 = vadd.f32 %v1463_v36, %v1784_v51  ;;  %v909_v43 = vadd.f32 %v1511_v37, %v1784_v51  ;;  %v1466_v44 = vadd.f32 %v1465_v40, %v1464_v38 }
 0x127   : > { %v1514_v45 = vadd.f32 %v1513_v41, %v1512_v39 }
 0x128   : > { %v894_v46 = vadd.f32 %v1466_v44, %v1784_v51  ;;  %v925_v48 = vmax.f32 %v893_v42, 0.0  ;;  %v941_v49 = vmax.f32 %v909_v43, 0.0 }
 0x129   : > { %v910_v47 = vadd.f32 %v1514_v45, %v1784_v51 }
 0x12a   : > { %v926_v50 = vmax.f32 %v894_v46, 0.0  ;;  %v1467_v53 = vpop.f32.mrb[24].mxu0  ;;  %v1515_v54 = vpop.f32.mrb[24].mxu1 }
 0x12b   : > { %v942_v52 = vmax.f32 %v910_v47, 0.0  ;;  %v1468_v55 = vpop.f32.mrb[25].mxu0  ;;  %v1516_v56 = vpop.f32.mrb[25].mxu1 }
 0x12c   : > { %v1348_v57 = vpack.c.bf16 %v926_v50, %v925_v48  ;;  %v1469_v59 = vadd.f32 %v1468_v55, %v1467_v53  ;;  %v1517_v60 = vadd.f32 %v1516_v56, %v1515_v54  ;;  %v1470_v61 = vpop.f32.mrb[26].mxu0  ;;  %v1518_v62 = vpop.f32.mrb[26].mxu1 }
 0x12d   : > { %v1388_v58 = vpack.c.bf16 %v942_v52, %v941_v49  ;;  %v1471_v63 = vpop.f32.mrb[27].mxu0  ;;  %v1519_v0 = vpop.f32.mrb[27].mxu1 }
 0x12e   : > { %1404 = vst [vmem:[%s1794_s8 + $0x28] sm:$0xff] %v1348_v57   ;;  %v895_v1 = vadd.f32 %v1469_v59, %v1784_v51  ;;  %v911_v2 = vadd.f32 %v1517_v60, %v1784_v51  ;;  %v1472_v3 = vadd.f32 %v1471_v63, %v1470_v61  ;;  %v1520_v4 = vadd.f32 %v1519_v0, %v1518_v62 }
 0x12f   : > { %1412 = vst [vmem:[%s1794_s8 + $0x68] sm:$0xff] %v1388_v58  }
 0x130   : > { %v896_v5 = vadd.f32 %v1472_v3, %v1784_v51  ;;  %v912_v6 = vadd.f32 %v1520_v4, %v1784_v51  ;;  %v927_v7 = vmax.f32 %v895_v1, 0.0  ;;  %v943_v8 = vmax.f32 %v911_v2, 0.0 }
 0x132   : > { %v928_v9 = vmax.f32 %v896_v5, 0.0  ;;  %v944_v10 = vmax.f32 %v912_v6, 0.0  ;;  %v1473_v11 = vpop.f32.mrb[28].mxu0  ;;  %v1521_v12 = vpop.f32.mrb[28].mxu1 }
 0x133   : > { %v1474_v13 = vpop.f32.mrb[29].mxu0  ;;  %v1522_v14 = vpop.f32.mrb[29].mxu1 }
 0x134   : > { %v1353_v15 = vpack.c.bf16 %v928_v9, %v927_v7  ;;  %v1393_v16 = vpack.c.bf16 %v944_v10, %v943_v8  ;;  %v1475_v17 = vadd.f32 %v1474_v13, %v1473_v11  ;;  %v1523_v18 = vadd.f32 %v1522_v14, %v1521_v12  ;;  %v1476_v19 = vpop.f32.mrb[30].mxu0  ;;  %v1524_v20 = vpop.f32.mrb[30].mxu1 }
 0x135   : > { %v1477_v21 = vpop.f32.mrb[31].mxu0  ;;  %v1525_v22 = vpop.f32.mrb[31].mxu1 }
 0x136   : > { %1405 = vst [vmem:[%s1794_s8 + $0x30] sm:$0xff] %v1353_v15   ;;  %1413 = vst [vmem:[%s1794_s8 + $0x70] sm:$0xff] %v1393_v16   ;;  %v897_v23 = vadd.f32 %v1475_v17, %v1784_v51  ;;  %v913_v24 = vadd.f32 %v1523_v18, %v1784_v51  ;;  %v1478_v25 = vadd.f32 %v1477_v21, %v1476_v19 }
 0x137   : > { %v1526_v26 = vadd.f32 %v1525_v22, %v1524_v20 }
 0x138   : > { %v898_v27 = vadd.f32 %v1478_v25, %v1784_v51  ;;  %v929_v29 = vmax.f32 %v897_v23, 0.0  ;;  %v945_v30 = vmax.f32 %v913_v24, 0.0 }
 0x139   : > { %v914_v28 = vadd.f32 %v1526_v26, %v1784_v51 }
 0x13a   : > { %v930_v31 = vmax.f32 %v898_v27, 0.0 }
 0x13b   : > { %v946_v32 = vmax.f32 %v914_v28, 0.0 }
 0x13c   : > { %v1358_v33 = vpack.c.bf16 %v930_v31, %v929_v29 }
 0x13d   : > { %v1398_v34 = vpack.c.bf16 %v946_v32, %v945_v30 }
 0x13e   : > { %1406 = vst [vmem:[%s1794_s8 + $0x38] sm:$0xff] %v1358_v33  }
 0x13f   : > { %1414 = vst [vmem:[%s1794_s8 + $0x78] sm:$0xff] %v1398_v34  }
 0x140 PF: > { %s13_s14 = sadd.s32 1, %s1653_s14   ;;  %s1853_s12 = smov %s1649_s13 }
 0x141   : > { %p10_p5 = scmp.ge.s32.totalorder %s13_s14, 4   ;;  %s1854_s13 = smov %s1856_s15 }
 0x143   :  { %12 = sbr.rel (!%p10_p5) target bundleno = 2 (0x2), region = 73 }

// kernel: resnet_forward.21
= control target key start
LH: loop header
LB: loop body
LE: loop exit
PB: predicated region body
PF: predicated region fallthrough
CT: control target
= control target key end

     0   :  { %s770_s12 = smov 0   ;;  %s772_s13 = smov 0   ;;  %s843_s0 = inlined_call_operand.vmem [shape: bf16[128,128], index: 0, kind: input, shape index: {}]   ;;  %s844_s1 = inlined_call_operand.vmem [shape: bf16[128,128], index: 1, kind: input, shape index: {}]   ;;  %s845_s2 = inlined_call_operand.vmem [shape: f32[1,128], index: 2, kind: input, shape index: {}]   ;;  %s846_s3 = inlined_call_operand.vmem [shape: bf16[128,128], index: 3, kind: output, shape index: {}]  }
   0x1   :  { %s774_s14 = smov 0  }
   0x2 LB: > { %s25_s15 = sadd.s32 1, %s744_s13  ;;  %p579_p0 = scmp.ge.s32.totalorder %s748_s14, 1  ;;  %s748_s14 = sphi %s774_s14, %s13_s14   ;;  %s744_s13 = sphi %s772_s13, %s848_s13   ;;  %s740_s12 = sphi %s770_s12, %s847_s12  }
   0x3   : > { %p27_p1 = scmp.ge.s32.totalorder %s25_s15, 2  ;;  %p166_p2 = scmp.lt.s32.totalorder %s748_s14, 3 }
   0x5   : > { %s850_s15 = smov (%p27_p1, %s25_s15), 0  ;;  %p167_p3 = pnand %p579_p0, %p166_p2 }
   0x6   : > { %v714_v0 = vld [vmem:[%s844_s1] sm:$0xff] (!%p167_p3)   ;;  %s580_s18 = sshll.u32 (!%p167_p3), %s740_s12, 3  ;;  %v715_v1 = vld [vmem:[%s844_s1 + $0x8] sm:$0xff] (!%p167_p3)   ;;  %v716_v2 = vld [vmem:[%s844_s1 + $0x10] sm:$0xff] (!%p167_p3)  }
   0x7   : > { %170 = sbr.rel (%p167_p3) target bundleno = 261 (0x105), region = 32  ;;  %p199_p4 = scmp.lt.s32.totalorder (!%p167_p3), %s580_s18, 15  ;;  %650 = vmatprep.subr.bf16.mxu0 (!%p167_p3), %v714_v0  ;;  %674 = vmatprep.subr.bf16.mxu1 (!%p167_p3), %v714_v0  ;;  %v717_v3 = vld [vmem:[%s844_s1 + $0x18] sm:$0xff] (!%p167_p3)   ;;  %v718_v6 = vld [vmem:[%s844_s1 + $0x20] sm:$0xff] (!%p167_p3)   ;;  %v719_v7 = vld [vmem:[%s844_s1 + $0x28] sm:$0xff] (!%p167_p3)  }
   0x8   : > { %651 = vmatpush3.bf16.msra.mxu0 (!%p167_p3), %v714_v0  ;;  %682 = vmatpush3.bf16.msra.mxu1 (!%p167_p3), %v714_v0  ;;  %v720_v8 = vld [vmem:[%s844_s1 + $0x30] sm:$0xff] (!%p167_p3)   ;;  %v721_v9 = vld [vmem:[%s844_s1 + $0x38] sm:$0xff] (!%p167_p3)   ;;  %v596_v12 = vld [vmem:[%s845_s2] ss:$0 sm:$0xff] (!%p167_p3) }
   0x9   : > { %652 = vmatprep.subr.bf16.mxu0 (!%p167_p3), %v715_v1  ;;  %675 = vmatprep.subr.bf16.mxu1 (!%p167_p3), %v715_v1 }
   0xc   : > { %653 = vmatpush3.bf16.msra.mxu0 (!%p167_p3), %v715_v1  ;;  %683 = vmatpush3.bf16.msra.mxu1 (!%p167_p3), %v715_v1 }
   0xd   : > { %654 = vmatprep.subr.bf16.mxu0 (!%p167_p3), %v716_v2  ;;  %676 = vmatprep.subr.bf16.mxu1 (!%p167_p3), %v716_v2 }
   0xe   : > { %s852_s18 = smov (!%p199_p4, %s580_s18), 15 }
   0xf   : > { %s581_s23 = sshll.u32 %s852_s18, 2 }
  0x10   : > { %s805_s26 = scalar_lea.vmem %s843_s0, %s581_s23  ;;  %655 = vmatpush3.bf16.msra.mxu0 %v716_v2  ;;  %684 = vmatpush3.bf16.msra.mxu1 %v716_v2  ;;  %s217_s17 = scalar_lea.vmem %s846_s3, %s581_s23 }
  0x11   : > { %v722_v4 = vld [vmem:[%s805_s26] sm:$0xff]   ;;  %v723_v5 = vld [vmem:[%s805_s26 + $0x10] sm:$0xff]   ;;  %656 = vmatprep.subr.bf16.mxu0 %v717_v3  ;;  %677 = vmatprep.subr.bf16.mxu1 %v717_v3  ;;  %v724_v10 = vld [vmem:[%s805_s26 + $0x8] sm:$0xff]  }
  0x12   : > { %666 = vmatprep.mubr.bf16.mxu0 %v722_v4  ;;  %670 = vmatprep.mubr.bf16.mxu1 %v723_v5  ;;  %v725_v11 = vld [vmem:[%s805_s26 + $0x18] sm:$0xff]  }
  0x14   : > { %657 = vmatpush3.bf16.msra.mxu0 %v717_v3  ;;  %685 = vmatpush3.bf16.msra.mxu1 %v717_v3 }
  0x15   : > { %658 = vmatprep.subr.bf16.mxu0 %v718_v6  ;;  %678 = vmatprep.subr.bf16.mxu1 %v718_v6 }
  0x18   : > { %659 = vmatpush3.bf16.msra.mxu0 %v718_v6  ;;  %686 = vmatpush3.bf16.msra.mxu1 %v718_v6 }
  0x19   : > { %660 = vmatprep.subr.bf16.mxu0 %v719_v7  ;;  %679 = vmatprep.subr.bf16.mxu1 %v719_v7 }
  0x1c   : > { %661 = vmatpush3.bf16.msra.mxu0 %v719_v7  ;;  %687 = vmatpush3.bf16.msra.mxu1 %v719_v7 }
  0x1d   : > { %662 = vmatprep.subr.bf16.mxu0 %v720_v8  ;;  %680 = vmatprep.subr.bf16.mxu1 %v720_v8 }
  0x20   : > { %663 = vmatpush3.bf16.msra.mxu0 %v720_v8  ;;  %688 = vmatpush3.bf16.msra.mxu1 %v720_v8 }
  0x21   : > { %664 = vmatprep.subr.bf16.mxu0 %v721_v9  ;;  %681 = vmatprep.subr.bf16.mxu1 %v721_v9 }
  0x24   : > { %665 = vmatpush3.bf16.msra.mxu0 %v721_v9  ;;  %689 = vmatpush3.bf16.msra.mxu1 %v721_v9 }
  0x27   : > { %667 = vmatmul.mubr.bf16.vlgmr.msra.gmra.mrb[0].mxu0 %v724_v10  ;;  %671 = vmatmul.mubr.bf16.vlgmr.msra.gmra.mrb[0].mxu1 %v725_v11 }
  0xfa   : > { %v668_v13 = vpop.f32.mrb[0].mxu0  ;;  %v672_v14 = vpop.f32.mrb[0].mxu1 }
  0xfb   : > { %v437_v15 = vadd.f32 %v668_v13, %v596_v12  ;;  %v441_v16 = vadd.f32 %v672_v14, %v596_v12  ;;  %v370_v17 = vpop.f32.mrb[1].mxu0  ;;  %v386_v18 = vpop.f32.mrb[1].mxu1 }
  0xfc   : > { %v435_v19 = vadd.f32 %v596_v12, %v370_v17  ;;  %v439_v20 = vadd.f32 %v596_v12, %v386_v18  ;;  %v669_v21 = vpop.f32.mrb[2].mxu0  ;;  %v673_v22 = vpop.f32.mrb[2].mxu1 }
  0xfd   : > { %v438_v23 = vadd.f32 %v669_v21, %v596_v12  ;;  %v442_v24 = vadd.f32 %v673_v22, %v596_v12  ;;  %v373_v25 = vpop.f32.mrb[3].mxu0  ;;  %v389_v26 = vpop.f32.mrb[3].mxu1  ;;  %v445_v29 = vmax.f32 %v437_v15, 0.0  ;;  %v449_v30 = vmax.f32 %v441_v16, 0.0 }
  0xfe   : > { %v436_v27 = vadd.f32 %v596_v12, %v373_v25  ;;  %v440_v28 = vadd.f32 %v596_v12, %v389_v26  ;;  %v443_v33 = vmax.f32 %v435_v19, 0.0  ;;  %v447_v34 = vmax.f32 %v439_v20, 0.0 }
  0xff   : > { %v446_v31 = vmax.f32 %v438_v23, 0.0  ;;  %v450_v32 = vmax.f32 %v442_v24, 0.0 }
 0x100   : > { %v444_v35 = vmax.f32 %v436_v27, 0.0  ;;  %v448_v36 = vmax.f32 %v440_v28, 0.0 }
 0x101   : > { %v623_v37 = vpack.c.bf16 %v446_v31, %v445_v29  ;;  %v633_v38 = vpack.c.bf16 %v450_v32, %v449_v30 }
 0x102   : > { %v618_v39 = vpack.c.bf16 %v444_v35, %v443_v33  ;;  %v628_v40 = vpack.c.bf16 %v448_v36, %v447_v34 }
 0x103   : > { %635 = vst [vmem:[%s217_s17 + $0x8] sm:$0xff] %v623_v37   ;;  %637 = vst [vmem:[%s217_s17 + $0x18] sm:$0xff] %v633_v38  }
 0x104   : > { %619 = vst [vmem:[%s217_s17] sm:$0xff] %v618_v39   ;;  %636 = vst [vmem:[%s217_s17 + $0x10] sm:$0xff] %v628_v40  }
 0x105 PF: > { %s13_s14 = sadd.s32 1, %s748_s14   ;;  %s847_s12 = smov %s744_s13 }
 0x106   : > { %p10_p5 = scmp.ge.s32.totalorder %s13_s14, 4   ;;  %s848_s13 = smov %s850_s15 }
 0x108   :  { %12 = sbr.rel (!%p10_p5) target bundleno = 2 (0x2), region = 73 }

// kernel: resnet_forward.22
= control target key start
LH: loop header
LB: loop body
LE: loop exit
PB: predicated region body
PF: predicated region fallthrough
CT: control target
= control target key end

     0   :  { %s881_s15 = smov 0   ;;  %s883_s16 = smov 0   ;;  %s955_s0 = inlined_call_operand.vmem [shape: bf16[128,128], index: 0, kind: input, shape index: {}]   ;;  %s956_s1 = inlined_call_operand.vmem [shape: bf16[128,128], index: 1, kind: input, shape index: {}]   ;;  %s957_s2 = inlined_call_operand.vmem [shape: f32[1,128], index: 2, kind: input, shape index: {}]   ;;  %s958_s3 = inlined_call_operand.vmem [shape: bf16[128,128], index: 3, kind: input, shape index: {}]   ;;  %s959_s4 = inlined_call_operand.vmem [shape: bf16[128,128], index: 4, kind: output, shape index: {}]  }
   0x1   :  { %s885_s17 = smov 0  }
   0x2 LB: > { %s26_s18 = sadd.s32 1, %s850_s16  ;;  %p664_p0 = scmp.ge.s32.totalorder %s854_s17, 1  ;;  %s854_s17 = sphi %s885_s17, %s14_s17   ;;  %s850_s16 = sphi %s883_s16, %s961_s16   ;;  %s846_s15 = sphi %s881_s15, %s960_s15  }
   0x3   : > { %p28_p1 = scmp.ge.s32.totalorder %s26_s18, 2  ;;  %p202_p2 = scmp.lt.s32.totalorder %s854_s17, 3 }
   0x5   : > { %s963_s18 = smov (%p28_p1, %s26_s18), 0  ;;  %p203_p3 = pnand %p664_p0, %p202_p2 }
   0x6   : > { %v820_v0 = vld [vmem:[%s956_s1] sm:$0xff] (!%p203_p3)   ;;  %s665_s21 = sshll.u32 (!%p203_p3), %s846_s15, 3  ;;  %v821_v1 = vld [vmem:[%s956_s1 + $0x8] sm:$0xff] (!%p203_p3)   ;;  %v822_v2 = vld [vmem:[%s956_s1 + $0x10] sm:$0xff] (!%p203_p3)  }
   0x7   : > { %206 = sbr.rel (%p203_p3) target bundleno = 263 (0x107), region = 36  ;;  %p242_p4 = scmp.lt.s32.totalorder (!%p203_p3), %s665_s21, 15  ;;  %756 = vmatprep.subr.bf16.mxu0 (!%p203_p3), %v820_v0  ;;  %780 = vmatprep.subr.bf16.mxu1 (!%p203_p3), %v820_v0  ;;  %v823_v3 = vld [vmem:[%s956_s1 + $0x18] sm:$0xff] (!%p203_p3)   ;;  %v824_v6 = vld [vmem:[%s956_s1 + $0x20] sm:$0xff] (!%p203_p3)   ;;  %v825_v7 = vld [vmem:[%s956_s1 + $0x28] sm:$0xff] (!%p203_p3)  }
   0x8   : > { %757 = vmatpush3.bf16.msra.mxu0 (!%p203_p3), %v820_v0  ;;  %788 = vmatpush3.bf16.msra.mxu1 (!%p203_p3), %v820_v0  ;;  %v826_v8 = vld [vmem:[%s956_s1 + $0x30] sm:$0xff] (!%p203_p3)   ;;  %v827_v9 = vld [vmem:[%s956_s1 + $0x38] sm:$0xff] (!%p203_p3)   ;;  %v683_v16 = vld [vmem:[%s957_s2] ss:$0 sm:$0xff] (!%p203_p3) }
   0x9   : > { %758 = vmatprep.subr.bf16.mxu0 (!%p203_p3), %v821_v1  ;;  %781 = vmatprep.subr.bf16.mxu1 (!%p203_p3), %v821_v1 }
   0xc   : > { %759 = vmatpush3.bf16.msra.mxu0 (!%p203_p3), %v821_v1  ;;  %789 = vmatpush3.bf16.msra.mxu1 (!%p203_p3), %v821_v1 }
   0xd   : > { %760 = vmatprep.subr.bf16.mxu0 (!%p203_p3), %v822_v2  ;;  %782 = vmatprep.subr.bf16.mxu1 (!%p203_p3), %v822_v2 }
   0xe   : > { %s965_s21 = smov (!%p242_p4, %s665_s21), 15 }
   0xf   : > { %s908_s26 = sshll.u32 %s965_s21, 2 }
  0x10   : > { %s914_s29 = scalar_lea.vmem %s955_s0, %s908_s26  ;;  %761 = vmatpush3.bf16.msra.mxu0 %v822_v2  ;;  %790 = vmatpush3.bf16.msra.mxu1 %v822_v2  ;;  %s260_s19 = scalar_lea.vmem %s958_s3, %s908_s26 }
  0x11   : > { %v828_v4 = vld [vmem:[%s914_s29] sm:$0xff]   ;;  %v829_v5 = vld [vmem:[%s914_s29 + $0x10] sm:$0xff]   ;;  %762 = vmatprep.subr.bf16.mxu0 %v823_v3  ;;  %783 = vmatprep.subr.bf16.mxu1 %v823_v3  ;;  %v830_v10 = vld [vmem:[%s914_s29 + $0x8] sm:$0xff]   ;;  %s266_s24 = scalar_lea.vmem %s959_s4, %s908_s26 }
  0x12   : > { %772 = vmatprep.mubr.bf16.mxu0 %v828_v4  ;;  %776 = vmatprep.mubr.bf16.mxu1 %v829_v5  ;;  %v831_v11 = vld [vmem:[%s914_s29 + $0x18] sm:$0xff]   ;;  %v738_v12 = vld [vmem:[%s260_s19 + $0x8] sm:$0xff]   ;;  %v703_v14 = vld [vmem:[%s260_s19] sm:$0xff]  }
  0x13   : > { %v740_v13 = vld [vmem:[%s260_s19 + $0x18] sm:$0xff]   ;;  %v739_v15 = vld [vmem:[%s260_s19 + $0x10] sm:$0xff]   ;;  %v708_v17 = vunpack.c.l.bf16 %v738_v12  ;;  %v704_v21 = vunpack.c.l.bf16 %v703_v14  ;;  %v709_v27 = vunpack.c.h.bf16 %v738_v12  ;;  %v705_v33 = vunpack.c.h.bf16 %v703_v14 }
  0x14   : > { %763 = vmatpush3.bf16.msra.mxu0 %v823_v3  ;;  %791 = vmatpush3.bf16.msra.mxu1 %v823_v3  ;;  %v716_v18 = vunpack.c.l.bf16 %v740_v13  ;;  %v712_v22 = vunpack.c.l.bf16 %v739_v15  ;;  %v717_v28 = vunpack.c.h.bf16 %v740_v13  ;;  %v713_v34 = vunpack.c.h.bf16 %v739_v15 }
  0x15   : > { %764 = vmatprep.subr.bf16.mxu0 %v824_v6  ;;  %784 = vmatprep.subr.bf16.mxu1 %v824_v6 }
  0x18   : > { %765 = vmatpush3.bf16.msra.mxu0 %v824_v6  ;;  %792 = vmatpush3.bf16.msra.mxu1 %v824_v6 }
  0x19   : > { %766 = vmatprep.subr.bf16.mxu0 %v825_v7  ;;  %785 = vmatprep.subr.bf16.mxu1 %v825_v7 }
  0x1c   : > { %767 = vmatpush3.bf16.msra.mxu0 %v825_v7  ;;  %793 = vmatpush3.bf16.msra.mxu1 %v825_v7 }
  0x1d   : > { %768 = vmatprep.subr.bf16.mxu0 %v826_v8  ;;  %786 = vmatprep.subr.bf16.mxu1 %v826_v8 }
  0x20   : > { %769 = vmatpush3.bf16.msra.mxu0 %v826_v8  ;;  %794 = vmatpush3.bf16.msra.mxu1 %v826_v8 }
  0x21   : > { %770 = vmatprep.subr.bf16.mxu0 %v827_v9  ;;  %787 = vmatprep.subr.bf16.mxu1 %v827_v9 }
  0x24   : > { %771 = vmatpush3.bf16.msra.mxu0 %v827_v9  ;;  %795 = vmatpush3.bf16.msra.mxu1 %v827_v9 }
  0x27   : > { %773 = vmatmul.mubr.bf16.vlgmr.msra.gmra.mrb[0].mxu0 %v830_v10  ;;  %777 = vmatmul.mubr.bf16.vlgmr.msra.gmra.mrb[0].mxu1 %v831_v11 }
  0xfa   : > { %v774_v19 = vpop.f32.mrb[0].mxu0  ;;  %v778_v20 = vpop.f32.mrb[0].mxu1 }
  0xfb   : > { %v486_v23 = vadd.f32 %v774_v19, %v683_v16  ;;  %v490_v24 = vadd.f32 %v778_v20, %v683_v16  ;;  %v419_v25 = vpop.f32.mrb[1].mxu0  ;;  %v435_v26 = vpop.f32.mrb[1].mxu1 }
  0xfc   : > { %v484_v29 = vadd.f32 %v683_v16, %v419_v25  ;;  %v488_v30 = vadd.f32 %v683_v16, %v435_v26  ;;  %v775_v31 = vpop.f32.mrb[2].mxu0  ;;  %v779_v32 = vpop.f32.mrb[2].mxu1 }
  0xfd   : > { %v510_v35 = vadd.f32 %v708_v17, %v486_v23  ;;  %v514_v36 = vadd.f32 %v716_v18, %v490_v24  ;;  %v487_v37 = vadd.f32 %v775_v31, %v683_v16  ;;  %v491_v38 = vadd.f32 %v779_v32, %v683_v16  ;;  %v422_v39 = vpop.f32.mrb[3].mxu0  ;;  %v438_v40 = vpop.f32.mrb[3].mxu1 }
  0xfe   : > { %v508_v41 = vadd.f32 %v704_v21, %v484_v29  ;;  %v512_v42 = vadd.f32 %v712_v22, %v488_v30  ;;  %v485_v43 = vadd.f32 %v683_v16, %v422_v39  ;;  %v489_v44 = vadd.f32 %v683_v16, %v438_v40 }
  0xff   : > { %v511_v45 = vadd.f32 %v709_v27, %v487_v37  ;;  %v515_v46 = vadd.f32 %v717_v28, %v491_v38  ;;  %v518_v49 = vmax.f32 %v510_v35, 0.0  ;;  %v522_v50 = vmax.f32 %v514_v36, 0.0 }
 0x100   : > { %v509_v47 = vadd.f32 %v705_v33, %v485_v43  ;;  %v513_v48 = vadd.f32 %v713_v34, %v489_v44  ;;  %v516_v53 = vmax.f32 %v508_v41, 0.0  ;;  %v520_v54 = vmax.f32 %v512_v42, 0.0 }
 0x101   : > { %v519_v51 = vmax.f32 %v511_v45, 0.0  ;;  %v523_v52 = vmax.f32 %v515_v46, 0.0 }
 0x102   : > { %v517_v55 = vmax.f32 %v509_v47, 0.0  ;;  %v521_v56 = vmax.f32 %v513_v48, 0.0 }
 0x103   : > { %v726_v57 = vpack.c.bf16 %v519_v51, %v518_v49  ;;  %v736_v58 = vpack.c.bf16 %v523_v52, %v522_v50 }
 0x104   : > { %v721_v59 = vpack.c.bf16 %v517_v55, %v516_v53  ;;  %v731_v60 = vpack.c.bf16 %v521_v56, %v520_v54 }
 0x105   : > { %741 = vst [vmem:[%s266_s24 + $0x8] sm:$0xff] %v726_v57   ;;  %743 = vst [vmem:[%s266_s24 + $0x18] sm:$0xff] %v736_v58  }
 0x106   : > { %722 = vst [vmem:[%s266_s24] sm:$0xff] %v721_v59   ;;  %742 = vst [vmem:[%s266_s24 + $0x10] sm:$0xff] %v731_v60  }
 0x107 PF: > { %s14_s17 = sadd.s32 1, %s854_s17   ;;  %s960_s15 = smov %s850_s16 }
 0x108   : > { %p11_p5 = scmp.ge.s32.totalorder %s14_s17, 4   ;;  %s961_s16 = smov %s963_s18 }
 0x10a   :  { %13 = sbr.rel (!%p11_p5) target bundleno = 2 (0x2), region = 80 }

// kernel: resnet_forward.25
= control target key start
LH: loop header
LB: loop body
LE: loop exit
PB: predicated region body
PF: predicated region fallthrough
CT: control target
= control target key end

     0   :  { %s657_s12 = smov 0   ;;  %s659_s13 = smov 0   ;;  %s745_s0 = inlined_call_operand.vmem [shape: bf16[32,128], index: 0, kind: input, shape index: {}]   ;;  %s746_s1 = inlined_call_operand.vmem [shape: bf16[128,256], index: 1, kind: input, shape index: {}]   ;;  %s747_s2 = inlined_call_operand.vmem [shape: f32[1,256], index: 2, kind: input, shape index: {}]   ;;  %s748_s3 = inlined_call_operand.vmem [shape: bf16[32,256], index: 3, kind: output, shape index: {}]  }
   0x1   :  { %s661_s14 = smov 0  }
   0x2 LB: > { %s25_s15 = sadd.s32 1, %s630_s13  ;;  %p532_p0 = scmp.ge.s32.totalorder %s634_s14, 1  ;;  %s634_s14 = sphi %s661_s14, %s13_s14   ;;  %s630_s13 = sphi %s659_s13, %s750_s13   ;;  %s626_s12 = sphi %s657_s12, %s749_s12  }
   0x3   : > { %p27_p1 = scmp.ge.s32.totalorder %s25_s15, 2  ;;  %p167_p2 = scmp.lt.s32.totalorder %s634_s14, 3 }
   0x5   : > { %s752_s15 = smov (%p27_p1, %s25_s15), 0  ;;  %p168_p3 = pnand %p532_p0, %p167_p2 }
   0x6   : > { %v587_v0 = vld [vmem:[%s746_s1 + $0x4] ss:$8 sps:$4 sm:$0xff] (!%p168_p3)   ;;  %s533_s18 = sshll.u32 (!%p168_p3), %s626_s12, 1  ;;  %v589_v1 = vld [vmem:[%s746_s1] ss:$8 sps:$4 sm:$0xff] (!%p168_p3)   ;;  %v636_v2 = vmov (!%p168_p3), 0   ;;  %v401_v18 = vlaneseq (!%p168_p3) }
   0x7   : > { %171 = sbr.rel (%p168_p3) target bundleno = 260 (0x104), region = 32  ;;  %373 = vmatprep.mubr.bf16.mxu0 (!%p168_p3), %v636_v2  ;;  %p202_p4 = scmp.lt.s32.totalorder (!%p168_p3), %s533_s18, 3  ;;  %341 = vmatprep.subr.bf16.mxu0 (!%p168_p3), %v587_v0  ;;  %v590_v3 = vld [vmem:[%s746_s1 + $0x14] ss:$8 sps:$4 sm:$0xff] (!%p168_p3)   ;;  %v592_v4 = vld [vmem:[%s746_s1 + $0x10] ss:$8 sps:$4 sm:$0xff] (!%p168_p3)  }
   0x8   : > { %342 = vmatpush1.bf16.msra.mxu0 (!%p168_p3), %v589_v1  ;;  %v593_v5 = vld [vmem:[%s746_s1 + $0x24] ss:$8 sps:$4 sm:$0xff] (!%p168_p3)   ;;  %v595_v6 = vld [vmem:[%s746_s1 + $0x20] ss:$8 sps:$4 sm:$0xff] (!%p168_p3)   ;;  %v596_v7 = vld [vmem:[%s746_s1 + $0x34] ss:$8 sps:$4 sm:$0xff] (!%p168_p3)  }
   0x9   : > { %343 = vmatprep.subr.bf16.mxu0 (!%p168_p3), %v590_v3  ;;  %v598_v8 = vld [vmem:[%s746_s1 + $0x30] ss:$8 sps:$4 sm:$0xff] (!%p168_p3)   ;;  %v599_v9 = vld [vmem:[%s746_s1 + $0x44] ss:$8 sps:$4 sm:$0xff] (!%p168_p3)   ;;  %v601_v10 = vld [vmem:[%s746_s1 + $0x40] ss:$8 sps:$4 sm:$0xff] (!%p168_p3)  }
   0xa   : > { %v602_v11 = vld [vmem:[%s746_s1 + $0x54] ss:$8 sps:$4 sm:$0xff] (!%p168_p3)   ;;  %v604_v12 = vld [vmem:[%s746_s1 + $0x50] ss:$8 sps:$4 sm:$0xff] (!%p168_p3)   ;;  %v605_v13 = vld [vmem:[%s746_s1 + $0x64] ss:$8 sps:$4 sm:$0xff] (!%p168_p3)  }
   0xb   : > { %v607_v14 = vld [vmem:[%s746_s1 + $0x60] ss:$8 sps:$4 sm:$0xff] (!%p168_p3)   ;;  %v608_v15 = vld [vmem:[%s746_s1 + $0x74] ss:$8 sps:$4 sm:$0xff] (!%p168_p3)   ;;  %v610_v16 = vld [vmem:[%s746_s1 + $0x70] ss:$8 sps:$4 sm:$0xff] (!%p168_p3)  }
   0xc   : > { %344 = vmatpush1.bf16.msra.mxu0 (!%p168_p3), %v592_v4  ;;  %v402_v19 = vshrl.u32 (!%p168_p3), %v401_v18, 7  ;;  %v399_v21 = vld [vmem:[%s747_s2] sm:$0x3] (!%p168_p3) }
   0xd   : > { %345 = vmatprep.subr.bf16.mxu0 (!%p168_p3), %v593_v5 }
   0xe   : > { %s754_s18 = smov (!%p202_p4, %s533_s18), 3  ;;  %v403_v20 = vsub.s32 0, %v402_v19  ;;  %v407_v22 = vsub.s32 1, %v402_v19 }
   0xf   : > { %s534_s27 = sshll.u32 %s754_s18, 2  ;;  %s559_s5 = sshll.u32 %s754_s18, 3 }
  0x10   : > { %s208_s7 = scalar_lea.vmem %s745_s0, %s534_s27  ;;  %346 = vmatpush1.bf16.msra.mxu0 %v595_v6  ;;  %v404_v23 = vrot.slane %v399_v21, %v403_v20  ;;  %v408_v24 = vrot.slane %v399_v21, %v407_v22  ;;  %s222_s8 = scalar_lea.vmem %s748_s3, %s559_s5 }
  0x11   : > { %347 = vmatprep.subr.bf16.mxu0 %v596_v7  ;;  %v611_v17 = vld [vmem:[%s208_s7] sm:$0xff]  }
  0x14   : > { %348 = vmatpush1.bf16.msra.mxu0 %v598_v8 }
  0x15   : > { %349 = vmatprep.subr.bf16.mxu0 %v599_v9 }
  0x18   : > { %350 = vmatpush1.bf16.msra.mxu0 %v601_v10 }
  0x19   : > { %351 = vmatprep.subr.bf16.mxu0 %v602_v11 }
  0x1c   : > { %352 = vmatpush1.bf16.msra.mxu0 %v604_v12 }
  0x1d   : > { %353 = vmatprep.subr.bf16.mxu0 %v605_v13 }
  0x20   : > { %354 = vmatpush1.bf16.msra.mxu0 %v607_v14 }
  0x21   : > { %355 = vmatprep.subr.bf16.mxu0 %v608_v15 }
  0x24   : > { %356 = vmatpush1.bf16.msra.mxu0 %v610_v16 }
  0x27   : > { %374 = vmatmul.mubr.bf16.vlgmr.msra.gmra.mrb[0].mxu0 %v611_v17 }
  0xfa   : > { %v375_v25 = vpop.f32.mrb[0].mxu0 }
  0xfb   : > { %v411_v26 = vadd.f32 %v404_v23, %v375_v25  ;;  %v377_v27 = vpop.f32.mrb[1].mxu0 }
  0xfc   : > { %v412_v28 = vadd.f32 %v408_v24, %v377_v27  ;;  %v379_v29 = vpop.f32.mrb[2].mxu0 }
  0xfd   : > { %v420_v30 = vmax.f32 %v411_v26, 0.0  ;;  %v413_v31 = vadd.f32 %v404_v23, %v379_v29  ;;  %v381_v32 = vpop.f32.mrb[3].mxu0 }
  0xfe   : > { %v414_v33 = vadd.f32 %v408_v24, %v381_v32 }
  0xff   : > { %v560_v34 = vpack.c.bf16 %v412_v28, %v420_v30  ;;  %v422_v35 = vmax.f32 %v413_v31, 0.0 }
 0x101   : > { %440 = vst [vmem:[%s222_s8] sm:$0xff] %v560_v34  ;;  %v561_v36 = vpack.c.bf16 %v414_v33, %v422_v35 }
 0x103   : > { %441 = vst [vmem:[%s222_s8 + $0x8] sm:$0xff] %v561_v36 }
 0x104 PF: > { %s13_s14 = sadd.s32 1, %s634_s14   ;;  %s749_s12 = smov %s630_s13 }
 0x105   : > { %p10_p5 = scmp.ge.s32.totalorder %s13_s14, 4   ;;  %s750_s13 = smov %s752_s15 }
 0x107   :  { %12 = sbr.rel (!%p10_p5) target bundleno = 2 (0x2), region = 73 }

// kernel: resnet_forward.27
= control target key start
LH: loop header
LB: loop body
LE: loop exit
PB: predicated region body
PF: predicated region fallthrough
CT: control target
= control target key end

     0   :  { %s684_s12 = smov 0   ;;  %s686_s13 = smov 0   ;;  %s772_s0 = inlined_call_operand.vmem [shape: bf16[32,256], index: 0, kind: input, shape index: {}]   ;;  %s773_s1 = inlined_call_operand.vmem [shape: bf16[256,128], index: 1, kind: input, shape index: {}]   ;;  %s774_s2 = inlined_call_operand.vmem [shape: f32[1,128], index: 2, kind: input, shape index: {}]   ;;  %s775_s3 = inlined_call_operand.vmem [shape: bf16[32,128], index: 3, kind: output, shape index: {}]  }
   0x1   :  { %s688_s14 = smov 0  }
   0x2 LB: > { %s25_s15 = sadd.s32 1, %s658_s13  ;;  %p538_p0 = scmp.ge.s32.totalorder %s662_s14, 1  ;;  %s662_s14 = sphi %s688_s14, %s13_s14   ;;  %s658_s13 = sphi %s686_s13, %s777_s13   ;;  %s654_s12 = sphi %s684_s12, %s776_s12  }
   0x3   : > { %p27_p1 = scmp.ge.s32.totalorder %s25_s15, 2  ;;  %p169_p2 = scmp.lt.s32.totalorder %s662_s14, 3 }
   0x5   : > { %s779_s15 = smov (%p27_p1, %s25_s15), 0  ;;  %p170_p3 = pnand %p538_p0, %p169_p2 }
   0x6   : > { %v621_v0 = vld [vmem:[%s773_s1 + $0x40] sm:$0xff] (!%p170_p3)   ;;  %s539_s18 = sshll.u32 (!%p170_p3), %s654_s12, 1  ;;  %v623_v2 = vld [vmem:[%s773_s1 + $0x48] sm:$0xff] (!%p170_p3)   ;;  %v625_v4 = vld [vmem:[%s773_s1 + $0x50] sm:$0xff] (!%p170_p3)  }
   0x7   : > { %173 = sbr.rel (%p170_p3) target bundleno = 263 (0x107), region = 32  ;;  %v622_v1 = vld [vmem:[%s773_s1] sm:$0xff] (!%p170_p3)   ;;  %575 = vmatprep.subr.bf16.mxu0 (!%p170_p3), %v621_v0  ;;  %v624_v3 = vld [vmem:[%s773_s1 + $0x8] sm:$0xff] (!%p170_p3)   ;;  %p205_p4 = scmp.lt.s32.totalorder (!%p170_p3), %s539_s18, 3  ;;  %v626_v5 = vld [vmem:[%s773_s1 + $0x10] sm:$0xff] (!%p170_p3)  }
   0x8   : > { %576 = vmatpush3.bf16.msra.mxu0 (!%p170_p3), %v622_v1  ;;  %v627_v6 = vld [vmem:[%s773_s1 + $0x58] sm:$0xff] (!%p170_p3)   ;;  %v629_v8 = vld [vmem:[%s773_s1 + $0x60] sm:$0xff] (!%p170_p3)   ;;  %v631_v10 = vld [vmem:[%s773_s1 + $0x68] sm:$0xff] (!%p170_p3)  }
   0x9   : > { %577 = vmatprep.subr.bf16.mxu0 (!%p170_p3), %v623_v2  ;;  %v628_v7 = vld [vmem:[%s773_s1 + $0x18] sm:$0xff] (!%p170_p3)   ;;  %v630_v9 = vld [vmem:[%s773_s1 + $0x20] sm:$0xff] (!%p170_p3)   ;;  %v632_v12 = vld [vmem:[%s773_s1 + $0x28] sm:$0xff] (!%p170_p3)  }
   0xa   : > { %v633_v13 = vld [vmem:[%s773_s1 + $0x70] sm:$0xff] (!%p170_p3)   ;;  %v635_v15 = vld [vmem:[%s773_s1 + $0x78] sm:$0xff] (!%p170_p3)   ;;  %v562_v20 = vld [vmem:[%s774_s2] ss:$0 sm:$0xff] (!%p170_p3) }
   0xb   : > { %v634_v14 = vld [vmem:[%s773_s1 + $0x30] sm:$0xff] (!%p170_p3)   ;;  %v636_v16 = vld [vmem:[%s773_s1 + $0x38] sm:$0xff] (!%p170_p3)  }
   0xc   : > { %578 = vmatpush3.bf16.msra.mxu0 (!%p170_p3), %v624_v3 }
   0xd   : > { %579 = vmatprep.subr.bf16.mxu0 (!%p170_p3), %v625_v4 }
   0xe   : > { %s781_s18 = smov (!%p205_p4, %s539_s18), 3 }
   0xf   : > { %s567_s6 = sshll.u32 %s781_s18, 3  ;;  %s543_s5 = sshll.u32 %s781_s18, 2 }
  0x10   : > { %580 = vmatpush3.bf16.msra.mxu0 %v626_v5  ;;  %s212_s11 = scalar_lea.vmem %s772_s0, %s567_s6  ;;  %s225_s8 = scalar_lea.vmem %s775_s3, %s543_s5 }
  0x11   : > { %581 = vmatprep.subr.bf16.mxu0 %v627_v6  ;;  %v639_v11 = vld [vmem:[%s212_s11 + $0x4] ss:$8 sps:$4 sm:$0xff]   ;;  %v637_v17 = vld [vmem:[%s212_s11] ss:$8 sps:$4 sm:$0xff]  }
  0x12   : > { %408 = vmatprep.mubr.bf16.mxu0 %v639_v11 }
  0x14   : > { %582 = vmatpush3.bf16.msra.mxu0 %v628_v7 }
  0x15   : > { %583 = vmatprep.subr.bf16.mxu0 %v629_v8 }
  0x18   : > { %584 = vmatpush3.bf16.msra.mxu0 %v630_v9 }
  0x19   : > { %585 = vmatprep.subr.bf16.mxu0 %v631_v10 }
  0x1c   : > { %586 = vmatpush3.bf16.msra.mxu0 %v632_v12 }
  0x1d   : > { %587 = vmatprep.subr.bf16.mxu0 %v633_v13 }
  0x20   : > { %588 = vmatpush3.bf16.msra.mxu0 %v634_v14 }
  0x21   : > { %589 = vmatprep.subr.bf16.mxu0 %v635_v15 }
  0x24   : > { %590 = vmatpush3.bf16.msra.mxu0 %v636_v16 }
  0x27   : > { %409 = vmatmul.mubr.bf16.vlgmr.msra.gmra.mrb[0].mxu0 %v637_v17 }
  0xfa   : > { %v591_v18 = vpop.f32.mrb[0].mxu0 }
  0xfb   : > { %v592_v19 = vpop.f32.mrb[1].mxu0 }
  0xfc   : > { %v593_v21 = vadd.f32 %v592_v19, %v591_v18  ;;  %v594_v22 = vpop.f32.mrb[2].mxu0 }
  0xfd   : > { %v595_v23 = vpop.f32.mrb[3].mxu0 }
  0xfe   : > { %v433_v24 = vadd.f32 %v593_v21, %v562_v20  ;;  %v596_v25 = vadd.f32 %v595_v23, %v594_v22 }
 0x100   : > { %v434_v26 = vadd.f32 %v596_v25, %v562_v20  ;;  %v435_v27 = vmax.f32 %v433_v24, 0.0 }
 0x102   : > { %v436_v28 = vmax.f32 %v434_v26, 0.0 }
 0x104   : > { %v573_v29 = vpack.c.bf16 %v436_v28, %v435_v27 }
 0x106   : > { %574 = vst [vmem:[%s225_s8] sm:$0xff] %v573_v29  }
 0x107 PF: > { %s13_s14 = sadd.s32 1, %s662_s14   ;;  %s776_s12 = smov %s658_s13 }
 0x108   : > { %p10_p5 = scmp.ge.s32.totalorder %s13_s14, 4   ;;  %s777_s13 = smov %s779_s15 }
 0x10a   :  { %12 = sbr.rel (!%p10_p5) target bundleno = 2 (0x2), region = 73 }

// kernel: resnet_forward.26
= control target key start
LH: loop header
LB: loop body
LE: loop exit
PB: predicated region body
PF: predicated region fallthrough
CT: control target
= control target key end

     0   :  { %s762_s15 = smov 0   ;;  %s764_s16 = smov 0   ;;  %s853_s0 = inlined_call_operand.vmem [shape: bf16[32,256], index: 0, kind: input, shape index: {}]   ;;  %s854_s1 = inlined_call_operand.vmem [shape: bf16[256,128], index: 1, kind: input, shape index: {}]   ;;  %s855_s2 = inlined_call_operand.vmem [shape: f32[1,128], index: 2, kind: input, shape index: {}]   ;;  %s856_s3 = inlined_call_operand.vmem [shape: bf16[32,128], index: 3, kind: input, shape index: {}]   ;;  %s857_s4 = inlined_call_operand.vmem [shape: bf16[32,128], index: 4, kind: output, shape index: {}]  }
   0x1   :  { %s766_s17 = smov 0  }
   0x2 LB: > { %s26_s18 = sadd.s32 1, %s731_s16  ;;  %p605_p0 = scmp.ge.s32.totalorder %s735_s17, 1  ;;  %s735_s17 = sphi %s766_s17, %s14_s17   ;;  %s731_s16 = sphi %s764_s16, %s859_s16   ;;  %s727_s15 = sphi %s762_s15, %s858_s15  }
   0x3   : > { %p28_p1 = scmp.ge.s32.totalorder %s26_s18, 2  ;;  %p205_p2 = scmp.lt.s32.totalorder %s735_s17, 3 }
   0x5   : > { %s861_s18 = smov (%p28_p1, %s26_s18), 0  ;;  %p206_p3 = pnand %p605_p0, %p205_p2 }
   0x6   : > { %v694_v0 = vld [vmem:[%s854_s1 + $0x40] sm:$0xff] (!%p206_p3)   ;;  %s606_s21 = sshll.u32 (!%p206_p3), %s727_s15, 1  ;;  %v696_v2 = vld [vmem:[%s854_s1 + $0x48] sm:$0xff] (!%p206_p3)   ;;  %v698_v4 = vld [vmem:[%s854_s1 + $0x50] sm:$0xff] (!%p206_p3)  }
   0x7   : > { %209 = sbr.rel (%p206_p3) target bundleno = 265 (0x109), region = 36  ;;  %v695_v1 = vld [vmem:[%s854_s1] sm:$0xff] (!%p206_p3)   ;;  %648 = vmatprep.subr.bf16.mxu0 (!%p206_p3), %v694_v0  ;;  %v697_v3 = vld [vmem:[%s854_s1 + $0x8] sm:$0xff] (!%p206_p3)   ;;  %p248_p4 = scmp.lt.s32.totalorder (!%p206_p3), %s606_s21, 3  ;;  %v699_v5 = vld [vmem:[%s854_s1 + $0x10] sm:$0xff] (!%p206_p3)  }
   0x8   : > { %649 = vmatpush3.bf16.msra.mxu0 (!%p206_p3), %v695_v1  ;;  %v700_v6 = vld [vmem:[%s854_s1 + $0x58] sm:$0xff] (!%p206_p3)   ;;  %v702_v8 = vld [vmem:[%s854_s1 + $0x60] sm:$0xff] (!%p206_p3)   ;;  %v704_v10 = vld [vmem:[%s854_s1 + $0x68] sm:$0xff] (!%p206_p3)  }
   0x9   : > { %650 = vmatprep.subr.bf16.mxu0 (!%p206_p3), %v696_v2  ;;  %v701_v7 = vld [vmem:[%s854_s1 + $0x18] sm:$0xff] (!%p206_p3)   ;;  %v703_v9 = vld [vmem:[%s854_s1 + $0x20] sm:$0xff] (!%p206_p3)   ;;  %v705_v12 = vld [vmem:[%s854_s1 + $0x28] sm:$0xff] (!%p206_p3)  }
   0xa   : > { %v706_v13 = vld [vmem:[%s854_s1 + $0x70] sm:$0xff] (!%p206_p3)   ;;  %v708_v15 = vld [vmem:[%s854_s1 + $0x78] sm:$0xff] (!%p206_p3)   ;;  %v631_v21 = vld [vmem:[%s855_s2] ss:$0 sm:$0xff] (!%p206_p3) }
   0xb   : > { %v707_v14 = vld [vmem:[%s854_s1 + $0x30] sm:$0xff] (!%p206_p3)   ;;  %v709_v16 = vld [vmem:[%s854_s1 + $0x38] sm:$0xff] (!%p206_p3)  }
   0xc   : > { %651 = vmatpush3.bf16.msra.mxu0 (!%p206_p3), %v697_v3 }
   0xd   : > { %652 = vmatprep.subr.bf16.mxu0 (!%p206_p3), %v698_v4 }
   0xe   : > { %s863_s21 = smov (!%p248_p4, %s606_s21), 3 }
   0xf   : > { %s636_s10 = sshll.u32 %s863_s21, 3  ;;  %s610_s8 = sshll.u32 %s863_s21, 2 }
  0x10   : > { %653 = vmatpush3.bf16.msra.mxu0 %v699_v5  ;;  %s255_s15 = scalar_lea.vmem %s853_s0, %s636_s10  ;;  %s268_s11 = scalar_lea.vmem %s856_s3, %s610_s8 }
  0x11   : > { %654 = vmatprep.subr.bf16.mxu0 %v700_v6  ;;  %v712_v11 = vld [vmem:[%s255_s15 + $0x4] ss:$8 sps:$4 sm:$0xff]   ;;  %v710_v17 = vld [vmem:[%s255_s15] ss:$8 sps:$4 sm:$0xff]   ;;  %s274_s15 = scalar_lea.vmem %s857_s4, %s610_s8 }
  0x12   : > { %457 = vmatprep.mubr.bf16.mxu0 %v712_v11  ;;  %v640_v18 = vld [vmem:[%s268_s11] sm:$0xff]  }
  0x13   : > { %v641_v23 = vunpack.c.l.bf16 %v640_v18  ;;  %v642_v28 = vunpack.c.h.bf16 %v640_v18 }
  0x14   : > { %655 = vmatpush3.bf16.msra.mxu0 %v701_v7 }
  0x15   : > { %656 = vmatprep.subr.bf16.mxu0 %v702_v8 }
  0x18   : > { %657 = vmatpush3.bf16.msra.mxu0 %v703_v9 }
  0x19   : > { %658 = vmatprep.subr.bf16.mxu0 %v704_v10 }
  0x1c   : > { %659 = vmatpush3.bf16.msra.mxu0 %v705_v12 }
  0x1d   : > { %660 = vmatprep.subr.bf16.mxu0 %v706_v13 }
  0x20   : > { %661 = vmatpush3.bf16.msra.mxu0 %v707_v14 }
  0x21   : > { %662 = vmatprep.subr.bf16.mxu0 %v708_v15 }
  0x24   : > { %663 = vmatpush3.bf16.msra.mxu0 %v709_v16 }
  0x27   : > { %458 = vmatmul.mubr.bf16.vlgmr.msra.gmra.mrb[0].mxu0 %v710_v17 }
  0xfa   : > { %v664_v19 = vpop.f32.mrb[0].mxu0 }
  0xfb   : > { %v665_v20 = vpop.f32.mrb[1].mxu0 }
  0xfc   : > { %v666_v22 = vadd.f32 %v665_v20, %v664_v19  ;;  %v667_v24 = vpop.f32.mrb[2].mxu0 }
  0xfd   : > { %v668_v25 = vpop.f32.mrb[3].mxu0 }
  0xfe   : > { %v482_v26 = vadd.f32 %v666_v22, %v631_v21  ;;  %v669_v27 = vadd.f32 %v668_v25, %v667_v24 }
 0x100   : > { %v488_v29 = vadd.f32 %v641_v23, %v482_v26  ;;  %v483_v30 = vadd.f32 %v669_v27, %v631_v21 }
 0x102   : > { %v489_v31 = vadd.f32 %v642_v28, %v483_v30  ;;  %v490_v32 = vmax.f32 %v488_v29, 0.0 }
 0x104   : > { %v491_v33 = vmax.f32 %v489_v31, 0.0 }
 0x106   : > { %v646_v34 = vpack.c.bf16 %v491_v33, %v490_v32 }
 0x108   : > { %647 = vst [vmem:[%s274_s15] sm:$0xff] %v646_v34  }
 0x109 PF: > { %s14_s17 = sadd.s32 1, %s735_s17   ;;  %s858_s15 = smov %s731_s16 }
 0x10a   : > { %p11_p5 = scmp.ge.s32.totalorder %s14_s17, 4   ;;  %s859_s16 = smov %s861_s18 }
 0x10c   :  { %13 = sbr.rel (!%p11_p5) target bundleno = 2 (0x2), region = 80 }

// kernel: resnet_forward.29
= control target key start
LH: loop header
LB: loop body
LE: loop exit
PB: predicated region body
PF: predicated region fallthrough
CT: control target
= control target key end

     0   :  { %v290_v34 = vlaneseq  ;;  %s555_s1 = inlined_call_operand.vmem [shape: bf16[256,256], index: 1, kind: input, shape index: {}]   ;;  %s556_s0 = inlined_call_operand.vmem [shape: bf16[16,256], index: 0, kind: input, shape index: {}]   ;;  %s557_s2 = inlined_call_operand.vmem [shape: f32[1,256], index: 2, kind: input, shape index: {}]   ;;  %s558_s3 = inlined_call_operand.vmem [shape: bf16[16,256], index: 3, kind: output, shape index: {}]  }
   0x1   :  { %v373_v0 = vld [vmem:[%s555_s1 + $0x4] ss:$8 sps:$4 sm:$0xff]   ;;  %v375_v1 = vld [vmem:[%s555_s1] ss:$8 sps:$4 sm:$0xff]   ;;  %v376_v2 = vld [vmem:[%s555_s1 + $0x14] ss:$8 sps:$4 sm:$0xff]  }
   0x2   :  { %230 = vmatprep.subr.bf16.mxu0 %v373_v0  ;;  %v378_v3 = vld [vmem:[%s555_s1 + $0x10] ss:$8 sps:$4 sm:$0xff]   ;;  %v379_v4 = vld [vmem:[%s555_s1 + $0x24] ss:$8 sps:$4 sm:$0xff]   ;;  %v381_v5 = vld [vmem:[%s555_s1 + $0x20] ss:$8 sps:$4 sm:$0xff]  }
   0x3   :  { %231 = vmatpush1.bf16.msra.mxu0 %v375_v1  ;;  %v382_v6 = vld [vmem:[%s555_s1 + $0x34] ss:$8 sps:$4 sm:$0xff]   ;;  %v384_v7 = vld [vmem:[%s555_s1 + $0x30] ss:$8 sps:$4 sm:$0xff]   ;;  %v385_v8 = vld [vmem:[%s555_s1 + $0x44] ss:$8 sps:$4 sm:$0xff]  }
   0x4   :  { %232 = vmatprep.subr.bf16.mxu0 %v376_v2  ;;  %v387_v9 = vld [vmem:[%s555_s1 + $0x40] ss:$8 sps:$4 sm:$0xff]   ;;  %v388_v10 = vld [vmem:[%s555_s1 + $0x54] ss:$8 sps:$4 sm:$0xff]   ;;  %v390_v11 = vld [vmem:[%s555_s1 + $0x50] ss:$8 sps:$4 sm:$0xff]  }
   0x5   :  { %v391_v12 = vld [vmem:[%s555_s1 + $0x64] ss:$8 sps:$4 sm:$0xff]   ;;  %v393_v14 = vld [vmem:[%s555_s1 + $0x60] ss:$8 sps:$4 sm:$0xff]   ;;  %v394_v15 = vld [vmem:[%s555_s1 + $0x74] ss:$8 sps:$4 sm:$0xff]  }
   0x6   :  { %v423_v13 = vld [vmem:[%s556_s0 + $0x4] ss:$8 sps:$4 sm:$0xff]   ;;  %v396_v16 = vld [vmem:[%s555_s1 + $0x70] ss:$8 sps:$4 sm:$0xff]   ;;  %v399_v18 = vld [vmem:[%s555_s1 + $0x80] ss:$8 sps:$4 sm:$0xff]  }
   0x7   :  { %233 = vmatpush1.bf16.msra.mxu0 %v378_v3  ;;  %262 = vmatprep.mubr.bf16.mxu0 %v423_v13  ;;  %v397_v17 = vld [vmem:[%s555_s1 + $0x84] ss:$8 sps:$4 sm:$0xff]   ;;  %v400_v19 = vld [vmem:[%s555_s1 + $0x94] ss:$8 sps:$4 sm:$0xff]   ;;  %v402_v20 = vld [vmem:[%s555_s1 + $0x90] ss:$8 sps:$4 sm:$0xff]  }
   0x8   :  { %234 = vmatprep.subr.bf16.mxu0 %v379_v4  ;;  %v403_v21 = vld [vmem:[%s555_s1 + $0xa4] ss:$8 sps:$4 sm:$0xff]   ;;  %v405_v22 = vld [vmem:[%s555_s1 + $0xa0] ss:$8 sps:$4 sm:$0xff]   ;;  %v406_v23 = vld [vmem:[%s555_s1 + $0xb4] ss:$8 sps:$4 sm:$0xff]  }
   0x9   :  { %v408_v24 = vld [vmem:[%s555_s1 + $0xb0] ss:$8 sps:$4 sm:$0xff]   ;;  %v409_v25 = vld [vmem:[%s555_s1 + $0xc4] ss:$8 sps:$4 sm:$0xff]   ;;  %v411_v26 = vld [vmem:[%s555_s1 + $0xc0] ss:$8 sps:$4 sm:$0xff]  }
   0xa   :  { %v412_v27 = vld [vmem:[%s555_s1 + $0xd4] ss:$8 sps:$4 sm:$0xff]   ;;  %v414_v28 = vld [vmem:[%s555_s1 + $0xd0] ss:$8 sps:$4 sm:$0xff]   ;;  %v415_v29 = vld [vmem:[%s555_s1 + $0xe4] ss:$8 sps:$4 sm:$0xff]  }
   0xb   :  { %235 = vmatpush1.bf16.msra.mxu0 %v381_v5  ;;  %v417_v30 = vld [vmem:[%s555_s1 + $0xe0] ss:$8 sps:$4 sm:$0xff]   ;;  %v418_v31 = vld [vmem:[%s555_s1 + $0xf4] ss:$8 sps:$4 sm:$0xff]   ;;  %v420_v32 = vld [vmem:[%s555_s1 + $0xf0] ss:$8 sps:$4 sm:$0xff]  }
   0xc   :  { %236 = vmatprep.subr.bf16.mxu0 %v382_v6  ;;  %v421_v33 = vld [vmem:[%s556_s0] ss:$8 sps:$4 sm:$0xff]   ;;  %v291_v35 = vshrl.u32 %v290_v34, 7 }
   0xd   :  { %v288_v37 = vld [vmem:[%s557_s2] sm:$0x3] }
   0xe   :  { %v292_v36 = vsub.s32 0, %v291_v35  ;;  %v296_v38 = vsub.s32 1, %v291_v35 }
   0xf   :  { %237 = vmatpush1.bf16.msra.mxu0 %v384_v7 }
  0x10   :  { %238 = vmatprep.subr.bf16.mxu0 %v385_v8  ;;  %v293_v39 = vrot.slane %v288_v37, %v292_v36  ;;  %v297_v40 = vrot.slane %v288_v37, %v296_v38 }
  0x13   :  { %239 = vmatpush1.bf16.msra.mxu0 %v387_v9 }
  0x14   :  { %240 = vmatprep.subr.bf16.mxu0 %v388_v10 }
  0x17   :  { %241 = vmatpush1.bf16.msra.mxu0 %v390_v11 }
  0x18   :  { %242 = vmatprep.subr.bf16.mxu0 %v391_v12 }
  0x1b   :  { %243 = vmatpush1.bf16.msra.mxu0 %v393_v14 }
  0x1c   :  { %244 = vmatprep.subr.bf16.mxu0 %v394_v15 }
  0x1f   :  { %245 = vmatpush1.bf16.msra.mxu0 %v396_v16 }
  0x20   :  { %246 = vmatprep.subr.bf16.mxu0 %v397_v17 }
  0x23   :  { %247 = vmatpush1.bf16.msra.mxu0 %v399_v18 }
  0x24   :  { %248 = vmatprep.subr.bf16.mxu0 %v400_v19 }
  0x27   :  { %249 = vmatpush1.bf16.msra.mxu0 %v402_v20 }
  0x28   :  { %250 = vmatprep.subr.bf16.mxu0 %v403_v21 }
  0x2b   :  { %251 = vmatpush1.bf16.msra.mxu0 %v405_v22 }
  0x2c   :  { %252 = vmatprep.subr.bf16.mxu0 %v406_v23 }
  0x2f   :  { %253 = vmatpush1.bf16.msra.mxu0 %v408_v24 }
  0x30   :  { %254 = vmatprep.subr.bf16.mxu0 %v409_v25 }
  0x33   :  { %255 = vmatpush1.bf16.msra.mxu0 %v411_v26 }
  0x34   :  { %256 = vmatprep.subr.bf16.mxu0 %v412_v27 }
  0x37   :  { %257 = vmatpush1.bf16.msra.mxu0 %v414_v28 }
  0x38   :  { %258 = vmatprep.subr.bf16.mxu0 %v415_v29 }
  0x3b   :  { %259 = vmatpush1.bf16.msra.mxu0 %v417_v30 }
  0x3c   :  { %260 = vmatprep.subr.bf16.mxu0 %v418_v31 }
  0x3f   :  { %261 = vmatpush1.bf16.msra.mxu0 %v420_v32 }
  0x42   :  { %263 = vmatmul.mubr.bf16.vlgmr.msra.gmra.mrb[0].mxu0 %v421_v33 }
 0x115   :  { %v264_v41 = vpop.f32.mrb[0].mxu0 }
 0x116   :  { %v300_v42 = vadd.f32 %v293_v39, %v264_v41  ;;  %v266_v43 = vpop.f32.mrb[1].mxu0 }
 0x117   :  { %v301_v44 = vadd.f32 %v297_v40, %v266_v43  ;;  %v268_v45 = vpop.f32.mrb[2].mxu0 }
 0x118   :  { %v309_v46 = vmax.f32 %v300_v42, 0.0  ;;  %v302_v47 = vadd.f32 %v293_v39, %v268_v45  ;;  %v270_v48 = vpop.f32.mrb[3].mxu0 }
 0x119   :  { %v303_v49 = vadd.f32 %v297_v40, %v270_v48 }
 0x11a   :  { %v371_v50 = vpack.c.bf16 %v301_v44, %v309_v46  ;;  %v311_v51 = vmax.f32 %v302_v47, 0.0 }
 0x11c   :  { %329 = vst [vmem:[%s558_s3] sm:$0xff] %v371_v50  ;;  %v372_v52 = vpack.c.bf16 %v303_v49, %v311_v51 }
 0x11e   :  { %330 = vst [vmem:[%s558_s3 + $0x8] sm:$0xff] %v372_v52 }

// kernel: resnet_forward.30
= control target key start
LH: loop header
LB: loop body
LE: loop exit
PB: predicated region body
PF: predicated region fallthrough
CT: control target
= control target key end

     0   :  { %v482_v1 = vmov 0.0   ;;  %vm483_vm0 = vmmov 0   ;;  %s599_s1 = inlined_call_operand.vmem [shape: bf16[384,128], index: 1, kind: input, shape index: {}]   ;;  %s600_s0 = inlined_call_operand.vmem [shape: bf16[16,384], index: 0, kind: input, shape index: {}]   ;;  %s601_s3 = inlined_call_operand.vmem [shape: bf16[16,128], index: 3, kind: input, shape index: {}]   ;;  %s602_s2 = inlined_call_operand.vmem [shape: f32[1,128], index: 2, kind: input, shape index: {}]   ;;  %s603_s4 = inlined_call_operand.vmem [shape: bf16[16,128], index: 4, kind: output, shape index: {}]  }
   0x1   :  { %v454_v0 = vld [vmem:[%s599_s1 + $0x40] sm:$0xff]   ;;  %432 = vmatprep.subr.bf16.mxu1 %v482_v1  ;;  %448 = vmatprep.mubr.msk.bf16.mxu1 %vm483_vm0, %v482_v1  ;;  %v457_v4 = vld [vmem:[%s599_s1 + $0x48] sm:$0xff]   ;;  %v460_v7 = vld [vmem:[%s599_s1 + $0x50] sm:$0xff]  }
   0x2   :  { %v455_v2 = vld [vmem:[%s599_s1] sm:$0xff]   ;;  %401 = vmatprep.subr.bf16.mxu0 %v454_v0  ;;  %v458_v5 = vld [vmem:[%s599_s1 + $0x8] sm:$0xff]   ;;  %v461_v8 = vld [vmem:[%s599_s1 + $0x10] sm:$0xff]  }
   0x3   :  { %v456_v3 = vld [vmem:[%s599_s1 + $0x80] sm:$0xff]   ;;  %402 = vmatpush3.bf16.msra.mxu0 %v455_v2  ;;  %v459_v6 = vld [vmem:[%s599_s1 + $0x88] sm:$0xff]   ;;  %v462_v9 = vld [vmem:[%s599_s1 + $0x90] sm:$0xff]  }
   0x4   :  { %433 = vmatpush3.bf16.msra.mxu1 %v456_v3  ;;  %403 = vmatprep.subr.bf16.mxu0 %v457_v4  ;;  %v463_v10 = vld [vmem:[%s599_s1 + $0x58] sm:$0xff]   ;;  %v466_v13 = vld [vmem:[%s599_s1 + $0x60] sm:$0xff]   ;;  %v469_v16 = vld [vmem:[%s599_s1 + $0x68] sm:$0xff]  }
   0x5   :  { %434 = vmatprep.subr.bf16.mxu1 %v482_v1  ;;  %v464_v11 = vld [vmem:[%s599_s1 + $0x18] sm:$0xff]   ;;  %v467_v14 = vld [vmem:[%s599_s1 + $0x20] sm:$0xff]   ;;  %v470_v17 = vld [vmem:[%s599_s1 + $0x28] sm:$0xff]  }
   0x6   :  { %v465_v12 = vld [vmem:[%s599_s1 + $0x98] sm:$0xff]   ;;  %v468_v15 = vld [vmem:[%s599_s1 + $0xa0] sm:$0xff]   ;;  %v471_v18 = vld [vmem:[%s599_s1 + $0xa8] sm:$0xff]  }
   0x7   :  { %404 = vmatpush3.bf16.msra.mxu0 %v458_v5  ;;  %v472_v19 = vld [vmem:[%s599_s1 + $0x70] sm:$0xff]   ;;  %v475_v22 = vld [vmem:[%s599_s1 + $0x78] sm:$0xff]   ;;  %v478_v26 = vld [vmem:[%s600_s0] ss:$12 sps:$4 sm:$0xff]  }
   0x8   :  { %435 = vmatpush3.bf16.msra.mxu1 %v459_v6  ;;  %405 = vmatprep.subr.bf16.mxu0 %v460_v7  ;;  %v473_v20 = vld [vmem:[%s599_s1 + $0x30] sm:$0xff]   ;;  %v476_v24 = vld [vmem:[%s599_s1 + $0x38] sm:$0xff]   ;;  %v393_v31 = vld [vmem:[%s601_s3] sm:$0xff]  }
   0x9   :  { %436 = vmatprep.subr.bf16.mxu1 %v482_v1  ;;  %v474_v21 = vld [vmem:[%s599_s1 + $0xb0] sm:$0xff]   ;;  %v477_v25 = vld [vmem:[%s599_s1 + $0xb8] sm:$0xff]   ;;  %v387_v35 = vld [vmem:[%s602_s2] ss:$0 sm:$0xff]  ;;  %v394_v39 = vunpack.c.l.bf16 %v393_v31  ;;  %v395_v44 = vunpack.c.h.bf16 %v393_v31 }
   0xa   :  { %v480_v23 = vld [vmem:[%s600_s0 + $0x4] ss:$12 sps:$4 sm:$0xff]   ;;  %v481_v27 = vld [vmem:[%s600_s0 + $0x8] ss:$12 sps:$4 sm:$0xff]  }
   0xb   :  { %406 = vmatpush3.bf16.msra.mxu0 %v461_v8  ;;  %270 = vmatprep.mubr.bf16.mxu0 %v480_v23 }
   0xc   :  { %437 = vmatpush3.bf16.msra.mxu1 %v462_v9  ;;  %407 = vmatprep.subr.bf16.mxu0 %v463_v10 }
   0xd   :  { %438 = vmatprep.subr.bf16.mxu1 %v482_v1 }
   0xf   :  { %408 = vmatpush3.bf16.msra.mxu0 %v464_v11 }
  0x10   :  { %439 = vmatpush3.bf16.msra.mxu1 %v465_v12  ;;  %409 = vmatprep.subr.bf16.mxu0 %v466_v13 }
  0x11   :  { %440 = vmatprep.subr.bf16.mxu1 %v482_v1 }
  0x13   :  { %410 = vmatpush3.bf16.msra.mxu0 %v467_v14 }
  0x14   :  { %441 = vmatpush3.bf16.msra.mxu1 %v468_v15  ;;  %411 = vmatprep.subr.bf16.mxu0 %v469_v16 }
  0x15   :  { %442 = vmatprep.subr.bf16.mxu1 %v482_v1 }
  0x17   :  { %412 = vmatpush3.bf16.msra.mxu0 %v470_v17 }
  0x18   :  { %443 = vmatpush3.bf16.msra.mxu1 %v471_v18  ;;  %413 = vmatprep.subr.bf16.mxu0 %v472_v19 }
  0x19   :  { %444 = vmatprep.subr.bf16.mxu1 %v482_v1 }
  0x1b   :  { %414 = vmatpush3.bf16.msra.mxu0 %v473_v20 }
  0x1c   :  { %445 = vmatpush3.bf16.msra.mxu1 %v474_v21  ;;  %415 = vmatprep.subr.bf16.mxu0 %v475_v22 }
  0x1d   :  { %446 = vmatprep.subr.bf16.mxu1 %v482_v1 }
  0x1f   :  { %416 = vmatpush3.bf16.msra.mxu0 %v476_v24 }
  0x20   :  { %447 = vmatpush3.bf16.msra.mxu1 %v477_v25 }
  0x22   :  { %271 = vmatmul.mubr.bf16.vlgmr.msra.gmra.mrb[0].mxu0 %v478_v26 }
  0x23   :  { %449 = vmatmul.mubr.bf16.vlgmr.msra.gmra.mrb[0].mxu1 %v481_v27 }
  0xf5   :  { %v417_v28 = vpop.f32.mrb[0].mxu0 }
  0xf6   :  { %v313_v29 = vpop.f32.mrb[0].mxu1  ;;  %v418_v30 = vpop.f32.mrb[1].mxu0 }
  0xf7   :  { %v419_v32 = vadd.f32 %v418_v30, %v417_v28  ;;  %v450_v33 = vpop.f32.mrb[1].mxu1  ;;  %v420_v34 = vpop.f32.mrb[2].mxu0 }
  0xf8   :  { %v316_v36 = vpop.f32.mrb[2].mxu1  ;;  %v421_v37 = vpop.f32.mrb[3].mxu0 }
  0xf9   :  { %v314_v38 = vadd.f32 %v419_v32, %v313_v29  ;;  %v422_v40 = vadd.f32 %v421_v37, %v420_v34  ;;  %v451_v41 = vpop.f32.mrb[3].mxu1 }
  0xfb   :  { %v336_v42 = vadd.f32 %v387_v35, %v314_v38  ;;  %v317_v43 = vadd.f32 %v422_v40, %v316_v36 }
  0xfd   :  { %v342_v45 = vadd.f32 %v394_v39, %v336_v42  ;;  %v337_v46 = vadd.f32 %v387_v35, %v317_v43 }
  0xff   :  { %v343_v47 = vadd.f32 %v395_v44, %v337_v46  ;;  %v344_v48 = vmax.f32 %v342_v45, 0.0 }
 0x101   :  { %v345_v49 = vmax.f32 %v343_v47, 0.0 }
 0x103   :  { %v399_v50 = vpack.c.bf16 %v345_v49, %v344_v48 }
 0x105   :  { %400 = vst [vmem:[%s603_s4] sm:$0xff] %v399_v50  }

// kernel: resnet_forward.31
= control target key start
LH: loop header
LB: loop body
LE: loop exit
PB: predicated region body
PF: predicated region fallthrough
CT: control target
= control target key end

     0   :  { %v469_v1 = vmov 0.0   ;;  %vm470_vm0 = vmmov 0   ;;  %s578_s1 = inlined_call_operand.vmem [shape: bf16[384,128], index: 1, kind: input, shape index: {}]   ;;  %s579_s0 = inlined_call_operand.vmem [shape: bf16[16,384], index: 0, kind: input, shape index: {}]   ;;  %s580_s2 = inlined_call_operand.vmem [shape: f32[1,128], index: 2, kind: input, shape index: {}]   ;;  %s581_s3 = inlined_call_operand.vmem [shape: bf16[16,128], index: 3, kind: output, shape index: {}]  }
   0x1   :  { %v441_v0 = vld [vmem:[%s578_s1 + $0x40] sm:$0xff]   ;;  %419 = vmatprep.subr.bf16.mxu1 %v469_v1  ;;  %435 = vmatprep.mubr.msk.bf16.mxu1 %vm470_vm0, %v469_v1  ;;  %v444_v4 = vld [vmem:[%s578_s1 + $0x48] sm:$0xff]   ;;  %v447_v7 = vld [vmem:[%s578_s1 + $0x50] sm:$0xff]  }
   0x2   :  { %v442_v2 = vld [vmem:[%s578_s1] sm:$0xff]   ;;  %388 = vmatprep.subr.bf16.mxu0 %v441_v0  ;;  %v445_v5 = vld [vmem:[%s578_s1 + $0x8] sm:$0xff]   ;;  %v448_v8 = vld [vmem:[%s578_s1 + $0x10] sm:$0xff]  }
   0x3   :  { %v443_v3 = vld [vmem:[%s578_s1 + $0x80] sm:$0xff]   ;;  %389 = vmatpush3.bf16.msra.mxu0 %v442_v2  ;;  %v446_v6 = vld [vmem:[%s578_s1 + $0x88] sm:$0xff]   ;;  %v449_v9 = vld [vmem:[%s578_s1 + $0x90] sm:$0xff]  }
   0x4   :  { %420 = vmatpush3.bf16.msra.mxu1 %v443_v3  ;;  %390 = vmatprep.subr.bf16.mxu0 %v444_v4  ;;  %v450_v10 = vld [vmem:[%s578_s1 + $0x58] sm:$0xff]   ;;  %v453_v13 = vld [vmem:[%s578_s1 + $0x60] sm:$0xff]   ;;  %v456_v16 = vld [vmem:[%s578_s1 + $0x68] sm:$0xff]  }
   0x5   :  { %421 = vmatprep.subr.bf16.mxu1 %v469_v1  ;;  %v451_v11 = vld [vmem:[%s578_s1 + $0x18] sm:$0xff]   ;;  %v454_v14 = vld [vmem:[%s578_s1 + $0x20] sm:$0xff]   ;;  %v457_v17 = vld [vmem:[%s578_s1 + $0x28] sm:$0xff]  }
   0x6   :  { %v452_v12 = vld [vmem:[%s578_s1 + $0x98] sm:$0xff]   ;;  %v455_v15 = vld [vmem:[%s578_s1 + $0xa0] sm:$0xff]   ;;  %v458_v18 = vld [vmem:[%s578_s1 + $0xa8] sm:$0xff]  }
   0x7   :  { %391 = vmatpush3.bf16.msra.mxu0 %v445_v5  ;;  %v459_v19 = vld [vmem:[%s578_s1 + $0x70] sm:$0xff]   ;;  %v462_v22 = vld [vmem:[%s578_s1 + $0x78] sm:$0xff]   ;;  %v465_v26 = vld [vmem:[%s579_s0] ss:$12 sps:$4 sm:$0xff]  }
   0x8   :  { %422 = vmatpush3.bf16.msra.mxu1 %v446_v6  ;;  %392 = vmatprep.subr.bf16.mxu0 %v447_v7  ;;  %v460_v20 = vld [vmem:[%s578_s1 + $0x30] sm:$0xff]   ;;  %v463_v24 = vld [vmem:[%s578_s1 + $0x38] sm:$0xff]   ;;  %v378_v34 = vld [vmem:[%s580_s2] ss:$0 sm:$0xff] }
   0x9   :  { %423 = vmatprep.subr.bf16.mxu1 %v469_v1  ;;  %v461_v21 = vld [vmem:[%s578_s1 + $0xb0] sm:$0xff]   ;;  %v464_v25 = vld [vmem:[%s578_s1 + $0xb8] sm:$0xff]  }
   0xa   :  { %v467_v23 = vld [vmem:[%s579_s0 + $0x4] ss:$12 sps:$4 sm:$0xff]   ;;  %v468_v27 = vld [vmem:[%s579_s0 + $0x8] ss:$12 sps:$4 sm:$0xff]  }
   0xb   :  { %393 = vmatpush3.bf16.msra.mxu0 %v448_v8  ;;  %267 = vmatprep.mubr.bf16.mxu0 %v467_v23 }
   0xc   :  { %424 = vmatpush3.bf16.msra.mxu1 %v449_v9  ;;  %394 = vmatprep.subr.bf16.mxu0 %v450_v10 }
   0xd   :  { %425 = vmatprep.subr.bf16.mxu1 %v469_v1 }
   0xf   :  { %395 = vmatpush3.bf16.msra.mxu0 %v451_v11 }
  0x10   :  { %426 = vmatpush3.bf16.msra.mxu1 %v452_v12  ;;  %396 = vmatprep.subr.bf16.mxu0 %v453_v13 }
  0x11   :  { %427 = vmatprep.subr.bf16.mxu1 %v469_v1 }
  0x13   :  { %397 = vmatpush3.bf16.msra.mxu0 %v454_v14 }
  0x14   :  { %428 = vmatpush3.bf16.msra.mxu1 %v455_v15  ;;  %398 = vmatprep.subr.bf16.mxu0 %v456_v16 }
  0x15   :  { %429 = vmatprep.subr.bf16.mxu1 %v469_v1 }
  0x17   :  { %399 = vmatpush3.bf16.msra.mxu0 %v457_v17 }
  0x18   :  { %430 = vmatpush3.bf16.msra.mxu1 %v458_v18  ;;  %400 = vmatprep.subr.bf16.mxu0 %v459_v19 }
  0x19   :  { %431 = vmatprep.subr.bf16.mxu1 %v469_v1 }
  0x1b   :  { %401 = vmatpush3.bf16.msra.mxu0 %v460_v20 }
  0x1c   :  { %432 = vmatpush3.bf16.msra.mxu1 %v461_v21  ;;  %402 = vmatprep.subr.bf16.mxu0 %v462_v22 }
  0x1d   :  { %433 = vmatprep.subr.bf16.mxu1 %v469_v1 }
  0x1f   :  { %403 = vmatpush3.bf16.msra.mxu0 %v463_v24 }
  0x20   :  { %434 = vmatpush3.bf16.msra.mxu1 %v464_v25 }
  0x22   :  { %268 = vmatmul.mubr.bf16.vlgmr.msra.gmra.mrb[0].mxu0 %v465_v26 }
  0x23   :  { %436 = vmatmul.mubr.bf16.vlgmr.msra.gmra.mrb[0].mxu1 %v468_v27 }
  0xf5   :  { %v404_v28 = vpop.f32.mrb[0].mxu0 }
  0xf6   :  { %v310_v29 = vpop.f32.mrb[0].mxu1  ;;  %v405_v30 = vpop.f32.mrb[1].mxu0 }
  0xf7   :  { %v406_v31 = vadd.f32 %v405_v30, %v404_v28  ;;  %v437_v32 = vpop.f32.mrb[1].mxu1  ;;  %v407_v33 = vpop.f32.mrb[2].mxu0 }
  0xf8   :  { %v313_v35 = vpop.f32.mrb[2].mxu1  ;;  %v408_v36 = vpop.f32.mrb[3].mxu0 }
  0xf9   :  { %v311_v37 = vadd.f32 %v406_v31, %v310_v29  ;;  %v409_v38 = vadd.f32 %v408_v36, %v407_v33  ;;  %v438_v39 = vpop.f32.mrb[3].mxu1 }
  0xfb   :  { %v333_v40 = vadd.f32 %v378_v34, %v311_v37  ;;  %v314_v41 = vadd.f32 %v409_v38, %v313_v35 }
  0xfd   :  { %v334_v42 = vadd.f32 %v378_v34, %v314_v41  ;;  %v335_v43 = vmax.f32 %v333_v40, 0.0 }
  0xff   :  { %v336_v44 = vmax.f32 %v334_v42, 0.0 }
 0x101   :  { %v386_v45 = vpack.c.bf16 %v336_v44, %v335_v43 }
 0x103   :  { %387 = vst [vmem:[%s581_s3] sm:$0xff] %v386_v45  }

// kernel: resnet_forward.33
= control target key start
LH: loop header
LB: loop body
LE: loop exit
PB: predicated region body
PF: predicated region fallthrough
CT: control target
= control target key end

     0   :  { %v619_v1 = vmov 0   ;;  %v438_v56 = vlaneseq  ;;  %s802_s1 = inlined_call_operand.vmem [shape: bf16[384,256], index: 1, kind: input, shape index: {}]   ;;  %s803_s0 = inlined_call_operand.vmem [shape: bf16[16,384], index: 0, kind: input, shape index: {}]   ;;  %s804_s2 = inlined_call_operand.vmem [shape: f32[1,256], index: 2, kind: input, shape index: {}]   ;;  %s805_s3 = inlined_call_operand.vmem [shape: bf16[16,256], index: 3, kind: output, shape index: {}]  }
   0x1   :  { %v543_v0 = vld [vmem:[%s802_s1 + $0x4] ss:$8 sps:$4 sm:$0xff]   ;;  %410 = vmatprep.mubr.bf16.mxu0 %v619_v1  ;;  %v545_v2 = vld [vmem:[%s802_s1] ss:$8 sps:$4 sm:$0xff]   ;;  %v546_v3 = vld [vmem:[%s802_s1 + $0x14] ss:$8 sps:$4 sm:$0xff]  }
   0x2   :  { %335 = vmatprep.subr.bf16.mxu1 %v543_v0  ;;  %v548_v4 = vld [vmem:[%s802_s1 + $0x10] ss:$8 sps:$4 sm:$0xff]   ;;  %v549_v5 = vld [vmem:[%s802_s1 + $0x24] ss:$8 sps:$4 sm:$0xff]   ;;  %v551_v6 = vld [vmem:[%s802_s1 + $0x20] ss:$8 sps:$4 sm:$0xff]  }
   0x3   :  { %336 = vmatpush1.bf16.msra.mxu1 %v545_v2  ;;  %v552_v7 = vld [vmem:[%s802_s1 + $0x34] ss:$8 sps:$4 sm:$0xff]   ;;  %v554_v8 = vld [vmem:[%s802_s1 + $0x30] ss:$8 sps:$4 sm:$0xff]   ;;  %v567_v9 = vld [vmem:[%s802_s1 + $0x104] ss:$8 sps:$4 sm:$0xff]  }
   0x4   :  { %337 = vmatprep.subr.bf16.mxu1 %v546_v3  ;;  %v569_v10 = vld [vmem:[%s802_s1 + $0x100] ss:$8 sps:$4 sm:$0xff]   ;;  %v555_v11 = vld [vmem:[%s802_s1 + $0x44] ss:$8 sps:$4 sm:$0xff]   ;;  %378 = vmatprep.subr.bf16.mxu0 %v567_v9  ;;  %v573_v12 = vld [vmem:[%s802_s1 + $0x114] ss:$8 sps:$4 sm:$0xff]  }
   0x5   :  { %379 = vmatpush1.bf16.msra.mxu0 %v569_v10  ;;  %v575_v13 = vld [vmem:[%s802_s1 + $0x110] ss:$8 sps:$4 sm:$0xff]   ;;  %v557_v14 = vld [vmem:[%s802_s1 + $0x40] ss:$8 sps:$4 sm:$0xff]   ;;  %v558_v15 = vld [vmem:[%s802_s1 + $0x54] ss:$8 sps:$4 sm:$0xff]  }
   0x6   :  { %380 = vmatprep.subr.bf16.mxu0 %v573_v12  ;;  %v579_v16 = vld [vmem:[%s802_s1 + $0x124] ss:$8 sps:$4 sm:$0xff]   ;;  %v581_v17 = vld [vmem:[%s802_s1 + $0x120] ss:$8 sps:$4 sm:$0xff]   ;;  %v560_v18 = vld [vmem:[%s802_s1 + $0x50] ss:$8 sps:$4 sm:$0xff]  }
   0x7   :  { %338 = vmatpush1.bf16.msra.mxu1 %v548_v4  ;;  %v585_v19 = vld [vmem:[%s802_s1 + $0x134] ss:$8 sps:$4 sm:$0xff]   ;;  %v561_v20 = vld [vmem:[%s802_s1 + $0x64] ss:$8 sps:$4 sm:$0xff]   ;;  %v587_v21 = vld [vmem:[%s802_s1 + $0x130] ss:$8 sps:$4 sm:$0xff]  }
   0x8   :  { %339 = vmatprep.subr.bf16.mxu1 %v549_v5  ;;  %v563_v22 = vld [vmem:[%s802_s1 + $0x60] ss:$8 sps:$4 sm:$0xff]   ;;  %v591_v23 = vld [vmem:[%s802_s1 + $0x144] ss:$8 sps:$4 sm:$0xff]   ;;  %v564_v24 = vld [vmem:[%s802_s1 + $0x74] ss:$8 sps:$4 sm:$0xff]  }
   0x9   :  { %381 = vmatpush1.bf16.msra.mxu0 %v575_v13  ;;  %v593_v25 = vld [vmem:[%s802_s1 + $0x140] ss:$8 sps:$4 sm:$0xff]   ;;  %v566_v26 = vld [vmem:[%s802_s1 + $0x70] ss:$8 sps:$4 sm:$0xff]   ;;  %v597_v27 = vld [vmem:[%s802_s1 + $0x154] ss:$8 sps:$4 sm:$0xff]  }
   0xa   :  { %382 = vmatprep.subr.bf16.mxu0 %v579_v16  ;;  %v570_v28 = vld [vmem:[%s802_s1 + $0x84] ss:$8 sps:$4 sm:$0xff]   ;;  %v599_v29 = vld [vmem:[%s802_s1 + $0x150] ss:$8 sps:$4 sm:$0xff]   ;;  %v572_v30 = vld [vmem:[%s802_s1 + $0x80] ss:$8 sps:$4 sm:$0xff]  }
   0xb   :  { %340 = vmatpush1.bf16.msra.mxu1 %v551_v6  ;;  %v603_v31 = vld [vmem:[%s802_s1 + $0x164] ss:$8 sps:$4 sm:$0xff]   ;;  %v576_v32 = vld [vmem:[%s802_s1 + $0x94] ss:$8 sps:$4 sm:$0xff]   ;;  %v605_v33 = vld [vmem:[%s802_s1 + $0x160] ss:$8 sps:$4 sm:$0xff]  }
   0xc   :  { %341 = vmatprep.subr.bf16.mxu1 %v552_v7  ;;  %v618_v34 = vld [vmem:[%s803_s0 + $0x4] ss:$12 sps:$4 sm:$0xff]   ;;  %v609_v36 = vld [vmem:[%s802_s1 + $0x174] ss:$8 sps:$4 sm:$0xff]   ;;  %v584_v39 = vld [vmem:[%s802_s1 + $0xa0] ss:$8 sps:$4 sm:$0xff]  }
   0xd   :  { %383 = vmatpush1.bf16.msra.mxu0 %v581_v17  ;;  %v578_v35 = vld [vmem:[%s802_s1 + $0x90] ss:$8 sps:$4 sm:$0xff]   ;;  %v582_v37 = vld [vmem:[%s802_s1 + $0xa4] ss:$8 sps:$4 sm:$0xff]   ;;  %367 = vmatprep.mubr.bf16.mxu1 %v618_v34  ;;  %v588_v40 = vld [vmem:[%s802_s1 + $0xb4] ss:$8 sps:$4 sm:$0xff]  }
   0xe   :  { %384 = vmatprep.subr.bf16.mxu0 %v585_v19  ;;  %v611_v38 = vld [vmem:[%s802_s1 + $0x170] ss:$8 sps:$4 sm:$0xff]   ;;  %v615_v41 = vld [vmem:[%s803_s0 + $0x8] ss:$12 sps:$4 sm:$0xff]   ;;  %v594_v43 = vld [vmem:[%s802_s1 + $0xc4] ss:$8 sps:$4 sm:$0xff]  }
   0xf   :  { %342 = vmatpush1.bf16.msra.mxu1 %v554_v8  ;;  %v590_v42 = vld [vmem:[%s802_s1 + $0xb0] ss:$8 sps:$4 sm:$0xff]   ;;  %v596_v44 = vld [vmem:[%s802_s1 + $0xc0] ss:$8 sps:$4 sm:$0xff]   ;;  %v600_v45 = vld [vmem:[%s802_s1 + $0xd4] ss:$8 sps:$4 sm:$0xff]  }
  0x10   :  { %343 = vmatprep.subr.bf16.mxu1 %v555_v11  ;;  %v602_v46 = vld [vmem:[%s802_s1 + $0xd0] ss:$8 sps:$4 sm:$0xff]   ;;  %v606_v47 = vld [vmem:[%s802_s1 + $0xe4] ss:$8 sps:$4 sm:$0xff]   ;;  %v608_v48 = vld [vmem:[%s802_s1 + $0xe0] ss:$8 sps:$4 sm:$0xff]  }
  0x11   :  { %385 = vmatpush1.bf16.msra.mxu0 %v587_v21  ;;  %v612_v49 = vld [vmem:[%s802_s1 + $0xf4] ss:$8 sps:$4 sm:$0xff]   ;;  %v614_v50 = vld [vmem:[%s802_s1 + $0xf0] ss:$8 sps:$4 sm:$0xff]   ;;  %v616_v51 = vld [vmem:[%s803_s0] ss:$12 sps:$4 sm:$0xff]  }
  0x12   :  { %386 = vmatprep.subr.bf16.mxu0 %v591_v23  ;;  %v439_v57 = vshrl.u32 %v438_v56, 7  ;;  %v436_v59 = vld [vmem:[%s804_s2] sm:$0x3] }
  0x13   :  { %344 = vmatpush1.bf16.msra.mxu1 %v557_v14 }
  0x14   :  { %345 = vmatprep.subr.bf16.mxu1 %v558_v15  ;;  %v440_v58 = vsub.s32 0, %v439_v57  ;;  %v444_v60 = vsub.s32 1, %v439_v57 }
  0x15   :  { %387 = vmatpush1.bf16.msra.mxu0 %v593_v25 }
  0x16   :  { %388 = vmatprep.subr.bf16.mxu0 %v597_v27  ;;  %v441_v61 = vrot.slane %v436_v59, %v440_v58  ;;  %v445_v63 = vrot.slane %v436_v59, %v444_v60 }
  0x17   :  { %346 = vmatpush1.bf16.msra.mxu1 %v560_v18 }
  0x18   :  { %347 = vmatprep.subr.bf16.mxu1 %v561_v20 }
  0x19   :  { %389 = vmatpush1.bf16.msra.mxu0 %v599_v29 }
  0x1a   :  { %390 = vmatprep.subr.bf16.mxu0 %v603_v31 }
  0x1b   :  { %348 = vmatpush1.bf16.msra.mxu1 %v563_v22 }
  0x1c   :  { %349 = vmatprep.subr.bf16.mxu1 %v564_v24 }
  0x1d   :  { %391 = vmatpush1.bf16.msra.mxu0 %v605_v33 }
  0x1e   :  { %392 = vmatprep.subr.bf16.mxu0 %v609_v36 }
  0x1f   :  { %350 = vmatpush1.bf16.msra.mxu1 %v566_v26 }
  0x20   :  { %351 = vmatprep.subr.bf16.mxu1 %v570_v28 }
  0x21   :  { %393 = vmatpush1.bf16.msra.mxu0 %v611_v38 }
  0x23   :  { %352 = vmatpush1.bf16.msra.mxu1 %v572_v30 }
  0x24   :  { %353 = vmatprep.subr.bf16.mxu1 %v576_v32  ;;  %411 = vmatmul.mubr.bf16.vlgmr.msra.gmra.mrb[0].mxu0 %v615_v41 }
  0x27   :  { %354 = vmatpush1.bf16.msra.mxu1 %v578_v35 }
  0x28   :  { %355 = vmatprep.subr.bf16.mxu1 %v582_v37 }
  0x2b   :  { %356 = vmatpush1.bf16.msra.mxu1 %v584_v39 }
  0x2c   :  { %357 = vmatprep.subr.bf16.mxu1 %v588_v40 }
  0x2f   :  { %358 = vmatpush1.bf16.msra.mxu1 %v590_v42 }
  0x30   :  { %359 = vmatprep.subr.bf16.mxu1 %v594_v43 }
  0x33   :  { %360 = vmatpush1.bf16.msra.mxu1 %v596_v44 }
  0x34   :  { %361 = vmatprep.subr.bf16.mxu1 %v600_v45 }
  0x37   :  { %362 = vmatpush1.bf16.msra.mxu1 %v602_v46 }
  0x38   :  { %363 = vmatprep.subr.bf16.mxu1 %v606_v47 }
  0x3b   :  { %364 = vmatpush1.bf16.msra.mxu1 %v608_v48 }
  0x3c   :  { %365 = vmatprep.subr.bf16.mxu1 %v612_v49 }
  0x3f   :  { %366 = vmatpush1.bf16.msra.mxu1 %v614_v50 }
  0x42   :  { %368 = vmatmul.mubr.bf16.vlgmr.msra.gmra.mrb[0].mxu1 %v616_v51 }
  0xf7   :  { %v412_v52 = vpop.f32.mrb[0].mxu0 }
  0xf8   :  { %v414_v53 = vpop.f32.mrb[1].mxu0 }
  0xf9   :  { %v416_v54 = vpop.f32.mrb[2].mxu0 }
  0xfa   :  { %v418_v55 = vpop.f32.mrb[3].mxu0 }
 0x115   :  { %v369_v62 = vpop.f32.mrb[0].mxu1 }
 0x116   :  { %v413_v0 = vadd.f32 %v412_v52, %v369_v62  ;;  %v371_v1 = vpop.f32.mrb[1].mxu1 }
 0x117   :  { %v415_v2 = vadd.f32 %v414_v53, %v371_v1  ;;  %v373_v3 = vpop.f32.mrb[2].mxu1 }
 0x118   :  { %v448_v4 = vadd.f32 %v441_v61, %v413_v0  ;;  %v417_v5 = vadd.f32 %v416_v54, %v373_v3  ;;  %v375_v6 = vpop.f32.mrb[3].mxu1 }
 0x119   :  { %v449_v7 = vadd.f32 %v445_v63, %v415_v2  ;;  %v419_v8 = vadd.f32 %v418_v55, %v375_v6 }
 0x11a   :  { %v457_v9 = vmax.f32 %v448_v4, 0.0  ;;  %v450_v10 = vadd.f32 %v441_v61, %v417_v5 }
 0x11b   :  { %v451_v11 = vadd.f32 %v445_v63, %v419_v8 }
 0x11c   :  { %v536_v12 = vpack.c.bf16 %v449_v7, %v457_v9  ;;  %v459_v13 = vmax.f32 %v450_v10, 0.0 }
 0x11e   :  { %477 = vst [vmem:[%s805_s3] sm:$0xff] %v536_v12  ;;  %v537_v14 = vpack.c.bf16 %v451_v11, %v459_v13 }
 0x120   :  { %478 = vst [vmem:[%s805_s3 + $0x8] sm:$0xff] %v537_v14 }

// kernel: resnet_forward.37
= control target key start
LH: loop header
LB: loop body
LE: loop exit
PB: predicated region body
PF: predicated region fallthrough
CT: control target
= control target key end

     0   :  { %v247_v3 = vmov 0.0|0.0   ;;  %vm248_vm0 = vmmov 0   ;;  %v249_v6 = vmov 0.0   ;;  %s340_s0 = inlined_call_operand.vmem [shape: bf16[2,1,128], index: 0, kind: input, shape index: {}]   ;;  %s341_s1 = inlined_call_operand.vmem [shape: f32[128,128], index: 1, kind: input, shape index: {}]   ;;  %s342_s2 = inlined_call_operand.vmem [shape: f32[1,128], index: 2, kind: input, shape index: {}]   ;;  %s343_s3 = inlined_call_operand.hbm [shape: f32[2,128], index: 3, kind: output, shape index: {}]  }
   0x1   :  { %v21_v0 = vld [vmem:[%s341_s1] sm:$0xff]  ;;  %v22_v1 = vld [vmem:[%s341_s1 + $0x8] sm:$0xff]  ;;  %v23_v2 = vld [vmem:[%s341_s1 + $0x10] sm:$0xff]  ;;  %195 = vmatprep.subr.bf16.mxu0 %v247_v3  ;;  %192 = vmatprep.mubr.msk.f32.mxu0 %vm248_vm0, %v249_v6 }
   0x2   :  { %v196_v4 = vpack.c.bf16 %v22_v1, %v21_v0  ;;  %v24_v5 = vld [vmem:[%s341_s1 + $0x18] sm:$0xff]  ;;  %v25_v8 = vld [vmem:[%s341_s1 + $0x20] sm:$0xff]  ;;  %v26_v9 = vld [vmem:[%s341_s1 + $0x28] sm:$0xff] }
   0x3   :  { %v199_v7 = vpack.c.bf16 %v24_v5, %v23_v2 }
   0x4   :  { %197 = vmatpush3.bf16.msra.mxu0 %v196_v4 }
   0x5   :  { %198 = vmatprep.subr.bf16.mxu0 %v247_v3 }
   0x6   :  { %8 = vsyncpa [#allocation3], 0  ;;  %v202_v10 = vpack.c.bf16 %v26_v9, %v25_v8  ;;  %v27_v11 = vld [vmem:[%s341_s1 + $0x30] sm:$0xff]  ;;  %v28_v12 = vld [vmem:[%s341_s1 + $0x38] sm:$0xff]  ;;  %v46_v17 = vlaneseq  ;;  %vm54_vm1 = vcmask 1041409   ;;  %s250_s22 = smov [#allocation2]  }
   0x7   :  { %v205_v13 = vpack.c.bf16 %v28_v12, %v27_v11  ;;  %v29_v14 = vld [vmem:[%s341_s1 + $0x40] sm:$0xff]  ;;  %v30_v15 = vld [vmem:[%s341_s1 + $0x48] sm:$0xff]  ;;  %v31_v18 = vld [vmem:[%s341_s1 + $0x50] sm:$0xff]  ;;  %s134_s23 = sshll.u32 %s250_s22, 4  ;;  %s135_s23 = int_to_ptr.vmem [resolvable:$true] %s134_s23 }
   0x8   :  { %200 = vmatpush3.bf16.msra.mxu0 %v199_v7  ;;  %v208_v16 = vpack.c.bf16 %v30_v15, %v29_v14  ;;  %v32_v19 = vld [vmem:[%s341_s1 + $0x58] sm:$0xff]  ;;  %v33_v21 = vld [vmem:[%s341_s1 + $0x60] sm:$0xff]  ;;  %v47_v22 = vshrl.u32 %v46_v17, 7  ;;  %v34_v23 = vld [vmem:[%s341_s1 + $0x68] sm:$0xff]  ;;  %p228_p1 = scmp.lt.s32.totalorder %s135_s23, %s135_s23 }
   0x9   :  { %201 = vmatprep.subr.bf16.mxu0 %v247_v3  ;;  %v211_v20 = vpack.c.bf16 %v32_v19, %v31_v18  ;;  %v15_v24 = vld [vmem:[%s340_s0] sm:$0x1]  ;;  %v16_v25 = vld [vmem:[%s340_s0 + $0x1] sm:$0x1]  ;;  %v214_v26 = vpack.c.bf16 %v34_v23, %v33_v21  ;;  %v35_v30 = vld [vmem:[%s341_s1 + $0x70] sm:$0xff] }
   0xa   :  { %v17_v27 = vunpack.c.l.bf16 %v15_v24  ;;  %v18_v28 = vunpack.c.l.bf16 %v16_v25  ;;  %v48_v29 = vsub.s32 0, %v47_v22  ;;  %v36_v31 = vld [vmem:[%s341_s1 + $0x78] sm:$0xff]  ;;  %v142_v36 = vld [vmem:[%s342_s2] ss:$0 sm:$0xff]  ;;  %s223_s1 = scalar_lea.vmem %s135_s23, 32 }
   0xb   :  { %v217_v32 = vpack.c.bf16 %v36_v31, %v35_v30  ;;  %p224_p0 = scmp.ne.s32.totalorder %s135_s23, %s223_s1  ;;  %p229_p2 = scmp.lt.s32.totalorder %s223_s1, %s223_s1 }
   0xc   :  { %203 = vmatpush3.bf16.msra.mxu0 %v202_v10  ;;  %v49_v33 = vrot.slane %v17_v27, %v48_v29  ;;  %v53_v34 = vrot.slane %v18_v28, %v48_v29 }
   0xd   :  { %204 = vmatprep.subr.bf16.mxu0 %v247_v3  ;;  %p230_p3 = por %p229_p2, %p228_p1 }
   0xe   :  { %v55_v35 = vsel %vm54_vm1, %v53_v34, %v49_v33 }
   0xf   :  { %p231_p4 = pnand %p230_p3, %p224_p0 }
  0x10   :  { %206 = vmatpush3.bf16.msra.mxu0 %v205_v13 }
  0x11   :  { %207 = vmatprep.subr.bf16.mxu0 %v247_v3 }
  0x14   :  { %209 = vmatpush3.bf16.msra.mxu0 %v208_v16 }
  0x15   :  { %210 = vmatprep.subr.bf16.mxu0 %v247_v3 }
  0x18   :  { %212 = vmatpush3.bf16.msra.mxu0 %v211_v20 }
  0x19   :  { %213 = vmatprep.subr.bf16.mxu0 %v247_v3 }
  0x1c   :  { %215 = vmatpush3.bf16.msra.mxu0 %v214_v26 }
  0x1d   :  { %216 = vmatprep.subr.bf16.mxu0 %v247_v3 }
  0x20   :  { %218 = vmatpush3.bf16.msra.mxu0 %v217_v32 }
  0x23   :  { %193 = vmatmul.mubr.f32.vlgmr.msra.gmra.mrb[0].mxu0 %v55_v35 }
  0xf6   :  { %v123_v37 = vpop.f32.mrb[0].mxu0 }
  0xf7   :  { %v124_v38 = vadd.f32 %v142_v36, %v123_v37  ;;  %v194_v39 = vpop.f32.mrb[1].mxu0 }
  0xf9   :  { %127 = vst [vmem:[#allocation2] sm:$0x3] %v124_v38 }
  0xfa   :  { %234 = shalt.err (!%p231_p4)
}
  0xfb   :  { %s235_s26 = scalar_lea.hbm %s343_s3, 32 }
  0xfc   :  { %p236_p5 = scmp.ne.s32.totalorder %s343_s3, %s235_s26  ;;  %p239_p6 = scmp.lt.u32.totalorder %s235_s26, %s343_s3 }
  0xfe   :  { %p241_p7 = pnand %p239_p6, %p236_p5 }
 0x100   :  { %244 = shalt.err (!%p241_p7)
}
 0x101   :  { %137 = dma.vmem_to_hbm [thread:$0]  %s135_s23, 32, %s343_s3, [#allocation3]  }
 0x102   :  { %245 = dma.done.wait [#allocation3], 32  }
 0x103   :  { %246 = vsyncadd [#allocation3], 4294967264 }
 0x104   :  { %141 = vsyncpa [#allocation3], 1 }

// kernel: resnet_forward.35
= control target key start
LH: loop header
LB: loop body
LE: loop exit
PB: predicated region body
PF: predicated region fallthrough
CT: control target
= control target key end

     0   :  { %v709_v34 = vmov 0.0   ;;  %vm710_vm0 = vmmov 0   ;;  %s872_s1 = inlined_call_operand.vmem [shape: bf16[640,128], index: 1, kind: input, shape index: {}]   ;;  %s873_s0 = inlined_call_operand.vmem [shape: bf16[16,640], index: 0, kind: input, shape index: {}]   ;;  %s874_s2 = inlined_call_operand.vmem [shape: f32[1,128], index: 2, kind: input, shape index: {}]   ;;  %s875_s3 = inlined_call_operand.vmem [shape: bf16[16,128], index: 3, kind: output, shape index: {}]  }
   0x1   :  { %v662_v0 = vld [vmem:[%s872_s1 + $0x40] sm:$0xff]   ;;  %v666_v4 = vld [vmem:[%s872_s1 + $0x48] sm:$0xff]   ;;  %v670_v8 = vld [vmem:[%s872_s1 + $0x50] sm:$0xff]  }
   0x2   :  { %v663_v1 = vld [vmem:[%s872_s1 + $0xc0] sm:$0xff]   ;;  %587 = vmatprep.subr.bf16.mxu0 %v662_v0  ;;  %v667_v5 = vld [vmem:[%s872_s1 + $0xc8] sm:$0xff]   ;;  %v671_v9 = vld [vmem:[%s872_s1 + $0xd0] sm:$0xff]  }
   0x3   :  { %v664_v2 = vld [vmem:[%s872_s1] sm:$0xff]   ;;  %609 = vmatprep.subr.bf16.mxu1 %v663_v1  ;;  %v668_v6 = vld [vmem:[%s872_s1 + $0x8] sm:$0xff]   ;;  %v672_v10 = vld [vmem:[%s872_s1 + $0x10] sm:$0xff]  }
   0x4   :  { %v665_v3 = vld [vmem:[%s872_s1 + $0x80] sm:$0xff]   ;;  %588 = vmatpush3.bf16.msra.mxu0 %v664_v2  ;;  %v669_v7 = vld [vmem:[%s872_s1 + $0x88] sm:$0xff]   ;;  %v673_v11 = vld [vmem:[%s872_s1 + $0x90] sm:$0xff]  }
   0x5   :  { %610 = vmatpush3.bf16.msra.mxu1 %v665_v3  ;;  %589 = vmatprep.subr.bf16.mxu0 %v666_v4  ;;  %v674_v12 = vld [vmem:[%s872_s1 + $0x58] sm:$0xff]   ;;  %v678_v16 = vld [vmem:[%s872_s1 + $0x60] sm:$0xff]   ;;  %v682_v20 = vld [vmem:[%s872_s1 + $0x68] sm:$0xff]  }
   0x6   :  { %611 = vmatprep.subr.bf16.mxu1 %v667_v5  ;;  %v675_v13 = vld [vmem:[%s872_s1 + $0xd8] sm:$0xff]   ;;  %v679_v17 = vld [vmem:[%s872_s1 + $0xe0] sm:$0xff]   ;;  %v683_v21 = vld [vmem:[%s872_s1 + $0xe8] sm:$0xff]  }
   0x7   :  { %v676_v14 = vld [vmem:[%s872_s1 + $0x18] sm:$0xff]   ;;  %v680_v18 = vld [vmem:[%s872_s1 + $0x20] sm:$0xff]   ;;  %v684_v22 = vld [vmem:[%s872_s1 + $0x28] sm:$0xff]  }
   0x8   :  { %590 = vmatpush3.bf16.msra.mxu0 %v668_v6  ;;  %v677_v15 = vld [vmem:[%s872_s1 + $0x98] sm:$0xff]   ;;  %v681_v19 = vld [vmem:[%s872_s1 + $0xa0] sm:$0xff]   ;;  %v685_v23 = vld [vmem:[%s872_s1 + $0xa8] sm:$0xff]  }
   0x9   :  { %612 = vmatpush3.bf16.msra.mxu1 %v669_v7  ;;  %591 = vmatprep.subr.bf16.mxu0 %v670_v8  ;;  %v686_v24 = vld [vmem:[%s872_s1 + $0x70] sm:$0xff]   ;;  %v690_v28 = vld [vmem:[%s872_s1 + $0x78] sm:$0xff]   ;;  %v699_v36 = vld [vmem:[%s873_s0 + $0xc] ss:$20 sps:$4 sm:$0xff]  }
   0xa   :  { %613 = vmatprep.subr.bf16.mxu1 %v671_v9  ;;  %v687_v25 = vld [vmem:[%s872_s1 + $0xf0] sm:$0xff]   ;;  %v691_v29 = vld [vmem:[%s872_s1 + $0xf8] sm:$0xff]   ;;  %v700_v37 = vld [vmem:[%s872_s1 + $0x100] sm:$0xff]   ;;  %448 = vmatprep.mubr.bf16.mxu1 %v699_v36 }
   0xb   :  { %v688_v26 = vld [vmem:[%s872_s1 + $0x30] sm:$0xff]   ;;  %v692_v30 = vld [vmem:[%s872_s1 + $0x38] sm:$0xff]   ;;  %v701_v38 = vld [vmem:[%s872_s1 + $0x108] sm:$0xff]  }
   0xc   :  { %592 = vmatpush3.bf16.msra.mxu0 %v672_v10  ;;  %v689_v27 = vld [vmem:[%s872_s1 + $0xb0] sm:$0xff]   ;;  %v693_v31 = vld [vmem:[%s872_s1 + $0xb8] sm:$0xff]   ;;  %v704_v41 = vld [vmem:[%s872_s1 + $0x120] sm:$0xff]  }
   0xd   :  { %614 = vmatpush3.bf16.msra.mxu1 %v673_v11  ;;  %593 = vmatprep.subr.bf16.mxu0 %v674_v12  ;;  %v694_v32 = vld [vmem:[%s873_s0] ss:$20 sps:$4 sm:$0xff]   ;;  %v696_v33 = vld [vmem:[%s873_s0 + $0x4] ss:$20 sps:$4 sm:$0xff]   ;;  %v697_v35 = vld [vmem:[%s873_s0 + $0x8] ss:$20 sps:$4 sm:$0xff]  }
   0xe   :  { %615 = vmatprep.subr.bf16.mxu1 %v675_v13  ;;  %407 = vmatprep.mubr.bf16.mxu0 %v696_v33  ;;  %v702_v39 = vld [vmem:[%s872_s1 + $0x110] sm:$0xff]   ;;  %v703_v40 = vld [vmem:[%s872_s1 + $0x118] sm:$0xff]   ;;  %v705_v42 = vld [vmem:[%s872_s1 + $0x128] sm:$0xff]  }
   0xf   :  { %v706_v43 = vld [vmem:[%s872_s1 + $0x130] sm:$0xff]   ;;  %v707_v44 = vld [vmem:[%s872_s1 + $0x138] sm:$0xff]   ;;  %v577_v61 = vld [vmem:[%s874_s2] ss:$0 sm:$0xff] }
  0x10   :  { %594 = vmatpush3.bf16.msra.mxu0 %v676_v14  ;;  %v708_v45 = vld [vmem:[%s873_s0 + $0x10] ss:$20 sps:$4 sm:$0xff]  }
  0x11   :  { %616 = vmatpush3.bf16.msra.mxu1 %v677_v15  ;;  %595 = vmatprep.subr.bf16.mxu0 %v678_v16 }
  0x12   :  { %617 = vmatprep.subr.bf16.mxu1 %v679_v17 }
  0x14   :  { %596 = vmatpush3.bf16.msra.mxu0 %v680_v18 }
  0x15   :  { %618 = vmatpush3.bf16.msra.mxu1 %v681_v19  ;;  %597 = vmatprep.subr.bf16.mxu0 %v682_v20 }
  0x16   :  { %619 = vmatprep.subr.bf16.mxu1 %v683_v21 }
  0x18   :  { %598 = vmatpush3.bf16.msra.mxu0 %v684_v22 }
  0x19   :  { %620 = vmatpush3.bf16.msra.mxu1 %v685_v23  ;;  %599 = vmatprep.subr.bf16.mxu0 %v686_v24 }
  0x1a   :  { %621 = vmatprep.subr.bf16.mxu1 %v687_v25 }
  0x1c   :  { %600 = vmatpush3.bf16.msra.mxu0 %v688_v26 }
  0x1d   :  { %622 = vmatpush3.bf16.msra.mxu1 %v689_v27  ;;  %601 = vmatprep.subr.bf16.mxu0 %v690_v28 }
  0x1e   :  { %623 = vmatprep.subr.bf16.mxu1 %v691_v29 }
  0x20   :  { %602 = vmatpush3.bf16.msra.mxu0 %v692_v30 }
  0x21   :  { %624 = vmatpush3.bf16.msra.mxu1 %v693_v31  ;;  %640 = vmatprep.subr.bf16.mxu0 %v709_v34 }
  0x23   :  { %408 = vmatmul.mubr.bf16.vlgmr.msra.gmra.mrb[0].mxu0 %v694_v32 }
  0x24   :  { %449 = vmatmul.mubr.bf16.vlgmr.msra.gmra.mrb[0].mxu1 %v697_v35  ;;  %641 = vmatpush3.bf16.msra.mxu0 %v700_v37 }
  0x25   :  { %642 = vmatprep.subr.bf16.mxu0 %v709_v34  ;;  %656 = vmatprep.mubr.msk.bf16.mxu0 %vm710_vm0, %v709_v34 }
  0x28   :  { %643 = vmatpush3.bf16.msra.mxu0 %v701_v38 }
  0x29   :  { %644 = vmatprep.subr.bf16.mxu0 %v709_v34 }
  0x2c   :  { %645 = vmatpush3.bf16.msra.mxu0 %v702_v39 }
  0x2d   :  { %646 = vmatprep.subr.bf16.mxu0 %v709_v34 }
  0x30   :  { %647 = vmatpush3.bf16.msra.mxu0 %v703_v40 }
  0x31   :  { %648 = vmatprep.subr.bf16.mxu0 %v709_v34 }
  0x34   :  { %649 = vmatpush3.bf16.msra.mxu0 %v704_v41 }
  0x35   :  { %650 = vmatprep.subr.bf16.mxu0 %v709_v34 }
  0x38   :  { %651 = vmatpush3.bf16.msra.mxu0 %v705_v42 }
  0x39   :  { %652 = vmatprep.subr.bf16.mxu0 %v709_v34 }
  0x3c   :  { %653 = vmatpush3.bf16.msra.mxu0 %v706_v43 }
  0x3d   :  { %654 = vmatprep.subr.bf16.mxu0 %v709_v34 }
  0x40   :  { %655 = vmatpush3.bf16.msra.mxu0 %v707_v44 }
  0x43   :  { %657 = vmatmul.mubr.bf16.vlgmr.msra.gmra.mrb[4].mxu0 %v708_v45 }
  0xf6   :  { %v603_v46 = vpop.f32.mrb[0].mxu0 }
  0xf7   :  { %v625_v47 = vpop.f32.mrb[0].mxu1  ;;  %v604_v48 = vpop.f32.mrb[1].mxu0 }
  0xf8   :  { %v605_v49 = vadd.f32 %v604_v48, %v603_v46  ;;  %v626_v50 = vpop.f32.mrb[1].mxu1  ;;  %v606_v51 = vpop.f32.mrb[2].mxu0 }
  0xf9   :  { %v627_v52 = vadd.f32 %v626_v50, %v625_v47  ;;  %v628_v53 = vpop.f32.mrb[2].mxu1  ;;  %v607_v54 = vpop.f32.mrb[3].mxu0 }
  0xfa   :  { %v608_v55 = vadd.f32 %v607_v54, %v606_v51  ;;  %v629_v56 = vpop.f32.mrb[3].mxu1 }
  0xfb   :  { %v630_v57 = vadd.f32 %v629_v56, %v628_v53  ;;  %v451_v58 = vadd.f32 %v627_v52, %v605_v49 }
  0xfd   :  { %v454_v59 = vadd.f32 %v630_v57, %v608_v55 }
 0x116   :  { %v491_v60 = vpop.f32.mrb[4].mxu0 }
 0x117   :  { %v492_v62 = vadd.f32 %v491_v60, %v451_v58  ;;  %v658_v63 = vpop.f32.mrb[5].mxu0 }
 0x118   :  { %v494_v0 = vpop.f32.mrb[6].mxu0 }
 0x119   :  { %v514_v1 = vadd.f32 %v577_v61, %v492_v62  ;;  %v495_v2 = vadd.f32 %v494_v0, %v454_v59  ;;  %v659_v3 = vpop.f32.mrb[7].mxu0 }
 0x11b   :  { %v515_v4 = vadd.f32 %v577_v61, %v495_v2  ;;  %v516_v5 = vmax.f32 %v514_v1, 0.0 }
 0x11d   :  { %v517_v6 = vmax.f32 %v515_v4, 0.0 }
 0x11f   :  { %v585_v7 = vpack.c.bf16 %v517_v6, %v516_v5 }
 0x121   :  { %586 = vst [vmem:[%s875_s3] sm:$0xff] %v585_v7  }

// kernel: resnet_forward.34
= control target key start
LH: loop header
LB: loop body
LE: loop exit
PB: predicated region body
PF: predicated region fallthrough
CT: control target
= control target key end

     0   :  { %v722_v34 = vmov 0.0   ;;  %vm723_vm0 = vmmov 0   ;;  %s893_s1 = inlined_call_operand.vmem [shape: bf16[640,128], index: 1, kind: input, shape index: {}]   ;;  %s894_s0 = inlined_call_operand.vmem [shape: bf16[16,640], index: 0, kind: input, shape index: {}]   ;;  %s895_s3 = inlined_call_operand.vmem [shape: bf16[16,128], index: 3, kind: input, shape index: {}]   ;;  %s896_s2 = inlined_call_operand.vmem [shape: f32[1,128], index: 2, kind: input, shape index: {}]   ;;  %s897_s4 = inlined_call_operand.vmem [shape: bf16[16,128], index: 4, kind: output, shape index: {}]  }
   0x1   :  { %v675_v0 = vld [vmem:[%s893_s1 + $0x40] sm:$0xff]   ;;  %v679_v4 = vld [vmem:[%s893_s1 + $0x48] sm:$0xff]   ;;  %v683_v8 = vld [vmem:[%s893_s1 + $0x50] sm:$0xff]  }
   0x2   :  { %v676_v1 = vld [vmem:[%s893_s1 + $0xc0] sm:$0xff]   ;;  %600 = vmatprep.subr.bf16.mxu0 %v675_v0  ;;  %v680_v5 = vld [vmem:[%s893_s1 + $0xc8] sm:$0xff]   ;;  %v684_v9 = vld [vmem:[%s893_s1 + $0xd0] sm:$0xff]  }
   0x3   :  { %v677_v2 = vld [vmem:[%s893_s1] sm:$0xff]   ;;  %622 = vmatprep.subr.bf16.mxu1 %v676_v1  ;;  %v681_v6 = vld [vmem:[%s893_s1 + $0x8] sm:$0xff]   ;;  %v685_v10 = vld [vmem:[%s893_s1 + $0x10] sm:$0xff]  }
   0x4   :  { %v678_v3 = vld [vmem:[%s893_s1 + $0x80] sm:$0xff]   ;;  %601 = vmatpush3.bf16.msra.mxu0 %v677_v2  ;;  %v682_v7 = vld [vmem:[%s893_s1 + $0x88] sm:$0xff]   ;;  %v686_v11 = vld [vmem:[%s893_s1 + $0x90] sm:$0xff]  }
   0x5   :  { %623 = vmatpush3.bf16.msra.mxu1 %v678_v3  ;;  %602 = vmatprep.subr.bf16.mxu0 %v679_v4  ;;  %v687_v12 = vld [vmem:[%s893_s1 + $0x58] sm:$0xff]   ;;  %v691_v16 = vld [vmem:[%s893_s1 + $0x60] sm:$0xff]   ;;  %v695_v20 = vld [vmem:[%s893_s1 + $0x68] sm:$0xff]  }
   0x6   :  { %624 = vmatprep.subr.bf16.mxu1 %v680_v5  ;;  %v688_v13 = vld [vmem:[%s893_s1 + $0xd8] sm:$0xff]   ;;  %v692_v17 = vld [vmem:[%s893_s1 + $0xe0] sm:$0xff]   ;;  %v696_v21 = vld [vmem:[%s893_s1 + $0xe8] sm:$0xff]  }
   0x7   :  { %v689_v14 = vld [vmem:[%s893_s1 + $0x18] sm:$0xff]   ;;  %v693_v18 = vld [vmem:[%s893_s1 + $0x20] sm:$0xff]   ;;  %v697_v22 = vld [vmem:[%s893_s1 + $0x28] sm:$0xff]  }
   0x8   :  { %603 = vmatpush3.bf16.msra.mxu0 %v681_v6  ;;  %v690_v15 = vld [vmem:[%s893_s1 + $0x98] sm:$0xff]   ;;  %v694_v19 = vld [vmem:[%s893_s1 + $0xa0] sm:$0xff]   ;;  %v698_v23 = vld [vmem:[%s893_s1 + $0xa8] sm:$0xff]  }
   0x9   :  { %625 = vmatpush3.bf16.msra.mxu1 %v682_v7  ;;  %604 = vmatprep.subr.bf16.mxu0 %v683_v8  ;;  %v699_v24 = vld [vmem:[%s893_s1 + $0x70] sm:$0xff]   ;;  %v703_v28 = vld [vmem:[%s893_s1 + $0x78] sm:$0xff]   ;;  %v712_v36 = vld [vmem:[%s894_s0 + $0xc] ss:$20 sps:$4 sm:$0xff]  }
   0xa   :  { %626 = vmatprep.subr.bf16.mxu1 %v684_v9  ;;  %v700_v25 = vld [vmem:[%s893_s1 + $0xf0] sm:$0xff]   ;;  %v704_v29 = vld [vmem:[%s893_s1 + $0xf8] sm:$0xff]   ;;  %v713_v37 = vld [vmem:[%s893_s1 + $0x100] sm:$0xff]   ;;  %451 = vmatprep.mubr.bf16.mxu1 %v712_v36 }
   0xb   :  { %v701_v26 = vld [vmem:[%s893_s1 + $0x30] sm:$0xff]   ;;  %v705_v30 = vld [vmem:[%s893_s1 + $0x38] sm:$0xff]   ;;  %v714_v38 = vld [vmem:[%s893_s1 + $0x108] sm:$0xff]  }
   0xc   :  { %605 = vmatpush3.bf16.msra.mxu0 %v685_v10  ;;  %v702_v27 = vld [vmem:[%s893_s1 + $0xb0] sm:$0xff]   ;;  %v706_v31 = vld [vmem:[%s893_s1 + $0xb8] sm:$0xff]   ;;  %v717_v41 = vld [vmem:[%s893_s1 + $0x120] sm:$0xff]  }
   0xd   :  { %627 = vmatpush3.bf16.msra.mxu1 %v686_v11  ;;  %606 = vmatprep.subr.bf16.mxu0 %v687_v12  ;;  %v707_v32 = vld [vmem:[%s894_s0] ss:$20 sps:$4 sm:$0xff]   ;;  %v709_v33 = vld [vmem:[%s894_s0 + $0x4] ss:$20 sps:$4 sm:$0xff]   ;;  %v710_v35 = vld [vmem:[%s894_s0 + $0x8] ss:$20 sps:$4 sm:$0xff]  }
   0xe   :  { %628 = vmatprep.subr.bf16.mxu1 %v688_v13  ;;  %410 = vmatprep.mubr.bf16.mxu0 %v709_v33  ;;  %v715_v39 = vld [vmem:[%s893_s1 + $0x110] sm:$0xff]   ;;  %v716_v40 = vld [vmem:[%s893_s1 + $0x118] sm:$0xff]   ;;  %v718_v42 = vld [vmem:[%s893_s1 + $0x128] sm:$0xff]  }
   0xf   :  { %v719_v43 = vld [vmem:[%s893_s1 + $0x130] sm:$0xff]   ;;  %v720_v44 = vld [vmem:[%s893_s1 + $0x138] sm:$0xff]   ;;  %v592_v60 = vld [vmem:[%s895_s3] sm:$0xff]  }
  0x10   :  { %607 = vmatpush3.bf16.msra.mxu0 %v689_v14  ;;  %v721_v45 = vld [vmem:[%s894_s0 + $0x10] ss:$20 sps:$4 sm:$0xff]   ;;  %v586_v62 = vld [vmem:[%s896_s2] ss:$0 sm:$0xff]  ;;  %v593_v0 = vunpack.c.l.bf16 %v592_v60  ;;  %v594_v5 = vunpack.c.h.bf16 %v592_v60 }
  0x11   :  { %629 = vmatpush3.bf16.msra.mxu1 %v690_v15  ;;  %608 = vmatprep.subr.bf16.mxu0 %v691_v16 }
  0x12   :  { %630 = vmatprep.subr.bf16.mxu1 %v692_v17 }
  0x14   :  { %609 = vmatpush3.bf16.msra.mxu0 %v693_v18 }
  0x15   :  { %631 = vmatpush3.bf16.msra.mxu1 %v694_v19  ;;  %610 = vmatprep.subr.bf16.mxu0 %v695_v20 }
  0x16   :  { %632 = vmatprep.subr.bf16.mxu1 %v696_v21 }
  0x18   :  { %611 = vmatpush3.bf16.msra.mxu0 %v697_v22 }
  0x19   :  { %633 = vmatpush3.bf16.msra.mxu1 %v698_v23  ;;  %612 = vmatprep.subr.bf16.mxu0 %v699_v24 }
  0x1a   :  { %634 = vmatprep.subr.bf16.mxu1 %v700_v25 }
  0x1c   :  { %613 = vmatpush3.bf16.msra.mxu0 %v701_v26 }
  0x1d   :  { %635 = vmatpush3.bf16.msra.mxu1 %v702_v27  ;;  %614 = vmatprep.subr.bf16.mxu0 %v703_v28 }
  0x1e   :  { %636 = vmatprep.subr.bf16.mxu1 %v704_v29 }
  0x20   :  { %615 = vmatpush3.bf16.msra.mxu0 %v705_v30 }
  0x21   :  { %637 = vmatpush3.bf16.msra.mxu1 %v706_v31  ;;  %653 = vmatprep.subr.bf16.mxu0 %v722_v34 }
  0x23   :  { %411 = vmatmul.mubr.bf16.vlgmr.msra.gmra.mrb[0].mxu0 %v707_v32 }
  0x24   :  { %452 = vmatmul.mubr.bf16.vlgmr.msra.gmra.mrb[0].mxu1 %v710_v35  ;;  %654 = vmatpush3.bf16.msra.mxu0 %v713_v37 }
  0x25   :  { %655 = vmatprep.subr.bf16.mxu0 %v722_v34  ;;  %669 = vmatprep.mubr.msk.bf16.mxu0 %vm723_vm0, %v722_v34 }
  0x28   :  { %656 = vmatpush3.bf16.msra.mxu0 %v714_v38 }
  0x29   :  { %657 = vmatprep.subr.bf16.mxu0 %v722_v34 }
  0x2c   :  { %658 = vmatpush3.bf16.msra.mxu0 %v715_v39 }
  0x2d   :  { %659 = vmatprep.subr.bf16.mxu0 %v722_v34 }
  0x30   :  { %660 = vmatpush3.bf16.msra.mxu0 %v716_v40 }
  0x31   :  { %661 = vmatprep.subr.bf16.mxu0 %v722_v34 }
  0x34   :  { %662 = vmatpush3.bf16.msra.mxu0 %v717_v41 }
  0x35   :  { %663 = vmatprep.subr.bf16.mxu0 %v722_v34 }
  0x38   :  { %664 = vmatpush3.bf16.msra.mxu0 %v718_v42 }
  0x39   :  { %665 = vmatprep.subr.bf16.mxu0 %v722_v34 }
  0x3c   :  { %666 = vmatpush3.bf16.msra.mxu0 %v719_v43 }
  0x3d   :  { %667 = vmatprep.subr.bf16.mxu0 %v722_v34 }
  0x40   :  { %668 = vmatpush3.bf16.msra.mxu0 %v720_v44 }
  0x43   :  { %670 = vmatmul.mubr.bf16.vlgmr.msra.gmra.mrb[4].mxu0 %v721_v45 }
  0xf6   :  { %v616_v46 = vpop.f32.mrb[0].mxu0 }
  0xf7   :  { %v638_v47 = vpop.f32.mrb[0].mxu1  ;;  %v617_v48 = vpop.f32.mrb[1].mxu0 }
  0xf8   :  { %v618_v49 = vadd.f32 %v617_v48, %v616_v46  ;;  %v639_v50 = vpop.f32.mrb[1].mxu1  ;;  %v619_v51 = vpop.f32.mrb[2].mxu0 }
  0xf9   :  { %v640_v52 = vadd.f32 %v639_v50, %v638_v47  ;;  %v641_v53 = vpop.f32.mrb[2].mxu1  ;;  %v620_v54 = vpop.f32.mrb[3].mxu0 }
  0xfa   :  { %v621_v55 = vadd.f32 %v620_v54, %v619_v51  ;;  %v642_v56 = vpop.f32.mrb[3].mxu1 }
  0xfb   :  { %v643_v57 = vadd.f32 %v642_v56, %v641_v53  ;;  %v454_v58 = vadd.f32 %v640_v52, %v618_v49 }
  0xfd   :  { %v457_v59 = vadd.f32 %v643_v57, %v621_v55 }
 0x116   :  { %v494_v61 = vpop.f32.mrb[4].mxu0 }
 0x117   :  { %v495_v63 = vadd.f32 %v494_v61, %v454_v58  ;;  %v671_v1 = vpop.f32.mrb[5].mxu0 }
 0x118   :  { %v497_v2 = vpop.f32.mrb[6].mxu0 }
 0x119   :  { %v517_v3 = vadd.f32 %v586_v62, %v495_v63  ;;  %v498_v4 = vadd.f32 %v497_v2, %v457_v59  ;;  %v672_v6 = vpop.f32.mrb[7].mxu0 }
 0x11b   :  { %v523_v7 = vadd.f32 %v593_v0, %v517_v3  ;;  %v518_v8 = vadd.f32 %v586_v62, %v498_v4 }
 0x11d   :  { %v524_v9 = vadd.f32 %v594_v5, %v518_v8  ;;  %v525_v10 = vmax.f32 %v523_v7, 0.0 }
 0x11f   :  { %v526_v11 = vmax.f32 %v524_v9, 0.0 }
 0x121   :  { %v598_v12 = vpack.c.bf16 %v526_v11, %v525_v10 }
 0x123   :  { %599 = vst [vmem:[%s897_s4] sm:$0xff] %v598_v12  }

</bundles_post_ra>
